<compile_context>
chip_gen: v6e
topology: v6e:2x2x1
jax: 0.10.0
libtpu: 0.0.40
codegen_flags: <defaults>
</compile_context>

<pallas_src>
import jax
import jax.numpy as jnp
from jax.experimental import pallas as pl
from jax.experimental.pallas import tpu as pltpu

GRID = 7                       # YOLOv1 7x7 grid
CH = 30                        # 8 loc + 2 fg + 20 cls
CELLS = GRID * GRID            # 49
CH_PAD = 32                    # per-cell channels padded 30 -> 32
CELLS_PAD = 64                 # cells padded 49 -> 64
NP = CELLS_PAD * CH_PAD        # 2048 = 16 * 128 lanes  (lane-dense)

TN = 1024                      # N tile (multiple of 128 and of CH_PAD)
TK_MAX = 512                   # K tile


def yolo_fused_kernel(x_ref, w_ref, b_ref, s_ref, st_ref, o_ref, acc_ref):
    """K-tiled bf16 matmul with the YOLO head fused as the last-K epilogue.

    x_ref : (B, tk)  bf16   activations
    w_ref : (tk, tn) bf16   weights (cell-padded planar layout)
    b_ref : (1, tn)  f32    bias
    s_ref : (tn, 64) bf16   0/1 lane -> cell membership
    st_ref: (64, tn) bf16   0/1 cell -> lane membership (transpose of s)
    o_ref : (B, tn)  f32    fused head output slab
    acc_ref:(B, tn)  f32    VMEM accumulator
    """
    k = pl.program_id(1)
    nk = pl.num_programs(1)

    @pl.when(k == 0)
    def _init():
        acc_ref[...] = jnp.zeros_like(acc_ref)

    # (B, tk) @ (tk, tn) on the MXU, f32 accumulation.
    acc_ref[...] += jnp.dot(x_ref[...], w_ref[...],
                            preferred_element_type=jnp.float32)

    @pl.when(k == nk - 1)
    def _epilogue():
        feat = acc_ref[...] + b_ref[...]                         # (B, tn) f32
        lane = jax.lax.broadcasted_iota(jnp.int32, feat.shape, 1)
        ch = lane % CH_PAD                                       # channel within a cell
        is_loc = ch < 8
        is_fg = ch == 8
        is_cls = jnp.logical_and(ch >= 10, ch < CH)

        s = s_ref[...].astype(jnp.float32)                       # (tn, 64)
        st = st_ref[...].astype(jnp.float32)                     # (64, tn)

        # ---- 20-way class softmax per cell (segment sums via tiny MXU matmuls)
        cls_logits = jnp.where(is_cls, feat, -jnp.inf)
        m = jnp.max(cls_logits, axis=-1, keepdims=True)          # stable shift
        e_cls = jnp.exp(cls_logits - m)                          # 0 off class lanes
        cell_sum = jnp.dot(e_cls, s, preferred_element_type=jnp.float32)   # (B, 64)
        denom = jnp.dot(cell_sum, st, preferred_element_type=jnp.float32)  # (B, tn)
        cls_p = e_cls * pl.reciprocal(denom, approx=True)

        # ---- foreground: softmax([l8, l9])[0] == sigmoid(l8 - l9)
        l9 = jnp.where(ch == 9, feat, 0.0)
        l9_cell = jnp.dot(l9, s, preferred_element_type=jnp.float32)
        l9_b = jnp.dot(l9_cell, st, preferred_element_type=jnp.float32)
        fg_p = 1.0 / (1.0 + jnp.exp(l9_b - feat))                # valid at ch == 8

        # ---- box-regression sigmoid
        loc_p = 1.0 / (1.0 + jnp.exp(-feat))                     # valid at ch < 8

        o_ref[...] = jnp.where(is_loc, loc_p,
                     jnp.where(is_fg, fg_p,
                     jnp.where(is_cls, cls_p, 0.0)))


@jax.jit
def yolo_forward(x, w, b):
    B = x.shape[0]
    K = w.shape[0]
    x_flat = x.reshape(B, K)

    # ---- one-time re-layout of weights/bias to the cell-padded planar layout
    w_pad = jnp.pad(w.reshape(K, CELLS, CH),
                    ((0, 0), (0, CELLS_PAD - CELLS), (0, CH_PAD - CH)))
    w_pad = w_pad.reshape(K, NP)
    b_pad = jnp.pad(b.reshape(1, CELLS, CH),
                    ((0, 0), (0, CELLS_PAD - CELLS), (0, CH_PAD - CH)))
    b_pad = b_pad.reshape(1, NP).astype(jnp.float32)

    # ---- K tiling (pad K to a multiple of tk if needed)
    tk = min(TK_MAX, K)
    kp = ((K + tk - 1) // tk) * tk
    if kp != K:
        x_flat = jnp.pad(x_flat, ((0, 0), (0, kp - K)))
        w_pad = jnp.pad(w_pad, ((0, kp - K), (0, 0)))

    x_bf = x_flat.astype(jnp.bfloat16)
    w_bf = w_pad.astype(jnp.bfloat16)

    # ---- constant 0/1 cell-membership matrices (segment sum / broadcast back)
    cell_of_lane = jnp.arange(NP, dtype=jnp.int32) // CH_PAD          # (NP,)
    cell_ids = jnp.arange(CELLS_PAD, dtype=jnp.int32)                 # (64,)
    seg = (cell_of_lane[:, None] == cell_ids[None, :]).astype(jnp.bfloat16)    # (NP, 64)
    seg_t = (cell_ids[:, None] == cell_of_lane[None, :]).astype(jnp.bfloat16)  # (64, NP)

    tn = TN
    grid = (NP // tn, kp // tk)

    out = pl.pallas_call(
        yolo_fused_kernel,
        out_shape=jax.ShapeDtypeStruct((B, NP), jnp.float32),
        grid=grid,
        in_specs=[
            pl.BlockSpec((B, tk), lambda j, k: (0, k)),           # activations
            pl.BlockSpec((tk, tn), lambda j, k: (k, j)),          # bf16 weights
            pl.BlockSpec((1, tn), lambda j, k: (0, j)),           # bias
            pl.BlockSpec((tn, CELLS_PAD), lambda j, k: (j, 0)),   # seg
            pl.BlockSpec((CELLS_PAD, tn), lambda j, k: (0, j)),   # seg_t
        ],
        out_specs=pl.BlockSpec((B, tn), lambda j, k: (0, j)),
        scratch_shapes=[pltpu.VMEM((B, tn), jnp.float32)],
        compiler_params=pltpu.CompilerParams(
            dimension_semantics=("parallel", "arbitrary"),
            vmem_limit_bytes=32 * 1024 * 1024),
    )(x_bf, w_bf, b_pad, seg, seg_t)

    # ---- wrapper glue: strip cell/channel padding, present PyTorch shapes
    head = out.reshape(B, CELLS_PAD, CH_PAD)[:, :CELLS, :]
    head = head.reshape(B, GRID, GRID, CH_PAD)
    fg_score = head[..., 8]                                       # (B, 7, 7)
    loc = head[..., 0:8].reshape(B, GRID, GRID, 2, 4)             # (B, 7, 7, 2, 4)
    cls_score = head[..., 10:CH]                                  # (B, 7, 7, 20)
    return fg_score, loc, cls_score


# ---------------------------------------------------------------------------
# Pure-JAX reference (same bf16 matmul path, exact softmax/sigmoid head).
# ---------------------------------------------------------------------------
def yolo_reference(x, w, b):
    B = x.shape[0]
    feat = jnp.dot(x.reshape(B, -1).astype(jnp.bfloat16), w.astype(jnp.bfloat16),
                   preferred_element_type=jnp.float32) + b
    feat = feat.reshape(B, GRID, GRID, CH)
    cls_score = jax.nn.softmax(feat[..., 10:], axis=-1)
    fg_score = jax.nn.softmax(feat[..., 8:10], axis=-1)[..., 0]
    loc = jax.nn.sigmoid(feat[..., :8]).reshape(B, GRID, GRID, 2, 4)
    return fg_score, loc, cls_score


if __name__ == "__main__":
    key = jax.random.PRNGKey(0)
    kx, kw, kb = jax.random.split(key, 3)

    B, C, H, W = 2, 4, 16, 16                     # small NCHW input
    K = C * H * W                                 # 1024
    N = CELLS * CH                                # 1470

    x = jax.random.normal(kx, (B, C, H, W), dtype=jnp.float32)
    w = jax.random.normal(kw, (K, N), dtype=jnp.float32) * 0.05
    b = jax.random.normal(kb, (1, N), dtype=jnp.float32) * 0.1

    fg_score, loc, cls_score = jax.block_until_ready(yolo_forward(x, w, b))

    fg_ref, loc_ref, cls_ref = yolo_reference(x, w, b)
    assert fg_score.shape == (B, GRID, GRID)
    assert loc.shape == (B, GRID, GRID, 2, 4)
    assert cls_score.shape == (B, GRID, GRID, 20)
    # bf16 matmul + approx reciprocal in the epilogue -> loose tolerance
    assert jnp.allclose(fg_score, fg_ref, atol=2e-3), float(jnp.max(jnp.abs(fg_score - fg_ref)))
    assert jnp.allclose(loc, loc_ref, atol=2e-3), float(jnp.max(jnp.abs(loc - loc_ref)))
    assert jnp.allclose(cls_score, cls_ref, atol=2e-3), float(jnp.max(jnp.abs(cls_score - cls_ref)))

    # TODO(synk): get_loss / detector (NMS, data-dependent keep lists) are
    # host-side post-processing with dynamic shapes and are not kernelized.
    print("KERNEL_OK")
</pallas_src>

<mosaic_0001>
module attributes {stable_mosaic.version = 11 : i64} {
  func.func @yolo_fused_kernel(%arg0: i32, %arg1: i32, %arg2: memref<2x512xbf16, #tpu.memory_space<vmem>>, %arg3: memref<512x1024xbf16, #tpu.memory_space<vmem>>, %arg4: memref<1x1024xf32, #tpu.memory_space<vmem>>, %arg5: memref<1024x64xbf16, #tpu.memory_space<vmem>>, %arg6: memref<64x1024xbf16, #tpu.memory_space<vmem>>, %arg7: memref<2x1024xf32, #tpu.memory_space<vmem>>, %arg8: memref<2x1024xf32, #tpu.memory_space<vmem>>) attributes {dimension_semantics = [#tpu.dimension_semantics<parallel>, #tpu.dimension_semantics<arbitrary>], iteration_bounds = array<i64: 2, 2>, scalar_prefetch = 0 : i64, scratch_operands = 1 : i64, tpu.core_type = #tpu.core_type<tc>, window_params = [{transform_indices = @transform_0, window_bounds = array<i64: 2, 512>}, {transform_indices = @transform_1, window_bounds = array<i64: 512, 1024>}, {transform_indices = @transform_2, window_bounds = array<i64: 1, 1024>}, {transform_indices = @transform_3, window_bounds = array<i64: 1024, 64>}, {transform_indices = @transform_4, window_bounds = array<i64: 64, 1024>}, {transform_indices = @transform_5, window_bounds = array<i64: 2, 1024>}]} {
    %c0_i32 = arith.constant 0 : i32
    %0 = arith.cmpi eq, %arg1, %c0_i32 : i32
    %1 = arith.extui %0 : i1 to i32
    %c0_i32_0 = arith.constant 0 : i32
    %2 = arith.cmpi ne, %1, %c0_i32_0 : i32
    scf.if %2 {
      %cst_9 = arith.constant 0.000000e+00 : f32
      %12 = vector.broadcast %cst_9 : f32 to vector<2x1024xf32>
      %c0_10 = arith.constant 0 : index
      %c0_11 = arith.constant 0 : index
      %13 = vector.load %arg8[%c0_10, %c0_11] : memref<2x1024xf32, #tpu.memory_space<vmem>>, vector<2x1024xf32>
      tpu.vector_store %arg8[%c0_10, %c0_11], %12 {strides = array<i32>} : memref<2x1024xf32, #tpu.memory_space<vmem>>, vector<2x1024xf32>,
    } else {
    }
    %c0 = arith.constant 0 : index
    %c0_1 = arith.constant 0 : index
    %3 = vector.load %arg8[%c0, %c0_1] : memref<2x1024xf32, #tpu.memory_space<vmem>>, vector<2x1024xf32>
    %c0_2 = arith.constant 0 : index
    %c0_3 = arith.constant 0 : index
    %4 = vector.load %arg2[%c0_2, %c0_3] : memref<2x512xbf16, #tpu.memory_space<vmem>>, vector<2x512xbf16>
    %c0_4 = arith.constant 0 : index
    %c0_5 = arith.constant 0 : index
    %5 = vector.load %arg3[%c0_4, %c0_5] : memref<512x1024xbf16, #tpu.memory_space<vmem>>, vector<512x1024xbf16>
    %cst = arith.constant dense<0.000000e+00> : vector<2x1024xf32>
    %6 = tpu.matmul %4, %5, %cst {dimension_numbers = #tpu.dot_dimension_numbers<[1], [0], [0], [1], [0, 0, 1, 1], [], []>} : vector<2x512xbf16>, vector<512x1024xbf16>, vector<2x1024xf32> -> vector<2x1024xf32>
    %7 = arith.addf %3, %6 : vector<2x1024xf32>
    %c0_6 = arith.constant 0 : index
    %c0_7 = arith.constant 0 : index
    %8 = vector.load %arg8[%c0_6, %c0_7] : memref<2x1024xf32, #tpu.memory_space<vmem>>, vector<2x1024xf32>
    tpu.vector_store %arg8[%c0_6, %c0_7], %7 {strides = array<i32>} : memref<2x1024xf32, #tpu.memory_space<vmem>>, vector<2x1024xf32>,
    %c1_i32 = arith.constant 1 : i32
    %9 = arith.cmpi eq, %arg1, %c1_i32 : i32
    %10 = arith.extui %9 : i1 to i32
    %c0_i32_8 = arith.constant 0 : i32
    %11 = arith.cmpi ne, %10, %c0_i32_8 : i32
    scf.if %11 {
      %c0_9 = arith.constant 0 : index
      %c0_10 = arith.constant 0 : index
      %12 = vector.load %arg8[%c0_9, %c0_10] : memref<2x1024xf32, #tpu.memory_space<vmem>>, vector<2x1024xf32>
      %c0_11 = arith.constant 0 : index
      %c0_12 = arith.constant 0 : index
      %13 = vector.load %arg4[%c0_11, %c0_12] : memref<1x1024xf32, #tpu.memory_space<vmem>>, vector<1x1024xf32>
      %14 = vector.broadcast %13 : vector<1x1024xf32> to vector<2x1024xf32>
      %15 = arith.addf %12, %14 : vector<2x1024xf32>
      %16 = tpu.iota {dimensions = array<i32: 1>} : vector<2x1024xi32>
      %c32_i32 = arith.constant 32 : i32
      %c0_i32_13 = arith.constant 0 : i32
      %17 = arith.cmpi eq, %c32_i32, %c0_i32_13 : i32
      %c1_i32_14 = arith.constant 1 : i32
      %18 = arith.select %17, %c1_i32_14, %c32_i32 : i32
      %19 = vector.broadcast %18 : i32 to vector<2x1024xi32>
      %20 = arith.remsi %16, %19 : vector<2x1024xi32>
      %c0_i32_15 = arith.constant 0 : i32
      %21 = vector.broadcast %c0_i32_15 : i32 to vector<2x1024xi32>
      %22 = arith.cmpi ne, %20, %21 : vector<2x1024xi32>
      %c0_i32_16 = arith.constant 0 : i32
      %23 = vector.broadcast %c0_i32_16 : i32 to vector<2x1024xi32>
      %24 = arith.cmpi slt, %20, %23 : vector<2x1024xi32>
      %c0_i32_17 = arith.constant 0 : i32
      %25 = arith.cmpi slt, %18, %c0_i32_17 : i32
      %26 = vector.broadcast %25 : i1 to vector<2x1024xi1>
      %27 = vector.broadcast %26 : vector<2x1024xi1> to vector<2x1024xi1>
      %28 = arith.xori %24, %27 : vector<2x1024xi1>
      %29 = arith.andi %28, %22 : vector<2x1024xi1>
      %30 = vector.broadcast %18 : i32 to vector<2x1024xi32>
      %31 = arith.addi %20, %30 : vector<2x1024xi32>
      %32 = arith.select %29, %31, %20 : vector<2x1024xi1>, vector<2x1024xi32>
      %c8_i32 = arith.constant 8 : i32
      %33 = vector.broadcast %c8_i32 : i32 to vector<2x1024xi32>
      %34 = arith.cmpi slt, %32, %33 : vector<2x1024xi32>
      %c8_i32_18 = arith.constant 8 : i32
      %35 = vector.broadcast %c8_i32_18 : i32 to vector<2x1024xi32>
      %36 = arith.cmpi eq, %32, %35 : vector<2x1024xi32>
      %c10_i32 = arith.constant 10 : i32
      %37 = vector.broadcast %c10_i32 : i32 to vector<2x1024xi32>
      %38 = arith.cmpi sge, %32, %37 : vector<2x1024xi32>
      %c30_i32 = arith.constant 30 : i32
      %39 = vector.broadcast %c30_i32 : i32 to vector<2x1024xi32>
      %40 = arith.cmpi slt, %32, %39 : vector<2x1024xi32>
      %41 = arith.andi %38, %40 : vector<2x1024xi1>
      %c0_19 = arith.constant 0 : index
      %c0_20 = arith.constant 0 : index
      %42 = vector.load %arg5[%c0_19, %c0_20] : memref<1024x64xbf16, #tpu.memory_space<vmem>>, vector<1024x64xbf16>
      %43 = arith.extf %42 : vector<1024x64xbf16> to vector<1024x64xf32>
      %c0_21 = arith.constant 0 : index
      %c0_22 = arith.constant 0 : index
      %44 = vector.load %arg6[%c0_21, %c0_22] : memref<64x1024xbf16, #tpu.memory_space<vmem>>, vector<64x1024xbf16>
      %45 = arith.extf %44 : vector<64x1024xbf16> to vector<64x1024xf32>
      %cst_23 = arith.constant 0xFF800000 : f32
      %46 = vector.broadcast %cst_23 : f32 to vector<2x1024xf32>
      %47 = arith.select %41, %15, %46 : vector<2x1024xi1>, vector<2x1024xf32>
      %cst_24 = arith.constant dense<0xFF800000> : vector<2xf32>
      %48 = vector.multi_reduction <maximumf>, %47, %cst_24 [1] : vector<2x1024xf32> to vector<2xf32>
      %49 = vector.shape_cast %48 : vector<2xf32> to vector<2x1xf32>
      %50 = vector.broadcast %49 : vector<2x1xf32> to vector<2x1024xf32>
      %51 = arith.subf %47, %50 : vector<2x1024xf32>
      %52 = math.exp %51 : vector<2x1024xf32>
      %cst_25 = arith.constant dense<0.000000e+00> : vector<2x64xf32>
      %53 = tpu.matmul %52, %43, %cst_25 {dimension_numbers = #tpu.dot_dimension_numbers<[1], [0], [0], [1], [0, 0, 1, 1], [], []>} : vector<2x1024xf32>, vector<1024x64xf32>, vector<2x64xf32> -> vector<2x64xf32>
      %cst_26 = arith.constant dense<0.000000e+00> : vector<2x1024xf32>
      %54 = tpu.matmul %53, %45, %cst_26 {dimension_numbers = #tpu.dot_dimension_numbers<[1], [0], [0], [1], [0, 0, 1, 1], [], []>} : vector<2x64xf32>, vector<64x1024xf32>, vector<2x1024xf32> -> vector<2x1024xf32>
      %55 = tpu.reciprocal %54 {approx = true} : vector<2x1024xf32> -> vector<2x1024xf32>
      %56 = arith.mulf %52, %55 : vector<2x1024xf32>
      %c9_i32 = arith.constant 9 : i32
      %57 = vector.broadcast %c9_i32 : i32 to vector<2x1024xi32>
      %58 = arith.cmpi eq, %32, %57 : vector<2x1024xi32>
      %cst_27 = arith.constant 0.000000e+00 : f32
      %59 = vector.broadcast %cst_27 : f32 to vector<2x1024xf32>
      %60 = arith.select %58, %15, %59 : vector<2x1024xi1>, vector<2x1024xf32>
      %cst_28 = arith.constant dense<0.000000e+00> : vector<2x64xf32>
      %61 = tpu.matmul %60, %43, %cst_28 {dimension_numbers = #tpu.dot_dimension_numbers<[1], [0], [0], [1], [0, 0, 1, 1], [], []>} : vector<2x1024xf32>, vector<1024x64xf32>, vector<2x64xf32> -> vector<2x64xf32>
      %cst_29 = arith.constant dense<0.000000e+00> : vector<2x1024xf32>
      %62 = tpu.matmul %61, %45, %cst_29 {dimension_numbers = #tpu.dot_dimension_numbers<[1], [0], [0], [1], [0, 0, 1, 1], [], []>} : vector<2x64xf32>, vector<64x1024xf32>, vector<2x1024xf32> -> vector<2x1024xf32>
      %63 = arith.subf %62, %15 : vector<2x1024xf32>
      %64 = math.exp %63 : vector<2x1024xf32>
      %cst_30 = arith.constant 1.000000e+00 : f32
      %65 = vector.broadcast %cst_30 : f32 to vector<2x1024xf32>
      %66 = arith.addf %65, %64 : vector<2x1024xf32>
      %cst_31 = arith.constant 1.000000e+00 : f32
      %67 = vector.broadcast %cst_31 : f32 to vector<2x1024xf32>
      %68 = arith.divf %67, %66 : vector<2x1024xf32>
      %cst_32 = arith.constant 0.000000e+00 : f32
      %69 = vector.broadcast %cst_32 : f32 to vector<2x1024xf32>
      %70 = arith.subf %69, %15 : vector<2x1024xf32>
      %71 = math.exp %70 : vector<2x1024xf32>
      %cst_33 = arith.constant 1.000000e+00 : f32
      %72 = vector.broadcast %cst_33 : f32 to vector<2x1024xf32>
      %73 = arith.addf %72, %71 : vector<2x1024xf32>
      %cst_34 = arith.constant 1.000000e+00 : f32
      %74 = vector.broadcast %cst_34 : f32 to vector<2x1024xf32>
      %75 = arith.divf %74, %73 : vector<2x1024xf32>
      %cst_35 = arith.constant 0.000000e+00 : f32
      %76 = vector.broadcast %cst_35 : f32 to vector<2x1024xf32>
      %77 = arith.select %41, %56, %76 : vector<2x1024xi1>, vector<2x1024xf32>
      %78 = arith.select %36, %68, %77 : vector<2x1024xi1>, vector<2x1024xf32>
      %79 = arith.select %34, %75, %78 : vector<2x1024xi1>, vector<2x1024xf32>
      %c0_36 = arith.constant 0 : index
      %c0_37 = arith.constant 0 : index
      %80 = vector.load %arg7[%c0_36, %c0_37] : memref<2x1024xf32, #tpu.memory_space<vmem>>, vector<2x1024xf32>
      tpu.vector_store %arg7[%c0_36, %c0_37], %79 {strides = array<i32>} : memref<2x1024xf32, #tpu.memory_space<vmem>>, vector<2x1024xf32>,
    } else {
    }
    return
  }
  func.func @transform_0(%arg0: i32, %arg1: i32) -> (i32, i32) {
    %c0_i32 = arith.constant 0 : i32
    %c0_i32_0 = arith.constant 0 : i32
    return %c0_i32, %arg1 : i32, i32
  }
  func.func @transform_1(%arg0: i32, %arg1: i32) -> (i32, i32) {
    %c0_i32 = arith.constant 0 : i32
    return %arg1, %arg0 : i32, i32
  }
  func.func @transform_2(%arg0: i32, %arg1: i32) -> (i32, i32) {
    %c0_i32 = arith.constant 0 : i32
    %c0_i32_0 = arith.constant 0 : i32
    return %c0_i32, %arg0 : i32, i32
  }
  func.func @transform_3(%arg0: i32, %arg1: i32) -> (i32, i32) {
    %c0_i32 = arith.constant 0 : i32
    %c0_i32_0 = arith.constant 0 : i32
    return %arg0, %c0_i32 : i32, i32
  }
  func.func @transform_4(%arg0: i32, %arg1: i32) -> (i32, i32) {
    %c0_i32 = arith.constant 0 : i32
    %c0_i32_0 = arith.constant 0 : i32
    return %c0_i32, %arg0 : i32, i32
  }
  func.func @transform_5(%arg0: i32, %arg1: i32) -> (i32, i32) {
    %c0_i32 = arith.constant 0 : i32
    %c0_i32_0 = arith.constant 0 : i32
    return %c0_i32, %arg0 : i32, i32
  }
}

</mosaic_0001>

<bundles_post_ra>
// kernel: yolo_forward.1
= control target key start
LH: loop header
LB: loop body
LE: loop exit
PB: predicated region body
PF: predicated region fallthrough
CT: control target
= control target key end

     0   :  { %s8861_s0 = inlined_call_operand.vmem [shape: bf16[2,1024], index: 0, kind: input, shape index: {}]   ;;  %s8862_s1 = inlined_call_operand.vmem [shape: bf16[1024,2048], index: 1, kind: input, shape index: {}]   ;;  %s8863_s2 = inlined_call_operand.vmem [shape: f32[1,2048], index: 2, kind: input, shape index: {}]   ;;  %s8864_s3 = inlined_call_operand.vmem [shape: bf16[2048,64], index: 3, kind: input, shape index: {}]   ;;  %s8865_s4 = inlined_call_operand.vmem [shape: bf16[64,2048], index: 4, kind: input, shape index: {}]   ;;  %s8866_s5 = inlined_call_operand.vmem [shape: f32[2,2048], index: 5, kind: output, shape index: {}]  }
   0x1   :  { %9088 = sst [smem:[#allocation83_spill]] %s8862_s1 }
   0x2   :  { %9089 = sst [smem:[#allocation84_spill]] %s8865_s4 }
   0x3   :  { %s6176_s18 = smov 0   ;;  %s6178_s19 = smov 0  }
   0x4   :  { %s6180_s20 = smov 0   ;;  %s6182_s21 = smov 0  }
   0x5   :  { %s6184_s22 = smov 0   ;;  %s6186_s23 = smov 0  }
   0x6   :  { %s6188_s24 = smov 0   ;;  %s6190_s25 = smov 0  }
   0x7   :  { %s6192_s26 = smov 0  }
   0x8 LB: > { %s24_s27 = sadd.s32 1, %s6132_s24  ;;  %s27_s28 = sadd.s32 1, %s6136_s25  ;;  %s6140_s26 = sphi %s6192_s26, %s15_s26   ;;  %s6136_s25 = sphi %s6190_s25, %s9573_s25   ;;  %s6132_s24 = sphi %s6188_s24, %s9572_s24   ;;  %s6128_s23 = sphi %s6186_s23, %s9571_s23   ;;  %s6124_s22 = sphi %s6184_s22, %s9570_s22   ;;  %s6120_s21 = sphi %s6182_s21, %s9569_s21   ;;  %s6116_s20 = sphi %s6180_s20, %s9568_s20   ;;  %s6112_s19 = sphi %s6178_s19, %s9567_s19   ;;  %s6108_s18 = sphi %s6176_s18, %s9566_s18  }
   0x9   : > { %p25_p0 = scmp.ge.s32.totalorder %s24_s27, 2  ;;  %p69_p1 = scmp.ne.s32.totalorder %s6120_s21, %s6116_s20 }
   0xa   : > { %p70_p2 = scmp.eq.s32.totalorder %s6140_s26, 0  ;;  %p147_p5 = scmp.ne.s32.totalorder %s6112_s19, %s6108_s18 }
   0xb   : > { %s9575_s27 = smov (%p25_p0, %s24_s27), 0  ;;  %s9577_s28 = smov (!%p25_p0, %s27_s28), %s6136_s25 }
   0xc   : > { %p6229_p3 = por %p70_p2, %p69_p1  ;;  %p29_p4 = scmp.ge.s32.totalorder %s9577_s28, 2 }
   0xd   : > { %s57_s30 = ssub.s32 %s6132_s24, %s9575_s27  ;;  %s62_s6 = sadd.s32 1, %s6120_s21 }
   0xe   : > { %s9579_s28 = smov (%p29_p4, %s9577_s28), 0  ;;  %p6240_p6 = por %p147_p5, %p70_p2 }
   0xf   : > { %9091 = sst [smem:[#allocation5_spill]] %s9579_s28  ;;  %s58_s8 = ssub.s32 %s6136_s25, %s9579_s28 }
  0x10   : > { %s140_s9 = sadd.s32 1, %s6112_s19  ;;  %s59_s10 = sor.u32 %s58_s8, %s57_s30 }
  0x11   : > { %p138_p7 = scmp.eq.s32.totalorder %s58_s8, 0  ;;  %p60_p8 = scmp.eq.s32.totalorder %s59_s10, 0 }
  0x12   : > { %p5026_p9 = scmp.ge.s32.totalorder %s6140_s26, 4 }
  0x13   : > { %s6248_s11 = scalar_select %p138_p7, %s6112_s19, %s140_s9  }
  0x14   : > { %s6251_s12 = scalar_select %p60_p8, %s6120_s21, %s62_s6  }
  0x15   : > { %199 = sbr.rel (%p5026_p9) target bundleno = 190 (0xbe), region = 16 }
  0x1a   : > { %210 = sbr.rel (!%p6229_p3) target bundleno = 164 (0xa4), region = 24  ;;  %s212_s13 = sand.u32 (%p6229_p3), 1, %s6120_s21  }
  0x1b   : > { %s5029_s14 = sshll.u32 (%p6229_p3), %s6136_s25, 3  ;;  %s5027_s15 = sshll.u32 (%p6229_p3), %s212_s13, 11 }
  0x1c   : > { %s5321_s16 = sshll.u32 (%p6229_p3), %s6132_s24, 10  ;;  %s9093_s1 = sld [smem:[#allocation83_spill]] (%p6229_p3) }
  0x1d   : > { %s218_s17 = sadd.s32 (%p6229_p3), %s5321_s16, %s5029_s14  ;;  %s6267_s29 = scalar_lea.vmem (%p6229_p3), [#allocation3], %s5027_s15 }
  0x1e   : > { %s5031_s30 = sshll.u32 (%p6229_p3), %s218_s17, 2 }
  0x22   : > { %s6262_s6 = scalar_lea.vmem %s9093_s1, %s5031_s30 }
  0x23   : > { %v233_v0 = vld [vmem:[%s6262_s6] sm:$0xff]  ;;  %v235_v1 = vld [vmem:[%s6262_s6 + $0x8] sm:$0xff]  ;;  %v237_v2 = vld [vmem:[%s6262_s6 + $0x10] sm:$0xff] }
  0x24   : > { %234 = vst [vmem:[%s6267_s29] sm:$0xff] %v233_v0  ;;  %236 = vst [vmem:[%s6267_s29 + $0x8] sm:$0xff] %v235_v1  ;;  %v239_v3 = vld [vmem:[%s6262_s6 + $0x18] sm:$0xff]  ;;  %v241_v4 = vld [vmem:[%s6262_s6 + $0x40] sm:$0xff] }
  0x25   : > { %238 = vst [vmem:[%s6267_s29 + $0x10] sm:$0xff] %v237_v2  ;;  %v243_v5 = vld [vmem:[%s6262_s6 + $0x48] sm:$0xff]  ;;  %240 = vst [vmem:[%s6267_s29 + $0x18] sm:$0xff] %v239_v3  ;;  %v245_v6 = vld [vmem:[%s6262_s6 + $0x50] sm:$0xff] }
  0x26   : > { %242 = vst [vmem:[%s6267_s29 + $0x20] sm:$0xff] %v241_v4  ;;  %244 = vst [vmem:[%s6267_s29 + $0x28] sm:$0xff] %v243_v5  ;;  %v247_v7 = vld [vmem:[%s6262_s6 + $0x58] sm:$0xff]  ;;  %v249_v8 = vld [vmem:[%s6262_s6 + $0x80] sm:$0xff] }
  0x27   : > { %246 = vst [vmem:[%s6267_s29 + $0x30] sm:$0xff] %v245_v6  ;;  %248 = vst [vmem:[%s6267_s29 + $0x38] sm:$0xff] %v247_v7  ;;  %v251_v9 = vld [vmem:[%s6262_s6 + $0x88] sm:$0xff]  ;;  %v253_v10 = vld [vmem:[%s6262_s6 + $0x90] sm:$0xff] }
  0x28   : > { %250 = vst [vmem:[%s6267_s29 + $0x40] sm:$0xff] %v249_v8  ;;  %v255_v11 = vld [vmem:[%s6262_s6 + $0x98] sm:$0xff]  ;;  %252 = vst [vmem:[%s6267_s29 + $0x48] sm:$0xff] %v251_v9  ;;  %v257_v12 = vld [vmem:[%s6262_s6 + $0xc0] sm:$0xff] }
  0x29   : > { %254 = vst [vmem:[%s6267_s29 + $0x50] sm:$0xff] %v253_v10  ;;  %256 = vst [vmem:[%s6267_s29 + $0x58] sm:$0xff] %v255_v11  ;;  %v259_v13 = vld [vmem:[%s6262_s6 + $0xc8] sm:$0xff]  ;;  %v261_v14 = vld [vmem:[%s6262_s6 + $0xd0] sm:$0xff] }
  0x2a   : > { %258 = vst [vmem:[%s6267_s29 + $0x60] sm:$0xff] %v257_v12  ;;  %260 = vst [vmem:[%s6267_s29 + $0x68] sm:$0xff] %v259_v13  ;;  %v263_v15 = vld [vmem:[%s6262_s6 + $0xd8] sm:$0xff]  ;;  %v265_v16 = vld [vmem:[%s6262_s6 + $0x100] sm:$0xff] }
  0x2b   : > { %262 = vst [vmem:[%s6267_s29 + $0x70] sm:$0xff] %v261_v14  ;;  %v267_v17 = vld [vmem:[%s6262_s6 + $0x108] sm:$0xff]  ;;  %264 = vst [vmem:[%s6267_s29 + $0x78] sm:$0xff] %v263_v15  ;;  %v269_v18 = vld [vmem:[%s6262_s6 + $0x110] sm:$0xff] }
  0x2c   : > { %266 = vst [vmem:[%s6267_s29 + $0x80] sm:$0xff] %v265_v16  ;;  %268 = vst [vmem:[%s6267_s29 + $0x88] sm:$0xff] %v267_v17  ;;  %v271_v19 = vld [vmem:[%s6262_s6 + $0x118] sm:$0xff]  ;;  %v273_v20 = vld [vmem:[%s6262_s6 + $0x140] sm:$0xff] }
  0x2d   : > { %270 = vst [vmem:[%s6267_s29 + $0x90] sm:$0xff] %v269_v18  ;;  %272 = vst [vmem:[%s6267_s29 + $0x98] sm:$0xff] %v271_v19  ;;  %v275_v21 = vld [vmem:[%s6262_s6 + $0x148] sm:$0xff]  ;;  %v277_v22 = vld [vmem:[%s6262_s6 + $0x150] sm:$0xff] }
  0x2e   : > { %274 = vst [vmem:[%s6267_s29 + $0xa0] sm:$0xff] %v273_v20  ;;  %v279_v23 = vld [vmem:[%s6262_s6 + $0x158] sm:$0xff]  ;;  %276 = vst [vmem:[%s6267_s29 + $0xa8] sm:$0xff] %v275_v21  ;;  %v281_v24 = vld [vmem:[%s6262_s6 + $0x180] sm:$0xff] }
  0x2f   : > { %278 = vst [vmem:[%s6267_s29 + $0xb0] sm:$0xff] %v277_v22  ;;  %280 = vst [vmem:[%s6267_s29 + $0xb8] sm:$0xff] %v279_v23  ;;  %v283_v25 = vld [vmem:[%s6262_s6 + $0x188] sm:$0xff]  ;;  %v285_v26 = vld [vmem:[%s6262_s6 + $0x190] sm:$0xff] }
  0x30   : > { %282 = vst [vmem:[%s6267_s29 + $0xc0] sm:$0xff] %v281_v24  ;;  %284 = vst [vmem:[%s6267_s29 + $0xc8] sm:$0xff] %v283_v25  ;;  %v287_v27 = vld [vmem:[%s6262_s6 + $0x198] sm:$0xff]  ;;  %v289_v28 = vld [vmem:[%s6262_s6 + $0x1c0] sm:$0xff] }
  0x31   : > { %286 = vst [vmem:[%s6267_s29 + $0xd0] sm:$0xff] %v285_v26  ;;  %v291_v29 = vld [vmem:[%s6262_s6 + $0x1c8] sm:$0xff]  ;;  %288 = vst [vmem:[%s6267_s29 + $0xd8] sm:$0xff] %v287_v27  ;;  %v293_v30 = vld [vmem:[%s6262_s6 + $0x1d0] sm:$0xff] }
  0x32   : > { %290 = vst [vmem:[%s6267_s29 + $0xe0] sm:$0xff] %v289_v28  ;;  %292 = vst [vmem:[%s6267_s29 + $0xe8] sm:$0xff] %v291_v29  ;;  %v295_v31 = vld [vmem:[%s6262_s6 + $0x1d8] sm:$0xff]  ;;  %v297_v32 = vld [vmem:[%s6262_s6 + $0x200] sm:$0xff] }
  0x33   : > { %294 = vst [vmem:[%s6267_s29 + $0xf0] sm:$0xff] %v293_v30  ;;  %296 = vst [vmem:[%s6267_s29 + $0xf8] sm:$0xff] %v295_v31  ;;  %v299_v33 = vld [vmem:[%s6262_s6 + $0x208] sm:$0xff]  ;;  %v301_v34 = vld [vmem:[%s6262_s6 + $0x210] sm:$0xff] }
  0x34   : > { %298 = vst [vmem:[%s6267_s29 + $0x100] sm:$0xff] %v297_v32  ;;  %v303_v35 = vld [vmem:[%s6262_s6 + $0x218] sm:$0xff]  ;;  %300 = vst [vmem:[%s6267_s29 + $0x108] sm:$0xff] %v299_v33  ;;  %v305_v36 = vld [vmem:[%s6262_s6 + $0x240] sm:$0xff] }
  0x35   : > { %302 = vst [vmem:[%s6267_s29 + $0x110] sm:$0xff] %v301_v34  ;;  %304 = vst [vmem:[%s6267_s29 + $0x118] sm:$0xff] %v303_v35  ;;  %v307_v37 = vld [vmem:[%s6262_s6 + $0x248] sm:$0xff]  ;;  %v309_v38 = vld [vmem:[%s6262_s6 + $0x250] sm:$0xff] }
  0x36   : > { %306 = vst [vmem:[%s6267_s29 + $0x120] sm:$0xff] %v305_v36  ;;  %308 = vst [vmem:[%s6267_s29 + $0x128] sm:$0xff] %v307_v37  ;;  %v311_v39 = vld [vmem:[%s6262_s6 + $0x258] sm:$0xff]  ;;  %v313_v40 = vld [vmem:[%s6262_s6 + $0x280] sm:$0xff] }
  0x37   : > { %310 = vst [vmem:[%s6267_s29 + $0x130] sm:$0xff] %v309_v38  ;;  %v315_v41 = vld [vmem:[%s6262_s6 + $0x288] sm:$0xff]  ;;  %312 = vst [vmem:[%s6267_s29 + $0x138] sm:$0xff] %v311_v39  ;;  %v317_v42 = vld [vmem:[%s6262_s6 + $0x290] sm:$0xff] }
  0x38   : > { %314 = vst [vmem:[%s6267_s29 + $0x140] sm:$0xff] %v313_v40  ;;  %316 = vst [vmem:[%s6267_s29 + $0x148] sm:$0xff] %v315_v41  ;;  %v319_v43 = vld [vmem:[%s6262_s6 + $0x298] sm:$0xff]  ;;  %v321_v44 = vld [vmem:[%s6262_s6 + $0x2c0] sm:$0xff] }
  0x39   : > { %318 = vst [vmem:[%s6267_s29 + $0x150] sm:$0xff] %v317_v42  ;;  %320 = vst [vmem:[%s6267_s29 + $0x158] sm:$0xff] %v319_v43  ;;  %v323_v45 = vld [vmem:[%s6262_s6 + $0x2c8] sm:$0xff]  ;;  %v325_v46 = vld [vmem:[%s6262_s6 + $0x2d0] sm:$0xff] }
  0x3a   : > { %322 = vst [vmem:[%s6267_s29 + $0x160] sm:$0xff] %v321_v44  ;;  %v327_v47 = vld [vmem:[%s6262_s6 + $0x2d8] sm:$0xff]  ;;  %324 = vst [vmem:[%s6267_s29 + $0x168] sm:$0xff] %v323_v45  ;;  %v329_v48 = vld [vmem:[%s6262_s6 + $0x300] sm:$0xff] }
  0x3b   : > { %326 = vst [vmem:[%s6267_s29 + $0x170] sm:$0xff] %v325_v46  ;;  %328 = vst [vmem:[%s6267_s29 + $0x178] sm:$0xff] %v327_v47  ;;  %v331_v49 = vld [vmem:[%s6262_s6 + $0x308] sm:$0xff]  ;;  %v333_v50 = vld [vmem:[%s6262_s6 + $0x310] sm:$0xff] }
  0x3c   : > { %330 = vst [vmem:[%s6267_s29 + $0x180] sm:$0xff] %v329_v48  ;;  %332 = vst [vmem:[%s6267_s29 + $0x188] sm:$0xff] %v331_v49  ;;  %v335_v51 = vld [vmem:[%s6262_s6 + $0x318] sm:$0xff]  ;;  %v337_v52 = vld [vmem:[%s6262_s6 + $0x340] sm:$0xff] }
  0x3d   : > { %334 = vst [vmem:[%s6267_s29 + $0x190] sm:$0xff] %v333_v50  ;;  %v339_v53 = vld [vmem:[%s6262_s6 + $0x348] sm:$0xff]  ;;  %336 = vst [vmem:[%s6267_s29 + $0x198] sm:$0xff] %v335_v51  ;;  %v341_v54 = vld [vmem:[%s6262_s6 + $0x350] sm:$0xff] }
  0x3e   : > { %338 = vst [vmem:[%s6267_s29 + $0x1a0] sm:$0xff] %v337_v52  ;;  %340 = vst [vmem:[%s6267_s29 + $0x1a8] sm:$0xff] %v339_v53  ;;  %v343_v55 = vld [vmem:[%s6262_s6 + $0x358] sm:$0xff]  ;;  %v345_v56 = vld [vmem:[%s6262_s6 + $0x380] sm:$0xff] }
  0x3f   : > { %342 = vst [vmem:[%s6267_s29 + $0x1b0] sm:$0xff] %v341_v54  ;;  %344 = vst [vmem:[%s6267_s29 + $0x1b8] sm:$0xff] %v343_v55  ;;  %v347_v57 = vld [vmem:[%s6262_s6 + $0x388] sm:$0xff]  ;;  %v349_v58 = vld [vmem:[%s6262_s6 + $0x390] sm:$0xff] }
  0x40   : > { %346 = vst [vmem:[%s6267_s29 + $0x1c0] sm:$0xff] %v345_v56  ;;  %v351_v59 = vld [vmem:[%s6262_s6 + $0x398] sm:$0xff]  ;;  %348 = vst [vmem:[%s6267_s29 + $0x1c8] sm:$0xff] %v347_v57  ;;  %v353_v60 = vld [vmem:[%s6262_s6 + $0x3c0] sm:$0xff] }
  0x41   : > { %350 = vst [vmem:[%s6267_s29 + $0x1d0] sm:$0xff] %v349_v58  ;;  %352 = vst [vmem:[%s6267_s29 + $0x1d8] sm:$0xff] %v351_v59  ;;  %v355_v61 = vld [vmem:[%s6262_s6 + $0x3c8] sm:$0xff]  ;;  %v357_v62 = vld [vmem:[%s6262_s6 + $0x3d0] sm:$0xff] }
  0x42   : > { %354 = vst [vmem:[%s6267_s29 + $0x1e0] sm:$0xff] %v353_v60  ;;  %356 = vst [vmem:[%s6267_s29 + $0x1e8] sm:$0xff] %v355_v61  ;;  %v359_v63 = vld [vmem:[%s6262_s6 + $0x3d8] sm:$0xff]  ;;  %v361_v0 = vld [vmem:[%s6262_s6 + $0x400] sm:$0xff] }
  0x43   : > { %358 = vst [vmem:[%s6267_s29 + $0x1f0] sm:$0xff] %v357_v62  ;;  %v363_v1 = vld [vmem:[%s6262_s6 + $0x408] sm:$0xff]  ;;  %360 = vst [vmem:[%s6267_s29 + $0x1f8] sm:$0xff] %v359_v63  ;;  %v365_v2 = vld [vmem:[%s6262_s6 + $0x410] sm:$0xff] }
  0x44   : > { %362 = vst [vmem:[%s6267_s29 + $0x200] sm:$0xff] %v361_v0  ;;  %364 = vst [vmem:[%s6267_s29 + $0x208] sm:$0xff] %v363_v1  ;;  %v367_v3 = vld [vmem:[%s6262_s6 + $0x418] sm:$0xff]  ;;  %v369_v4 = vld [vmem:[%s6262_s6 + $0x440] sm:$0xff] }
  0x45   : > { %366 = vst [vmem:[%s6267_s29 + $0x210] sm:$0xff] %v365_v2  ;;  %368 = vst [vmem:[%s6267_s29 + $0x218] sm:$0xff] %v367_v3  ;;  %v371_v5 = vld [vmem:[%s6262_s6 + $0x448] sm:$0xff]  ;;  %v373_v6 = vld [vmem:[%s6262_s6 + $0x450] sm:$0xff] }
  0x46   : > { %370 = vst [vmem:[%s6267_s29 + $0x220] sm:$0xff] %v369_v4  ;;  %v375_v7 = vld [vmem:[%s6262_s6 + $0x458] sm:$0xff]  ;;  %372 = vst [vmem:[%s6267_s29 + $0x228] sm:$0xff] %v371_v5  ;;  %v377_v8 = vld [vmem:[%s6262_s6 + $0x480] sm:$0xff] }
  0x47   : > { %374 = vst [vmem:[%s6267_s29 + $0x230] sm:$0xff] %v373_v6  ;;  %376 = vst [vmem:[%s6267_s29 + $0x238] sm:$0xff] %v375_v7  ;;  %v379_v9 = vld [vmem:[%s6262_s6 + $0x488] sm:$0xff]  ;;  %v381_v10 = vld [vmem:[%s6262_s6 + $0x490] sm:$0xff] }
  0x48   : > { %378 = vst [vmem:[%s6267_s29 + $0x240] sm:$0xff] %v377_v8  ;;  %380 = vst [vmem:[%s6267_s29 + $0x248] sm:$0xff] %v379_v9  ;;  %v383_v11 = vld [vmem:[%s6262_s6 + $0x498] sm:$0xff]  ;;  %v385_v12 = vld [vmem:[%s6262_s6 + $0x4c0] sm:$0xff] }
  0x49   : > { %382 = vst [vmem:[%s6267_s29 + $0x250] sm:$0xff] %v381_v10  ;;  %v387_v13 = vld [vmem:[%s6262_s6 + $0x4c8] sm:$0xff]  ;;  %384 = vst [vmem:[%s6267_s29 + $0x258] sm:$0xff] %v383_v11  ;;  %v389_v14 = vld [vmem:[%s6262_s6 + $0x4d0] sm:$0xff] }
  0x4a   : > { %386 = vst [vmem:[%s6267_s29 + $0x260] sm:$0xff] %v385_v12  ;;  %388 = vst [vmem:[%s6267_s29 + $0x268] sm:$0xff] %v387_v13  ;;  %v391_v15 = vld [vmem:[%s6262_s6 + $0x4d8] sm:$0xff]  ;;  %v393_v16 = vld [vmem:[%s6262_s6 + $0x500] sm:$0xff] }
  0x4b   : > { %390 = vst [vmem:[%s6267_s29 + $0x270] sm:$0xff] %v389_v14  ;;  %392 = vst [vmem:[%s6267_s29 + $0x278] sm:$0xff] %v391_v15  ;;  %v395_v17 = vld [vmem:[%s6262_s6 + $0x508] sm:$0xff]  ;;  %v397_v18 = vld [vmem:[%s6262_s6 + $0x510] sm:$0xff] }
  0x4c   : > { %394 = vst [vmem:[%s6267_s29 + $0x280] sm:$0xff] %v393_v16  ;;  %v399_v19 = vld [vmem:[%s6262_s6 + $0x518] sm:$0xff]  ;;  %396 = vst [vmem:[%s6267_s29 + $0x288] sm:$0xff] %v395_v17  ;;  %v401_v20 = vld [vmem:[%s6262_s6 + $0x540] sm:$0xff] }
  0x4d   : > { %398 = vst [vmem:[%s6267_s29 + $0x290] sm:$0xff] %v397_v18  ;;  %400 = vst [vmem:[%s6267_s29 + $0x298] sm:$0xff] %v399_v19  ;;  %v403_v21 = vld [vmem:[%s6262_s6 + $0x548] sm:$0xff]  ;;  %v405_v22 = vld [vmem:[%s6262_s6 + $0x550] sm:$0xff] }
  0x4e   : > { %402 = vst [vmem:[%s6267_s29 + $0x2a0] sm:$0xff] %v401_v20  ;;  %404 = vst [vmem:[%s6267_s29 + $0x2a8] sm:$0xff] %v403_v21  ;;  %v407_v23 = vld [vmem:[%s6262_s6 + $0x558] sm:$0xff]  ;;  %v409_v24 = vld [vmem:[%s6262_s6 + $0x580] sm:$0xff] }
  0x4f   : > { %406 = vst [vmem:[%s6267_s29 + $0x2b0] sm:$0xff] %v405_v22  ;;  %v411_v25 = vld [vmem:[%s6262_s6 + $0x588] sm:$0xff]  ;;  %408 = vst [vmem:[%s6267_s29 + $0x2b8] sm:$0xff] %v407_v23  ;;  %v413_v26 = vld [vmem:[%s6262_s6 + $0x590] sm:$0xff] }
  0x50   : > { %410 = vst [vmem:[%s6267_s29 + $0x2c0] sm:$0xff] %v409_v24  ;;  %412 = vst [vmem:[%s6267_s29 + $0x2c8] sm:$0xff] %v411_v25  ;;  %v415_v27 = vld [vmem:[%s6262_s6 + $0x598] sm:$0xff]  ;;  %v417_v28 = vld [vmem:[%s6262_s6 + $0x5c0] sm:$0xff] }
  0x51   : > { %414 = vst [vmem:[%s6267_s29 + $0x2d0] sm:$0xff] %v413_v26  ;;  %416 = vst [vmem:[%s6267_s29 + $0x2d8] sm:$0xff] %v415_v27  ;;  %v419_v29 = vld [vmem:[%s6262_s6 + $0x5c8] sm:$0xff]  ;;  %v421_v30 = vld [vmem:[%s6262_s6 + $0x5d0] sm:$0xff] }
  0x52   : > { %418 = vst [vmem:[%s6267_s29 + $0x2e0] sm:$0xff] %v417_v28  ;;  %v423_v31 = vld [vmem:[%s6262_s6 + $0x5d8] sm:$0xff]  ;;  %420 = vst [vmem:[%s6267_s29 + $0x2e8] sm:$0xff] %v419_v29  ;;  %v425_v32 = vld [vmem:[%s6262_s6 + $0x600] sm:$0xff] }
  0x53   : > { %422 = vst [vmem:[%s6267_s29 + $0x2f0] sm:$0xff] %v421_v30  ;;  %424 = vst [vmem:[%s6267_s29 + $0x2f8] sm:$0xff] %v423_v31  ;;  %v427_v33 = vld [vmem:[%s6262_s6 + $0x608] sm:$0xff]  ;;  %v429_v34 = vld [vmem:[%s6262_s6 + $0x610] sm:$0xff] }
  0x54   : > { %426 = vst [vmem:[%s6267_s29 + $0x300] sm:$0xff] %v425_v32  ;;  %428 = vst [vmem:[%s6267_s29 + $0x308] sm:$0xff] %v427_v33  ;;  %v431_v35 = vld [vmem:[%s6262_s6 + $0x618] sm:$0xff]  ;;  %v433_v36 = vld [vmem:[%s6262_s6 + $0x640] sm:$0xff] }
  0x55   : > { %430 = vst [vmem:[%s6267_s29 + $0x310] sm:$0xff] %v429_v34  ;;  %v435_v37 = vld [vmem:[%s6262_s6 + $0x648] sm:$0xff]  ;;  %432 = vst [vmem:[%s6267_s29 + $0x318] sm:$0xff] %v431_v35  ;;  %v437_v38 = vld [vmem:[%s6262_s6 + $0x650] sm:$0xff] }
  0x56   : > { %434 = vst [vmem:[%s6267_s29 + $0x320] sm:$0xff] %v433_v36  ;;  %436 = vst [vmem:[%s6267_s29 + $0x328] sm:$0xff] %v435_v37  ;;  %v439_v39 = vld [vmem:[%s6262_s6 + $0x658] sm:$0xff]  ;;  %v441_v40 = vld [vmem:[%s6262_s6 + $0x680] sm:$0xff] }
  0x57   : > { %438 = vst [vmem:[%s6267_s29 + $0x330] sm:$0xff] %v437_v38  ;;  %440 = vst [vmem:[%s6267_s29 + $0x338] sm:$0xff] %v439_v39  ;;  %v443_v41 = vld [vmem:[%s6262_s6 + $0x688] sm:$0xff]  ;;  %v445_v42 = vld [vmem:[%s6262_s6 + $0x690] sm:$0xff] }
  0x58   : > { %442 = vst [vmem:[%s6267_s29 + $0x340] sm:$0xff] %v441_v40  ;;  %v447_v43 = vld [vmem:[%s6262_s6 + $0x698] sm:$0xff]  ;;  %444 = vst [vmem:[%s6267_s29 + $0x348] sm:$0xff] %v443_v41  ;;  %v449_v44 = vld [vmem:[%s6262_s6 + $0x6c0] sm:$0xff] }
  0x59   : > { %446 = vst [vmem:[%s6267_s29 + $0x350] sm:$0xff] %v445_v42  ;;  %448 = vst [vmem:[%s6267_s29 + $0x358] sm:$0xff] %v447_v43  ;;  %v451_v45 = vld [vmem:[%s6262_s6 + $0x6c8] sm:$0xff]  ;;  %v453_v46 = vld [vmem:[%s6262_s6 + $0x6d0] sm:$0xff] }
  0x5a   : > { %450 = vst [vmem:[%s6267_s29 + $0x360] sm:$0xff] %v449_v44  ;;  %452 = vst [vmem:[%s6267_s29 + $0x368] sm:$0xff] %v451_v45  ;;  %v455_v47 = vld [vmem:[%s6262_s6 + $0x6d8] sm:$0xff]  ;;  %v457_v48 = vld [vmem:[%s6262_s6 + $0x700] sm:$0xff] }
  0x5b   : > { %454 = vst [vmem:[%s6267_s29 + $0x370] sm:$0xff] %v453_v46  ;;  %v459_v49 = vld [vmem:[%s6262_s6 + $0x708] sm:$0xff]  ;;  %456 = vst [vmem:[%s6267_s29 + $0x378] sm:$0xff] %v455_v47  ;;  %v461_v50 = vld [vmem:[%s6262_s6 + $0x710] sm:$0xff] }
  0x5c   : > { %458 = vst [vmem:[%s6267_s29 + $0x380] sm:$0xff] %v457_v48  ;;  %460 = vst [vmem:[%s6267_s29 + $0x388] sm:$0xff] %v459_v49  ;;  %v463_v51 = vld [vmem:[%s6262_s6 + $0x718] sm:$0xff]  ;;  %v465_v52 = vld [vmem:[%s6262_s6 + $0x740] sm:$0xff] }
  0x5d   : > { %462 = vst [vmem:[%s6267_s29 + $0x390] sm:$0xff] %v461_v50  ;;  %464 = vst [vmem:[%s6267_s29 + $0x398] sm:$0xff] %v463_v51  ;;  %v467_v53 = vld [vmem:[%s6262_s6 + $0x748] sm:$0xff]  ;;  %v469_v54 = vld [vmem:[%s6262_s6 + $0x750] sm:$0xff] }
  0x5e   : > { %466 = vst [vmem:[%s6267_s29 + $0x3a0] sm:$0xff] %v465_v52  ;;  %v471_v55 = vld [vmem:[%s6262_s6 + $0x758] sm:$0xff]  ;;  %468 = vst [vmem:[%s6267_s29 + $0x3a8] sm:$0xff] %v467_v53  ;;  %v473_v56 = vld [vmem:[%s6262_s6 + $0x780] sm:$0xff] }
  0x5f   : > { %470 = vst [vmem:[%s6267_s29 + $0x3b0] sm:$0xff] %v469_v54  ;;  %472 = vst [vmem:[%s6267_s29 + $0x3b8] sm:$0xff] %v471_v55  ;;  %v475_v57 = vld [vmem:[%s6262_s6 + $0x788] sm:$0xff]  ;;  %v477_v58 = vld [vmem:[%s6262_s6 + $0x790] sm:$0xff] }
  0x60   : > { %474 = vst [vmem:[%s6267_s29 + $0x3c0] sm:$0xff] %v473_v56  ;;  %476 = vst [vmem:[%s6267_s29 + $0x3c8] sm:$0xff] %v475_v57  ;;  %v479_v59 = vld [vmem:[%s6262_s6 + $0x798] sm:$0xff]  ;;  %v481_v60 = vld [vmem:[%s6262_s6 + $0x7c0] sm:$0xff] }
  0x61   : > { %478 = vst [vmem:[%s6267_s29 + $0x3d0] sm:$0xff] %v477_v58  ;;  %v483_v61 = vld [vmem:[%s6262_s6 + $0x7c8] sm:$0xff]  ;;  %480 = vst [vmem:[%s6267_s29 + $0x3d8] sm:$0xff] %v479_v59  ;;  %v485_v62 = vld [vmem:[%s6262_s6 + $0x7d0] sm:$0xff] }
  0x62   : > { %482 = vst [vmem:[%s6267_s29 + $0x3e0] sm:$0xff] %v481_v60  ;;  %484 = vst [vmem:[%s6267_s29 + $0x3e8] sm:$0xff] %v483_v61  ;;  %v487_v63 = vld [vmem:[%s6262_s6 + $0x7d8] sm:$0xff]  ;;  %v489_v0 = vld [vmem:[%s6262_s6 + $0x800] sm:$0xff] }
  0x63   : > { %486 = vst [vmem:[%s6267_s29 + $0x3f0] sm:$0xff] %v485_v62  ;;  %488 = vst [vmem:[%s6267_s29 + $0x3f8] sm:$0xff] %v487_v63  ;;  %v491_v1 = vld [vmem:[%s6262_s6 + $0x808] sm:$0xff]  ;;  %v493_v2 = vld [vmem:[%s6262_s6 + $0x810] sm:$0xff] }
  0x64   : > { %490 = vst [vmem:[%s6267_s29 + $0x400] sm:$0xff] %v489_v0  ;;  %v495_v3 = vld [vmem:[%s6262_s6 + $0x818] sm:$0xff]  ;;  %492 = vst [vmem:[%s6267_s29 + $0x408] sm:$0xff] %v491_v1  ;;  %v497_v4 = vld [vmem:[%s6262_s6 + $0x840] sm:$0xff] }
  0x65   : > { %494 = vst [vmem:[%s6267_s29 + $0x410] sm:$0xff] %v493_v2  ;;  %496 = vst [vmem:[%s6267_s29 + $0x418] sm:$0xff] %v495_v3  ;;  %v499_v5 = vld [vmem:[%s6262_s6 + $0x848] sm:$0xff]  ;;  %v501_v6 = vld [vmem:[%s6262_s6 + $0x850] sm:$0xff] }
  0x66   : > { %498 = vst [vmem:[%s6267_s29 + $0x420] sm:$0xff] %v497_v4  ;;  %500 = vst [vmem:[%s6267_s29 + $0x428] sm:$0xff] %v499_v5  ;;  %v503_v7 = vld [vmem:[%s6262_s6 + $0x858] sm:$0xff]  ;;  %v505_v8 = vld [vmem:[%s6262_s6 + $0x880] sm:$0xff] }
  0x67   : > { %502 = vst [vmem:[%s6267_s29 + $0x430] sm:$0xff] %v501_v6  ;;  %v507_v9 = vld [vmem:[%s6262_s6 + $0x888] sm:$0xff]  ;;  %504 = vst [vmem:[%s6267_s29 + $0x438] sm:$0xff] %v503_v7  ;;  %v509_v10 = vld [vmem:[%s6262_s6 + $0x890] sm:$0xff] }
  0x68   : > { %506 = vst [vmem:[%s6267_s29 + $0x440] sm:$0xff] %v505_v8  ;;  %508 = vst [vmem:[%s6267_s29 + $0x448] sm:$0xff] %v507_v9  ;;  %v511_v11 = vld [vmem:[%s6262_s6 + $0x898] sm:$0xff]  ;;  %v513_v12 = vld [vmem:[%s6262_s6 + $0x8c0] sm:$0xff] }
  0x69   : > { %510 = vst [vmem:[%s6267_s29 + $0x450] sm:$0xff] %v509_v10  ;;  %512 = vst [vmem:[%s6267_s29 + $0x458] sm:$0xff] %v511_v11  ;;  %v515_v13 = vld [vmem:[%s6262_s6 + $0x8c8] sm:$0xff]  ;;  %v517_v14 = vld [vmem:[%s6262_s6 + $0x8d0] sm:$0xff] }
  0x6a   : > { %514 = vst [vmem:[%s6267_s29 + $0x460] sm:$0xff] %v513_v12  ;;  %v519_v15 = vld [vmem:[%s6262_s6 + $0x8d8] sm:$0xff]  ;;  %516 = vst [vmem:[%s6267_s29 + $0x468] sm:$0xff] %v515_v13  ;;  %v521_v16 = vld [vmem:[%s6262_s6 + $0x900] sm:$0xff] }
  0x6b   : > { %518 = vst [vmem:[%s6267_s29 + $0x470] sm:$0xff] %v517_v14  ;;  %520 = vst [vmem:[%s6267_s29 + $0x478] sm:$0xff] %v519_v15  ;;  %v523_v17 = vld [vmem:[%s6262_s6 + $0x908] sm:$0xff]  ;;  %v525_v18 = vld [vmem:[%s6262_s6 + $0x910] sm:$0xff] }
  0x6c   : > { %522 = vst [vmem:[%s6267_s29 + $0x480] sm:$0xff] %v521_v16  ;;  %524 = vst [vmem:[%s6267_s29 + $0x488] sm:$0xff] %v523_v17  ;;  %v527_v19 = vld [vmem:[%s6262_s6 + $0x918] sm:$0xff]  ;;  %v529_v20 = vld [vmem:[%s6262_s6 + $0x940] sm:$0xff] }
  0x6d   : > { %526 = vst [vmem:[%s6267_s29 + $0x490] sm:$0xff] %v525_v18  ;;  %v531_v21 = vld [vmem:[%s6262_s6 + $0x948] sm:$0xff]  ;;  %528 = vst [vmem:[%s6267_s29 + $0x498] sm:$0xff] %v527_v19  ;;  %v533_v22 = vld [vmem:[%s6262_s6 + $0x950] sm:$0xff] }
  0x6e   : > { %530 = vst [vmem:[%s6267_s29 + $0x4a0] sm:$0xff] %v529_v20  ;;  %532 = vst [vmem:[%s6267_s29 + $0x4a8] sm:$0xff] %v531_v21  ;;  %v535_v23 = vld [vmem:[%s6262_s6 + $0x958] sm:$0xff]  ;;  %v537_v24 = vld [vmem:[%s6262_s6 + $0x980] sm:$0xff] }
  0x6f   : > { %534 = vst [vmem:[%s6267_s29 + $0x4b0] sm:$0xff] %v533_v22  ;;  %536 = vst [vmem:[%s6267_s29 + $0x4b8] sm:$0xff] %v535_v23  ;;  %v539_v25 = vld [vmem:[%s6262_s6 + $0x988] sm:$0xff]  ;;  %v541_v26 = vld [vmem:[%s6262_s6 + $0x990] sm:$0xff] }
  0x70   : > { %538 = vst [vmem:[%s6267_s29 + $0x4c0] sm:$0xff] %v537_v24  ;;  %v543_v27 = vld [vmem:[%s6262_s6 + $0x998] sm:$0xff]  ;;  %540 = vst [vmem:[%s6267_s29 + $0x4c8] sm:$0xff] %v539_v25  ;;  %v545_v28 = vld [vmem:[%s6262_s6 + $0x9c0] sm:$0xff] }
  0x71   : > { %542 = vst [vmem:[%s6267_s29 + $0x4d0] sm:$0xff] %v541_v26  ;;  %544 = vst [vmem:[%s6267_s29 + $0x4d8] sm:$0xff] %v543_v27  ;;  %v547_v29 = vld [vmem:[%s6262_s6 + $0x9c8] sm:$0xff]  ;;  %v549_v30 = vld [vmem:[%s6262_s6 + $0x9d0] sm:$0xff] }
  0x72   : > { %546 = vst [vmem:[%s6267_s29 + $0x4e0] sm:$0xff] %v545_v28  ;;  %548 = vst [vmem:[%s6267_s29 + $0x4e8] sm:$0xff] %v547_v29  ;;  %v551_v31 = vld [vmem:[%s6262_s6 + $0x9d8] sm:$0xff]  ;;  %v553_v32 = vld [vmem:[%s6262_s6 + $0xa00] sm:$0xff] }
  0x73   : > { %550 = vst [vmem:[%s6267_s29 + $0x4f0] sm:$0xff] %v549_v30  ;;  %v555_v33 = vld [vmem:[%s6262_s6 + $0xa08] sm:$0xff]  ;;  %552 = vst [vmem:[%s6267_s29 + $0x4f8] sm:$0xff] %v551_v31  ;;  %v557_v34 = vld [vmem:[%s6262_s6 + $0xa10] sm:$0xff] }
  0x74   : > { %554 = vst [vmem:[%s6267_s29 + $0x500] sm:$0xff] %v553_v32  ;;  %556 = vst [vmem:[%s6267_s29 + $0x508] sm:$0xff] %v555_v33  ;;  %v559_v35 = vld [vmem:[%s6262_s6 + $0xa18] sm:$0xff]  ;;  %v561_v36 = vld [vmem:[%s6262_s6 + $0xa40] sm:$0xff] }
  0x75   : > { %558 = vst [vmem:[%s6267_s29 + $0x510] sm:$0xff] %v557_v34  ;;  %560 = vst [vmem:[%s6267_s29 + $0x518] sm:$0xff] %v559_v35  ;;  %v563_v37 = vld [vmem:[%s6262_s6 + $0xa48] sm:$0xff]  ;;  %v565_v38 = vld [vmem:[%s6262_s6 + $0xa50] sm:$0xff] }
  0x76   : > { %562 = vst [vmem:[%s6267_s29 + $0x520] sm:$0xff] %v561_v36  ;;  %v567_v39 = vld [vmem:[%s6262_s6 + $0xa58] sm:$0xff]  ;;  %564 = vst [vmem:[%s6267_s29 + $0x528] sm:$0xff] %v563_v37  ;;  %v569_v40 = vld [vmem:[%s6262_s6 + $0xa80] sm:$0xff] }
  0x77   : > { %566 = vst [vmem:[%s6267_s29 + $0x530] sm:$0xff] %v565_v38  ;;  %568 = vst [vmem:[%s6267_s29 + $0x538] sm:$0xff] %v567_v39  ;;  %v571_v41 = vld [vmem:[%s6262_s6 + $0xa88] sm:$0xff]  ;;  %v573_v42 = vld [vmem:[%s6262_s6 + $0xa90] sm:$0xff] }
  0x78   : > { %570 = vst [vmem:[%s6267_s29 + $0x540] sm:$0xff] %v569_v40  ;;  %572 = vst [vmem:[%s6267_s29 + $0x548] sm:$0xff] %v571_v41  ;;  %v575_v43 = vld [vmem:[%s6262_s6 + $0xa98] sm:$0xff]  ;;  %v577_v44 = vld [vmem:[%s6262_s6 + $0xac0] sm:$0xff] }
  0x79   : > { %574 = vst [vmem:[%s6267_s29 + $0x550] sm:$0xff] %v573_v42  ;;  %v579_v45 = vld [vmem:[%s6262_s6 + $0xac8] sm:$0xff]  ;;  %576 = vst [vmem:[%s6267_s29 + $0x558] sm:$0xff] %v575_v43  ;;  %v581_v46 = vld [vmem:[%s6262_s6 + $0xad0] sm:$0xff] }
  0x7a   : > { %578 = vst [vmem:[%s6267_s29 + $0x560] sm:$0xff] %v577_v44  ;;  %580 = vst [vmem:[%s6267_s29 + $0x568] sm:$0xff] %v579_v45  ;;  %v583_v47 = vld [vmem:[%s6262_s6 + $0xad8] sm:$0xff]  ;;  %v585_v48 = vld [vmem:[%s6262_s6 + $0xb00] sm:$0xff] }
  0x7b   : > { %582 = vst [vmem:[%s6267_s29 + $0x570] sm:$0xff] %v581_v46  ;;  %584 = vst [vmem:[%s6267_s29 + $0x578] sm:$0xff] %v583_v47  ;;  %v587_v49 = vld [vmem:[%s6262_s6 + $0xb08] sm:$0xff]  ;;  %v589_v50 = vld [vmem:[%s6262_s6 + $0xb10] sm:$0xff] }
  0x7c   : > { %586 = vst [vmem:[%s6267_s29 + $0x580] sm:$0xff] %v585_v48  ;;  %v591_v51 = vld [vmem:[%s6262_s6 + $0xb18] sm:$0xff]  ;;  %588 = vst [vmem:[%s6267_s29 + $0x588] sm:$0xff] %v587_v49  ;;  %v593_v52 = vld [vmem:[%s6262_s6 + $0xb40] sm:$0xff] }
  0x7d   : > { %590 = vst [vmem:[%s6267_s29 + $0x590] sm:$0xff] %v589_v50  ;;  %592 = vst [vmem:[%s6267_s29 + $0x598] sm:$0xff] %v591_v51  ;;  %v595_v53 = vld [vmem:[%s6262_s6 + $0xb48] sm:$0xff]  ;;  %v597_v54 = vld [vmem:[%s6262_s6 + $0xb50] sm:$0xff] }
  0x7e   : > { %594 = vst [vmem:[%s6267_s29 + $0x5a0] sm:$0xff] %v593_v52  ;;  %596 = vst [vmem:[%s6267_s29 + $0x5a8] sm:$0xff] %v595_v53  ;;  %v599_v55 = vld [vmem:[%s6262_s6 + $0xb58] sm:$0xff]  ;;  %v601_v56 = vld [vmem:[%s6262_s6 + $0xb80] sm:$0xff] }
  0x7f   : > { %598 = vst [vmem:[%s6267_s29 + $0x5b0] sm:$0xff] %v597_v54  ;;  %v603_v57 = vld [vmem:[%s6262_s6 + $0xb88] sm:$0xff]  ;;  %600 = vst [vmem:[%s6267_s29 + $0x5b8] sm:$0xff] %v599_v55  ;;  %v605_v58 = vld [vmem:[%s6262_s6 + $0xb90] sm:$0xff] }
  0x80   : > { %602 = vst [vmem:[%s6267_s29 + $0x5c0] sm:$0xff] %v601_v56  ;;  %604 = vst [vmem:[%s6267_s29 + $0x5c8] sm:$0xff] %v603_v57  ;;  %v607_v59 = vld [vmem:[%s6262_s6 + $0xb98] sm:$0xff]  ;;  %v609_v60 = vld [vmem:[%s6262_s6 + $0xbc0] sm:$0xff] }
  0x81   : > { %606 = vst [vmem:[%s6267_s29 + $0x5d0] sm:$0xff] %v605_v58  ;;  %608 = vst [vmem:[%s6267_s29 + $0x5d8] sm:$0xff] %v607_v59  ;;  %v611_v61 = vld [vmem:[%s6262_s6 + $0xbc8] sm:$0xff]  ;;  %v613_v62 = vld [vmem:[%s6262_s6 + $0xbd0] sm:$0xff] }
  0x82   : > { %610 = vst [vmem:[%s6267_s29 + $0x5e0] sm:$0xff] %v609_v60  ;;  %v615_v63 = vld [vmem:[%s6262_s6 + $0xbd8] sm:$0xff]  ;;  %612 = vst [vmem:[%s6267_s29 + $0x5e8] sm:$0xff] %v611_v61  ;;  %v617_v0 = vld [vmem:[%s6262_s6 + $0xc00] sm:$0xff] }
  0x83   : > { %614 = vst [vmem:[%s6267_s29 + $0x5f0] sm:$0xff] %v613_v62  ;;  %616 = vst [vmem:[%s6267_s29 + $0x5f8] sm:$0xff] %v615_v63  ;;  %v619_v1 = vld [vmem:[%s6262_s6 + $0xc08] sm:$0xff]  ;;  %v621_v2 = vld [vmem:[%s6262_s6 + $0xc10] sm:$0xff] }
  0x84   : > { %618 = vst [vmem:[%s6267_s29 + $0x600] sm:$0xff] %v617_v0  ;;  %620 = vst [vmem:[%s6267_s29 + $0x608] sm:$0xff] %v619_v1  ;;  %v623_v3 = vld [vmem:[%s6262_s6 + $0xc18] sm:$0xff]  ;;  %v625_v4 = vld [vmem:[%s6262_s6 + $0xc40] sm:$0xff] }
  0x85   : > { %622 = vst [vmem:[%s6267_s29 + $0x610] sm:$0xff] %v621_v2  ;;  %v627_v5 = vld [vmem:[%s6262_s6 + $0xc48] sm:$0xff]  ;;  %624 = vst [vmem:[%s6267_s29 + $0x618] sm:$0xff] %v623_v3  ;;  %v629_v6 = vld [vmem:[%s6262_s6 + $0xc50] sm:$0xff] }
  0x86   : > { %626 = vst [vmem:[%s6267_s29 + $0x620] sm:$0xff] %v625_v4  ;;  %628 = vst [vmem:[%s6267_s29 + $0x628] sm:$0xff] %v627_v5  ;;  %v631_v7 = vld [vmem:[%s6262_s6 + $0xc58] sm:$0xff]  ;;  %v633_v8 = vld [vmem:[%s6262_s6 + $0xc80] sm:$0xff] }
  0x87   : > { %630 = vst [vmem:[%s6267_s29 + $0x630] sm:$0xff] %v629_v6  ;;  %632 = vst [vmem:[%s6267_s29 + $0x638] sm:$0xff] %v631_v7  ;;  %v635_v9 = vld [vmem:[%s6262_s6 + $0xc88] sm:$0xff]  ;;  %v637_v10 = vld [vmem:[%s6262_s6 + $0xc90] sm:$0xff] }
  0x88   : > { %634 = vst [vmem:[%s6267_s29 + $0x640] sm:$0xff] %v633_v8  ;;  %v639_v11 = vld [vmem:[%s6262_s6 + $0xc98] sm:$0xff]  ;;  %636 = vst [vmem:[%s6267_s29 + $0x648] sm:$0xff] %v635_v9  ;;  %v641_v12 = vld [vmem:[%s6262_s6 + $0xcc0] sm:$0xff] }
  0x89   : > { %638 = vst [vmem:[%s6267_s29 + $0x650] sm:$0xff] %v637_v10  ;;  %640 = vst [vmem:[%s6267_s29 + $0x658] sm:$0xff] %v639_v11  ;;  %v643_v13 = vld [vmem:[%s6262_s6 + $0xcc8] sm:$0xff]  ;;  %v645_v14 = vld [vmem:[%s6262_s6 + $0xcd0] sm:$0xff] }
  0x8a   : > { %642 = vst [vmem:[%s6267_s29 + $0x660] sm:$0xff] %v641_v12  ;;  %644 = vst [vmem:[%s6267_s29 + $0x668] sm:$0xff] %v643_v13  ;;  %v647_v15 = vld [vmem:[%s6262_s6 + $0xcd8] sm:$0xff]  ;;  %v649_v16 = vld [vmem:[%s6262_s6 + $0xd00] sm:$0xff] }
  0x8b   : > { %646 = vst [vmem:[%s6267_s29 + $0x670] sm:$0xff] %v645_v14  ;;  %v651_v17 = vld [vmem:[%s6262_s6 + $0xd08] sm:$0xff]  ;;  %648 = vst [vmem:[%s6267_s29 + $0x678] sm:$0xff] %v647_v15  ;;  %v653_v18 = vld [vmem:[%s6262_s6 + $0xd10] sm:$0xff] }
  0x8c   : > { %650 = vst [vmem:[%s6267_s29 + $0x680] sm:$0xff] %v649_v16  ;;  %652 = vst [vmem:[%s6267_s29 + $0x688] sm:$0xff] %v651_v17  ;;  %v655_v19 = vld [vmem:[%s6262_s6 + $0xd18] sm:$0xff]  ;;  %v657_v20 = vld [vmem:[%s6262_s6 + $0xd40] sm:$0xff] }
  0x8d   : > { %654 = vst [vmem:[%s6267_s29 + $0x690] sm:$0xff] %v653_v18  ;;  %656 = vst [vmem:[%s6267_s29 + $0x698] sm:$0xff] %v655_v19  ;;  %v659_v21 = vld [vmem:[%s6262_s6 + $0xd48] sm:$0xff]  ;;  %v661_v22 = vld [vmem:[%s6262_s6 + $0xd50] sm:$0xff] }
  0x8e   : > { %658 = vst [vmem:[%s6267_s29 + $0x6a0] sm:$0xff] %v657_v20  ;;  %v663_v23 = vld [vmem:[%s6262_s6 + $0xd58] sm:$0xff]  ;;  %660 = vst [vmem:[%s6267_s29 + $0x6a8] sm:$0xff] %v659_v21  ;;  %v665_v24 = vld [vmem:[%s6262_s6 + $0xd80] sm:$0xff] }
  0x8f   : > { %662 = vst [vmem:[%s6267_s29 + $0x6b0] sm:$0xff] %v661_v22  ;;  %664 = vst [vmem:[%s6267_s29 + $0x6b8] sm:$0xff] %v663_v23  ;;  %v667_v25 = vld [vmem:[%s6262_s6 + $0xd88] sm:$0xff]  ;;  %v669_v26 = vld [vmem:[%s6262_s6 + $0xd90] sm:$0xff] }
  0x90   : > { %666 = vst [vmem:[%s6267_s29 + $0x6c0] sm:$0xff] %v665_v24  ;;  %668 = vst [vmem:[%s6267_s29 + $0x6c8] sm:$0xff] %v667_v25  ;;  %v671_v27 = vld [vmem:[%s6262_s6 + $0xd98] sm:$0xff]  ;;  %v673_v28 = vld [vmem:[%s6262_s6 + $0xdc0] sm:$0xff] }
  0x91   : > { %670 = vst [vmem:[%s6267_s29 + $0x6d0] sm:$0xff] %v669_v26  ;;  %v675_v29 = vld [vmem:[%s6262_s6 + $0xdc8] sm:$0xff]  ;;  %672 = vst [vmem:[%s6267_s29 + $0x6d8] sm:$0xff] %v671_v27  ;;  %v677_v30 = vld [vmem:[%s6262_s6 + $0xdd0] sm:$0xff] }
  0x92   : > { %674 = vst [vmem:[%s6267_s29 + $0x6e0] sm:$0xff] %v673_v28  ;;  %676 = vst [vmem:[%s6267_s29 + $0x6e8] sm:$0xff] %v675_v29  ;;  %v679_v31 = vld [vmem:[%s6262_s6 + $0xdd8] sm:$0xff]  ;;  %v681_v32 = vld [vmem:[%s6262_s6 + $0xe00] sm:$0xff] }
  0x93   : > { %678 = vst [vmem:[%s6267_s29 + $0x6f0] sm:$0xff] %v677_v30  ;;  %680 = vst [vmem:[%s6267_s29 + $0x6f8] sm:$0xff] %v679_v31  ;;  %v683_v33 = vld [vmem:[%s6262_s6 + $0xe08] sm:$0xff]  ;;  %v685_v34 = vld [vmem:[%s6262_s6 + $0xe10] sm:$0xff] }
  0x94   : > { %682 = vst [vmem:[%s6267_s29 + $0x700] sm:$0xff] %v681_v32  ;;  %v687_v35 = vld [vmem:[%s6262_s6 + $0xe18] sm:$0xff]  ;;  %684 = vst [vmem:[%s6267_s29 + $0x708] sm:$0xff] %v683_v33  ;;  %v689_v36 = vld [vmem:[%s6262_s6 + $0xe40] sm:$0xff] }
  0x95   : > { %686 = vst [vmem:[%s6267_s29 + $0x710] sm:$0xff] %v685_v34  ;;  %688 = vst [vmem:[%s6267_s29 + $0x718] sm:$0xff] %v687_v35  ;;  %v691_v37 = vld [vmem:[%s6262_s6 + $0xe48] sm:$0xff]  ;;  %v693_v38 = vld [vmem:[%s6262_s6 + $0xe50] sm:$0xff] }
  0x96   : > { %690 = vst [vmem:[%s6267_s29 + $0x720] sm:$0xff] %v689_v36  ;;  %692 = vst [vmem:[%s6267_s29 + $0x728] sm:$0xff] %v691_v37  ;;  %v695_v39 = vld [vmem:[%s6262_s6 + $0xe58] sm:$0xff]  ;;  %v697_v40 = vld [vmem:[%s6262_s6 + $0xe80] sm:$0xff] }
  0x97   : > { %694 = vst [vmem:[%s6267_s29 + $0x730] sm:$0xff] %v693_v38  ;;  %v699_v41 = vld [vmem:[%s6262_s6 + $0xe88] sm:$0xff]  ;;  %696 = vst [vmem:[%s6267_s29 + $0x738] sm:$0xff] %v695_v39  ;;  %v701_v42 = vld [vmem:[%s6262_s6 + $0xe90] sm:$0xff] }
  0x98   : > { %698 = vst [vmem:[%s6267_s29 + $0x740] sm:$0xff] %v697_v40  ;;  %700 = vst [vmem:[%s6267_s29 + $0x748] sm:$0xff] %v699_v41  ;;  %v703_v43 = vld [vmem:[%s6262_s6 + $0xe98] sm:$0xff]  ;;  %v705_v44 = vld [vmem:[%s6262_s6 + $0xec0] sm:$0xff] }
  0x99   : > { %702 = vst [vmem:[%s6267_s29 + $0x750] sm:$0xff] %v701_v42  ;;  %704 = vst [vmem:[%s6267_s29 + $0x758] sm:$0xff] %v703_v43  ;;  %v707_v45 = vld [vmem:[%s6262_s6 + $0xec8] sm:$0xff]  ;;  %v709_v46 = vld [vmem:[%s6262_s6 + $0xed0] sm:$0xff] }
  0x9a   : > { %706 = vst [vmem:[%s6267_s29 + $0x760] sm:$0xff] %v705_v44  ;;  %v711_v47 = vld [vmem:[%s6262_s6 + $0xed8] sm:$0xff]  ;;  %708 = vst [vmem:[%s6267_s29 + $0x768] sm:$0xff] %v707_v45  ;;  %v713_v48 = vld [vmem:[%s6262_s6 + $0xf00] sm:$0xff] }
  0x9b   : > { %710 = vst [vmem:[%s6267_s29 + $0x770] sm:$0xff] %v709_v46  ;;  %712 = vst [vmem:[%s6267_s29 + $0x778] sm:$0xff] %v711_v47  ;;  %v715_v49 = vld [vmem:[%s6262_s6 + $0xf08] sm:$0xff]  ;;  %v717_v50 = vld [vmem:[%s6262_s6 + $0xf10] sm:$0xff] }
  0x9c   : > { %714 = vst [vmem:[%s6267_s29 + $0x780] sm:$0xff] %v713_v48  ;;  %716 = vst [vmem:[%s6267_s29 + $0x788] sm:$0xff] %v715_v49  ;;  %v719_v51 = vld [vmem:[%s6262_s6 + $0xf18] sm:$0xff]  ;;  %v721_v52 = vld [vmem:[%s6262_s6 + $0xf40] sm:$0xff] }
  0x9d   : > { %718 = vst [vmem:[%s6267_s29 + $0x790] sm:$0xff] %v717_v50  ;;  %v723_v53 = vld [vmem:[%s6262_s6 + $0xf48] sm:$0xff]  ;;  %720 = vst [vmem:[%s6267_s29 + $0x798] sm:$0xff] %v719_v51  ;;  %v725_v54 = vld [vmem:[%s6262_s6 + $0xf50] sm:$0xff] }
  0x9e   : > { %722 = vst [vmem:[%s6267_s29 + $0x7a0] sm:$0xff] %v721_v52  ;;  %724 = vst [vmem:[%s6267_s29 + $0x7a8] sm:$0xff] %v723_v53  ;;  %v727_v55 = vld [vmem:[%s6262_s6 + $0xf58] sm:$0xff]  ;;  %v729_v56 = vld [vmem:[%s6262_s6 + $0xf80] sm:$0xff] }
  0x9f   : > { %726 = vst [vmem:[%s6267_s29 + $0x7b0] sm:$0xff] %v725_v54  ;;  %728 = vst [vmem:[%s6267_s29 + $0x7b8] sm:$0xff] %v727_v55  ;;  %v731_v57 = vld [vmem:[%s6262_s6 + $0xf88] sm:$0xff]  ;;  %v733_v58 = vld [vmem:[%s6262_s6 + $0xf90] sm:$0xff] }
  0xa0   : > { %730 = vst [vmem:[%s6267_s29 + $0x7c0] sm:$0xff] %v729_v56  ;;  %v735_v59 = vld [vmem:[%s6262_s6 + $0xf98] sm:$0xff]  ;;  %732 = vst [vmem:[%s6267_s29 + $0x7c8] sm:$0xff] %v731_v57  ;;  %v737_v60 = vld [vmem:[%s6262_s6 + $0xfc0] sm:$0xff] }
  0xa1   : > { %734 = vst [vmem:[%s6267_s29 + $0x7d0] sm:$0xff] %v733_v58  ;;  %736 = vst [vmem:[%s6267_s29 + $0x7d8] sm:$0xff] %v735_v59  ;;  %v739_v61 = vld [vmem:[%s6262_s6 + $0xfc8] sm:$0xff]  ;;  %v741_v62 = vld [vmem:[%s6262_s6 + $0xfd0] sm:$0xff] }
  0xa2   : > { %738 = vst [vmem:[%s6267_s29 + $0x7e0] sm:$0xff] %v737_v60  ;;  %740 = vst [vmem:[%s6267_s29 + $0x7e8] sm:$0xff] %v739_v61  ;;  %v743_v63 = vld [vmem:[%s6262_s6 + $0xfd8] sm:$0xff] }
  0xa3   : > { %742 = vst [vmem:[%s6267_s29 + $0x7f0] sm:$0xff] %v741_v62  ;;  %744 = vst [vmem:[%s6267_s29 + $0x7f8] sm:$0xff] %v743_v63 }
  0xa4 PF: > { %767 = sbr.rel (!%p6240_p6) target bundleno = 190 (0xbe), region = 55  ;;  %s769_s10 = sand.u32 (%p6240_p6), 1, %s6112_s19  }
  0xa5   : > { %s5322_s13 = sshll.u32 (%p6240_p6), %s6136_s25, 5  ;;  %s5032_s14 = sshll.u32 (%p6240_p6), %s769_s10, 8 }
  0xa6   : > { %s9094_s4 = sld [smem:[#allocation84_spill]] (%p6240_p6)  ;;  %s6790_s7 = scalar_lea.vmem (%p6240_p6), [#allocation4], %s5032_s14 }
  0xac   : > { %s6785_s17 = scalar_lea.vmem %s9094_s4, %s5322_s13 }
  0xad   : > { %v787_v0 = vld [vmem:[%s6785_s17] sm:$0xff]  ;;  %v789_v1 = vld [vmem:[%s6785_s17 + $0x8] sm:$0xff]  ;;  %v791_v2 = vld [vmem:[%s6785_s17 + $0x10] sm:$0xff] }
  0xae   : > { %788 = vst [vmem:[%s6790_s7] sm:$0xff] %v787_v0  ;;  %790 = vst [vmem:[%s6790_s7 + $0x8] sm:$0xff] %v789_v1  ;;  %v793_v3 = vld [vmem:[%s6785_s17 + $0x18] sm:$0xff]  ;;  %v795_v4 = vld [vmem:[%s6785_s17 + $0x40] sm:$0xff] }
  0xaf   : > { %792 = vst [vmem:[%s6790_s7 + $0x10] sm:$0xff] %v791_v2  ;;  %v797_v5 = vld [vmem:[%s6785_s17 + $0x48] sm:$0xff]  ;;  %794 = vst [vmem:[%s6790_s7 + $0x18] sm:$0xff] %v793_v3  ;;  %v799_v6 = vld [vmem:[%s6785_s17 + $0x50] sm:$0xff] }
  0xb0   : > { %796 = vst [vmem:[%s6790_s7 + $0x20] sm:$0xff] %v795_v4  ;;  %798 = vst [vmem:[%s6790_s7 + $0x28] sm:$0xff] %v797_v5  ;;  %v801_v7 = vld [vmem:[%s6785_s17 + $0x58] sm:$0xff]  ;;  %v803_v8 = vld [vmem:[%s6785_s17 + $0x80] sm:$0xff] }
  0xb1   : > { %800 = vst [vmem:[%s6790_s7 + $0x30] sm:$0xff] %v799_v6  ;;  %802 = vst [vmem:[%s6790_s7 + $0x38] sm:$0xff] %v801_v7  ;;  %v805_v9 = vld [vmem:[%s6785_s17 + $0x88] sm:$0xff]  ;;  %v807_v10 = vld [vmem:[%s6785_s17 + $0x90] sm:$0xff] }
  0xb2   : > { %804 = vst [vmem:[%s6790_s7 + $0x40] sm:$0xff] %v803_v8  ;;  %v809_v11 = vld [vmem:[%s6785_s17 + $0x98] sm:$0xff]  ;;  %806 = vst [vmem:[%s6790_s7 + $0x48] sm:$0xff] %v805_v9  ;;  %v811_v12 = vld [vmem:[%s6785_s17 + $0xc0] sm:$0xff] }
  0xb3   : > { %808 = vst [vmem:[%s6790_s7 + $0x50] sm:$0xff] %v807_v10  ;;  %810 = vst [vmem:[%s6790_s7 + $0x58] sm:$0xff] %v809_v11  ;;  %v813_v13 = vld [vmem:[%s6785_s17 + $0xc8] sm:$0xff]  ;;  %v815_v14 = vld [vmem:[%s6785_s17 + $0xd0] sm:$0xff] }
  0xb4   : > { %812 = vst [vmem:[%s6790_s7 + $0x60] sm:$0xff] %v811_v12  ;;  %814 = vst [vmem:[%s6790_s7 + $0x68] sm:$0xff] %v813_v13  ;;  %v817_v15 = vld [vmem:[%s6785_s17 + $0xd8] sm:$0xff]  ;;  %v819_v16 = vld [vmem:[%s6785_s17 + $0x100] sm:$0xff] }
  0xb5   : > { %816 = vst [vmem:[%s6790_s7 + $0x70] sm:$0xff] %v815_v14  ;;  %v821_v17 = vld [vmem:[%s6785_s17 + $0x108] sm:$0xff]  ;;  %818 = vst [vmem:[%s6790_s7 + $0x78] sm:$0xff] %v817_v15  ;;  %v823_v18 = vld [vmem:[%s6785_s17 + $0x110] sm:$0xff] }
  0xb6   : > { %820 = vst [vmem:[%s6790_s7 + $0x80] sm:$0xff] %v819_v16  ;;  %822 = vst [vmem:[%s6790_s7 + $0x88] sm:$0xff] %v821_v17  ;;  %v825_v19 = vld [vmem:[%s6785_s17 + $0x118] sm:$0xff]  ;;  %v827_v20 = vld [vmem:[%s6785_s17 + $0x140] sm:$0xff] }
  0xb7   : > { %824 = vst [vmem:[%s6790_s7 + $0x90] sm:$0xff] %v823_v18  ;;  %826 = vst [vmem:[%s6790_s7 + $0x98] sm:$0xff] %v825_v19  ;;  %v829_v21 = vld [vmem:[%s6785_s17 + $0x148] sm:$0xff]  ;;  %v831_v22 = vld [vmem:[%s6785_s17 + $0x150] sm:$0xff] }
  0xb8   : > { %828 = vst [vmem:[%s6790_s7 + $0xa0] sm:$0xff] %v827_v20  ;;  %v833_v23 = vld [vmem:[%s6785_s17 + $0x158] sm:$0xff]  ;;  %830 = vst [vmem:[%s6790_s7 + $0xa8] sm:$0xff] %v829_v21  ;;  %v835_v24 = vld [vmem:[%s6785_s17 + $0x180] sm:$0xff] }
  0xb9   : > { %832 = vst [vmem:[%s6790_s7 + $0xb0] sm:$0xff] %v831_v22  ;;  %834 = vst [vmem:[%s6790_s7 + $0xb8] sm:$0xff] %v833_v23  ;;  %v837_v25 = vld [vmem:[%s6785_s17 + $0x188] sm:$0xff]  ;;  %v839_v26 = vld [vmem:[%s6785_s17 + $0x190] sm:$0xff] }
  0xba   : > { %836 = vst [vmem:[%s6790_s7 + $0xc0] sm:$0xff] %v835_v24  ;;  %838 = vst [vmem:[%s6790_s7 + $0xc8] sm:$0xff] %v837_v25  ;;  %v841_v27 = vld [vmem:[%s6785_s17 + $0x198] sm:$0xff]  ;;  %v843_v28 = vld [vmem:[%s6785_s17 + $0x1c0] sm:$0xff] }
  0xbb   : > { %840 = vst [vmem:[%s6790_s7 + $0xd0] sm:$0xff] %v839_v26  ;;  %v845_v29 = vld [vmem:[%s6785_s17 + $0x1c8] sm:$0xff]  ;;  %842 = vst [vmem:[%s6790_s7 + $0xd8] sm:$0xff] %v841_v27  ;;  %v847_v30 = vld [vmem:[%s6785_s17 + $0x1d0] sm:$0xff] }
  0xbc   : > { %844 = vst [vmem:[%s6790_s7 + $0xe0] sm:$0xff] %v843_v28  ;;  %846 = vst [vmem:[%s6790_s7 + $0xe8] sm:$0xff] %v845_v29  ;;  %v849_v31 = vld [vmem:[%s6785_s17 + $0x1d8] sm:$0xff] }
  0xbd   : > { %848 = vst [vmem:[%s6790_s7 + $0xf0] sm:$0xff] %v847_v30  ;;  %850 = vst [vmem:[%s6790_s7 + $0xf8] sm:$0xff] %v849_v31 }
  0xbe PF: > { %p5035_p10 = scmp.ge.s32.totalorder %s6140_s26, 1  ;;  %p855_p11 = scmp.lt.s32.totalorder %s6140_s26, 5 }
  0xc0   : > { %p856_p12 = pnand %p5035_p10, %p855_p11 }
  0xc2   : > { %859 = sbr.rel (%p856_p12) target bundleno = 1658 (0x67a), region = 78 }
  0xc7   : > { %s862_s30 = sand.u32 1, %s6116_s20   ;;  %s869_s8 = sand.u32 1, %s6108_s18  }
  0xc8   : > { %s5036_s9 = sshll.u32 %s862_s30, 11  ;;  %s5037_s6 = sshll.u32 %s869_s8, 8 }
  0xc9   : > { %s5038_s29 = sshll.u32 %s6124_s22, 2  ;;  %s5039_s10 = sshll.u32 %s6128_s23, 3 }
  0xca   : > { %p914_p13 = scmp.lt.s32.totalorder %s5038_s29, 7  ;;  %p921_p0 = scmp.lt.s32.totalorder %s5039_s10, 15 }
  0xcb   : > { %s5040_s13 = sshll.u32 %s6128_s23, 7  ;;  %s6883_s15 = scalar_lea.vmem [#allocation3], %s5036_s9 }
  0xcc   : > { %s9581_s29 = smov (!%p914_p13, %s5038_s29), 7  ;;  %s9583_s10 = smov (!%p921_p0, %s5039_s10), 15 }
  0xcd   : > { %p926_p1 = scmp.lt.s32.totalorder %s5040_s13, 255  ;;  %s923_s17 = scalar_lea.vmem %s8863_s2, %s9583_s10 }
  0xce   : > { %s5043_s7 = sshll.u32 %s9583_s10, 1  ;;  %s6885_s16 = scalar_lea.vmem [#allocation4], %s5037_s6 }
  0xcf   : > { %s9585_s13 = smov (!%p926_p1, %s5040_s13), 255  ;;  %s6876_s8 = scalar_lea.vmem %s8866_s5, %s5043_s7 }
  0xd0   : > { %s5041_s1 = sshll.u32 %s9585_s13, 2  ;;  %p5044_p2 = scmp.ne.s32.totalorder %s6124_s22, 0 }
  0xd1   : > { %s6881_s14 = scalar_lea.vmem %s8864_s3, %s5041_s1 }
  0xd2   : > { %941 = sbr.rel (%p5044_p2) target bundleno = 217 (0xd9), region = 90 }
  0xd7   : > { %v6142_v32 = vmov 0.0  }
  0xd8   : > { %942 = vst [vmem:[#allocation2] sm:$0xff] %v6142_v32  ;;  %943 = vst [vmem:[#allocation2 + $0x8] sm:$0xff] %v6142_v32 }
  0xd9 PF: > { %v1003_v33 = vld [vmem:[%s6883_s15 + $0x1c0] sm:$0xff]  ;;  %v6143_v4 = vmov 1966171168   ;;  %v1215_v6 = vlaneseq  ;;  %s9095_s28 = scalar_lea.vmem %s8861_s0, %s9581_s29  ;;  %p5302_p3 = scmp.ne.s32.totalorder %s6124_s22, 1 }
  0xda   : > { %v1007_v34 = vld [vmem:[%s6883_s15 + $0x1e0] sm:$0xff]  ;;  %v1213_v5 = vunpack.c.l.s4 %v6143_v4  ;;  %v6927_v28 = vld.sshfl [vmem:[%s9095_s28] sm:$0x33 pattern:$0x75316420] }
  0xdb   : > { %v1131_v35 = vld [vmem:[%s6883_s15 + $0x5c0] sm:$0xff]  ;;  %v5103_v36 = vcombine.high %v1003_v33, %v1007_v34  ;;  %v5102_v38 = vcombine.low %v1003_v33, %v1007_v34  ;;  %v6913_v16 = vshrl.u32 %v1215_v6, 7  ;;  %v1211_v32 = vcombine.high %v6927_v28, %v6927_v28 }
  0xdc   : > { %v1135_v37 = vld [vmem:[%s6883_s15 + $0x5e0] sm:$0xff]  ;;  %v1214_v15 = vunpack.c.0.s8 %v1213_v5 }
  0xdd   : > { %v995_v39 = vld [vmem:[%s6883_s15 + $0x180] sm:$0xff]  ;;  %v5231_v41 = vcombine.high %v1131_v35, %v1135_v37  ;;  %v5230_v42 = vcombine.low %v1131_v35, %v1135_v37  ;;  %2512 = vmatprep.subr.bf16.mxu0 %v5103_v36 }
  0xde   : > { %v999_v40 = vld [vmem:[%s6883_s15 + $0x1a0] sm:$0xff]  ;;  %2513 = vmatpush1.bf16.msra.mxu0 %v5102_v38  ;;  %v6920_v25 = vsub.s32 %v1214_v15, %v6913_v16 }
  0xdf   : > { %v5095_v43 = vcombine.high %v995_v39, %v999_v40  ;;  %v1123_v44 = vld [vmem:[%s6883_s15 + $0x580] sm:$0xff]  ;;  %2553 = vmatprep.subr.bf16.mxu1 %v5231_v41  ;;  %v5094_v51 = vcombine.low %v995_v39, %v999_v40 }
  0xe0   : > { %v1127_v45 = vld [vmem:[%s6883_s15 + $0x5a0] sm:$0xff]  ;;  %2554 = vmatpush1.bf16.msra.mxu1 %v5230_v42  ;;  %v6936_v36 = vrot.slane %v1211_v32, %v6920_v25 }
  0xe1   : > { %v987_v46 = vld [vmem:[%s6883_s15 + $0x140] sm:$0xff]  ;;  %v5223_v47 = vcombine.high %v1123_v44, %v1127_v45  ;;  %2514 = vmatprep.subr.bf16.mxu0 %v5095_v43  ;;  %v5222_v52 = vcombine.low %v1123_v44, %v1127_v45 }
  0xe2   : > { %v991_v48 = vld [vmem:[%s6883_s15 + $0x160] sm:$0xff]  ;;  %2515 = vmatpush1.bf16.msra.mxu0 %v5094_v51  ;;  %2544 = vmatprep.mubr.bf16.mxu0 %v6936_v36  ;;  %v6943_v42 = vcombine.high %v6936_v36, %v6936_v36 }
  0xe3   : > { %v1115_v49 = vld [vmem:[%s6883_s15 + $0x540] sm:$0xff]  ;;  %v5087_v53 = vcombine.high %v987_v46, %v991_v48  ;;  %2555 = vmatprep.subr.bf16.mxu1 %v5223_v47  ;;  %v5086_v59 = vcombine.low %v987_v46, %v991_v48 }
  0xe4   : > { %v1119_v50 = vld [vmem:[%s6883_s15 + $0x560] sm:$0xff]  ;;  %2556 = vmatpush1.bf16.msra.mxu1 %v5222_v52  ;;  %2585 = vmatprep.mubr.bf16.mxu1 %v6943_v42 }
  0xe5   : > { %v5215_v54 = vcombine.high %v1115_v49, %v1119_v50  ;;  %v979_v55 = vld [vmem:[%s6883_s15 + $0x100] sm:$0xff]  ;;  %2516 = vmatprep.subr.bf16.mxu0 %v5087_v53  ;;  %v5214_v60 = vcombine.low %v1115_v49, %v1119_v50 }
  0xe6   : > { %v983_v56 = vld [vmem:[%s6883_s15 + $0x120] sm:$0xff]  ;;  %2517 = vmatpush1.bf16.msra.mxu0 %v5086_v59 }
  0xe7   : > { %v1107_v57 = vld [vmem:[%s6883_s15 + $0x500] sm:$0xff]  ;;  %v5079_v61 = vcombine.high %v979_v55, %v983_v56  ;;  %2557 = vmatprep.subr.bf16.mxu1 %v5215_v54  ;;  %v5078_v3 = vcombine.low %v979_v55, %v983_v56 }
  0xe8   : > { %v1111_v58 = vld [vmem:[%s6883_s15 + $0x520] sm:$0xff]  ;;  %2558 = vmatpush1.bf16.msra.mxu1 %v5214_v60 }
  0xe9   : > { %v5207_v62 = vcombine.high %v1107_v57, %v1111_v58  ;;  %v971_v63 = vld [vmem:[%s6883_s15 + $0xc0] sm:$0xff]  ;;  %2518 = vmatprep.subr.bf16.mxu0 %v5079_v61  ;;  %v5206_v7 = vcombine.low %v1107_v57, %v1111_v58 }
  0xea   : > { %v975_v0 = vld [vmem:[%s6883_s15 + $0xe0] sm:$0xff]  ;;  %2519 = vmatpush1.bf16.msra.mxu0 %v5078_v3 }
  0xeb   : > { %v1099_v1 = vld [vmem:[%s6883_s15 + $0x4c0] sm:$0xff]  ;;  %v5071_v8 = vcombine.high %v971_v63, %v975_v0  ;;  %2559 = vmatprep.subr.bf16.mxu1 %v5207_v62  ;;  %v5070_v14 = vcombine.low %v971_v63, %v975_v0 }
  0xec   : > { %v1103_v2 = vld [vmem:[%s6883_s15 + $0x4e0] sm:$0xff]  ;;  %2560 = vmatpush1.bf16.msra.mxu1 %v5206_v7 }
  0xed   : > { %v5199_v9 = vcombine.high %v1099_v1, %v1103_v2  ;;  %v963_v10 = vld [vmem:[%s6883_s15 + $0x80] sm:$0xff]  ;;  %2520 = vmatprep.subr.bf16.mxu0 %v5071_v8  ;;  %v5198_v17 = vcombine.low %v1099_v1, %v1103_v2 }
  0xee   : > { %v967_v11 = vld [vmem:[%s6883_s15 + $0xa0] sm:$0xff]  ;;  %2521 = vmatpush1.bf16.msra.mxu0 %v5070_v14 }
  0xef   : > { %v1091_v12 = vld [vmem:[%s6883_s15 + $0x480] sm:$0xff]  ;;  %v5063_v18 = vcombine.high %v963_v10, %v967_v11  ;;  %2561 = vmatprep.subr.bf16.mxu1 %v5199_v9  ;;  %v5062_v24 = vcombine.low %v963_v10, %v967_v11 }
  0xf0   : > { %v1095_v13 = vld [vmem:[%s6883_s15 + $0x4a0] sm:$0xff]  ;;  %2562 = vmatpush1.bf16.msra.mxu1 %v5198_v17 }
  0xf1   : > { %v5191_v19 = vcombine.high %v1091_v12, %v1095_v13  ;;  %v955_v20 = vld [vmem:[%s6883_s15 + $0x40] sm:$0xff]  ;;  %2522 = vmatprep.subr.bf16.mxu0 %v5063_v18  ;;  %v5190_v26 = vcombine.low %v1091_v12, %v1095_v13 }
  0xf2   : > { %v959_v21 = vld [vmem:[%s6883_s15 + $0x60] sm:$0xff]  ;;  %2523 = vmatpush1.bf16.msra.mxu0 %v5062_v24 }
  0xf3   : > { %v1083_v22 = vld [vmem:[%s6883_s15 + $0x440] sm:$0xff]  ;;  %v5055_v27 = vcombine.high %v955_v20, %v959_v21  ;;  %2563 = vmatprep.subr.bf16.mxu1 %v5191_v19  ;;  %v5054_v35 = vcombine.low %v955_v20, %v959_v21 }
  0xf4   : > { %v1087_v23 = vld [vmem:[%s6883_s15 + $0x460] sm:$0xff]  ;;  %2564 = vmatpush1.bf16.msra.mxu1 %v5190_v26 }
  0xf5   : > { %v5183_v29 = vcombine.high %v1083_v22, %v1087_v23  ;;  %v947_v30 = vld [vmem:[%s6883_s15] sm:$0xff]  ;;  %2524 = vmatprep.subr.bf16.mxu0 %v5055_v27  ;;  %v5182_v37 = vcombine.low %v1083_v22, %v1087_v23 }
  0xf6   : > { %v951_v31 = vld [vmem:[%s6883_s15 + $0x20] sm:$0xff]  ;;  %2525 = vmatpush1.bf16.msra.mxu0 %v5054_v35 }
  0xf7   : > { %v1075_v33 = vld [vmem:[%s6883_s15 + $0x400] sm:$0xff]  ;;  %v5047_v38 = vcombine.high %v947_v30, %v951_v31  ;;  %2565 = vmatprep.subr.bf16.mxu1 %v5183_v29  ;;  %v5046_v45 = vcombine.low %v947_v30, %v951_v31 }
  0xf8   : > { %v1079_v34 = vld [vmem:[%s6883_s15 + $0x420] sm:$0xff]  ;;  %2566 = vmatpush1.bf16.msra.mxu1 %v5182_v37 }
  0xf9   : > { %v5175_v39 = vcombine.high %v1075_v33, %v1079_v34  ;;  %v1067_v40 = vld [vmem:[%s6883_s15 + $0x3c0] sm:$0xff]  ;;  %2526 = vmatprep.subr.bf16.mxu0 %v5047_v38  ;;  %v5174_v46 = vcombine.low %v1075_v33, %v1079_v34 }
  0xfa   : > { %v1071_v41 = vld [vmem:[%s6883_s15 + $0x3e0] sm:$0xff]  ;;  %2527 = vmatpush1.bf16.msra.mxu0 %v5046_v45 }
  0xfb   : > { %v1195_v43 = vld [vmem:[%s6883_s15 + $0x7c0] sm:$0xff]  ;;  %v5167_v47 = vcombine.high %v1067_v40, %v1071_v41  ;;  %2567 = vmatprep.subr.bf16.mxu1 %v5175_v39  ;;  %v5166_v53 = vcombine.low %v1067_v40, %v1071_v41 }
  0xfc   : > { %v1199_v44 = vld [vmem:[%s6883_s15 + $0x7e0] sm:$0xff]  ;;  %2568 = vmatpush1.bf16.msra.mxu1 %v5174_v46 }
  0xfd   : > { %v5295_v48 = vcombine.high %v1195_v43, %v1199_v44  ;;  %v1059_v49 = vld [vmem:[%s6883_s15 + $0x380] sm:$0xff]  ;;  %2528 = vmatprep.subr.bf16.mxu0 %v5167_v47  ;;  %v5294_v54 = vcombine.low %v1195_v43, %v1199_v44  ;;  %v1004_v47 = vld [vmem:[%s6883_s15 + $0x1c8] sm:$0xff] }
  0xfe   : > { %v1063_v50 = vld [vmem:[%s6883_s15 + $0x3a0] sm:$0xff]  ;;  %2529 = vmatpush2.bf16.msra.mxu0 %v5166_v53 }
  0xff   : > { %v1187_v51 = vld [vmem:[%s6883_s15 + $0x780] sm:$0xff]  ;;  %v5159_v55 = vcombine.high %v1059_v49, %v1063_v50  ;;  %2569 = vmatprep.subr.bf16.mxu1 %v5295_v48  ;;  %v5158_v61 = vcombine.low %v1059_v49, %v1063_v50  ;;  %v1008_v48 = vld [vmem:[%s6883_s15 + $0x1e8] sm:$0xff] }
 0x100   : > { %v1191_v52 = vld [vmem:[%s6883_s15 + $0x7a0] sm:$0xff]  ;;  %2570 = vmatpush2.bf16.msra.mxu1 %v5294_v54  ;;  %v1132_v49 = vld [vmem:[%s6883_s15 + $0x5c8] sm:$0xff]  ;;  %v5105_v54 = vcombine.high %v1004_v47, %v1008_v48 }
 0x101   : > { %v5287_v56 = vcombine.high %v1187_v51, %v1191_v52  ;;  %v1051_v57 = vld [vmem:[%s6883_s15 + $0x340] sm:$0xff]  ;;  %2530 = vmatprep.subr.bf16.mxu0 %v5159_v55  ;;  %v5286_v62 = vcombine.low %v1187_v51, %v1191_v52  ;;  %v1136_v50 = vld [vmem:[%s6883_s15 + $0x5e8] sm:$0xff]  ;;  %v6982_v52 = vrot.slane %v6927_v28, %v6920_v25  ;;  %v5104_v25 = vcombine.low %v1004_v47, %v1008_v48 }
 0x102   : > { %v1055_v58 = vld [vmem:[%s6883_s15 + $0x360] sm:$0xff]  ;;  %2531 = vmatpush2.bf16.msra.mxu0 %v5158_v61  ;;  %v5233_v55 = vcombine.high %v1132_v49, %v1136_v50  ;;  %v5232_v28 = vcombine.low %v1132_v49, %v1136_v50  ;;  %v1076_v47 = vld [vmem:[%s6883_s15 + $0x408] sm:$0xff] }
 0x103   : > { %v1179_v59 = vld [vmem:[%s6883_s15 + $0x740] sm:$0xff]  ;;  %v5151_v63 = vcombine.high %v1051_v57, %v1055_v58  ;;  %2571 = vmatprep.subr.bf16.mxu1 %v5287_v56  ;;  %v5150_v5 = vcombine.low %v1051_v57, %v1055_v58  ;;  %v996_v56 = vld [vmem:[%s6883_s15 + $0x188] sm:$0xff] }
 0x104   : > { %v1183_v60 = vld [vmem:[%s6883_s15 + $0x760] sm:$0xff]  ;;  %2572 = vmatpush2.bf16.msra.mxu1 %v5286_v62  ;;  %v1000_v57 = vld [vmem:[%s6883_s15 + $0x1a8] sm:$0xff] }
 0x105   : > { %v5279_v0 = vcombine.high %v1179_v59, %v1183_v60  ;;  %v1043_v1 = vld [vmem:[%s6883_s15 + $0x300] sm:$0xff]  ;;  %2532 = vmatprep.subr.bf16.mxu0 %v5151_v63  ;;  %v5278_v7 = vcombine.low %v1179_v59, %v1183_v60  ;;  %v1124_v58 = vld [vmem:[%s6883_s15 + $0x588] sm:$0xff]  ;;  %v6990_v60 = vcombine.high %v6982_v52, %v6982_v52  ;;  %v5097_v61 = vcombine.high %v996_v56, %v1000_v57 }
 0x106   : > { %v1047_v2 = vld [vmem:[%s6883_s15 + $0x320] sm:$0xff]  ;;  %2533 = vmatpush2.bf16.msra.mxu0 %v5150_v5  ;;  %v1128_v59 = vld [vmem:[%s6883_s15 + $0x5a8] sm:$0xff] }
 0x107   : > { %v1171_v3 = vld [vmem:[%s6883_s15 + $0x700] sm:$0xff]  ;;  %v5143_v8 = vcombine.high %v1043_v1, %v1047_v2  ;;  %2573 = vmatprep.subr.bf16.mxu1 %v5279_v0  ;;  %v5142_v14 = vcombine.low %v1043_v1, %v1047_v2  ;;  %v5225_v62 = vcombine.high %v1124_v58, %v1128_v59  ;;  %v988_v63 = vld [vmem:[%s6883_s15 + $0x148] sm:$0xff] }
 0x108   : > { %v1175_v4 = vld [vmem:[%s6883_s15 + $0x720] sm:$0xff]  ;;  %2574 = vmatpush2.bf16.msra.mxu1 %v5278_v7  ;;  %v992_v0 = vld [vmem:[%s6883_s15 + $0x168] sm:$0xff] }
 0x109   : > { %v5271_v9 = vcombine.high %v1171_v3, %v1175_v4  ;;  %v1035_v10 = vld [vmem:[%s6883_s15 + $0x2c0] sm:$0xff]  ;;  %2534 = vmatprep.subr.bf16.mxu0 %v5143_v8  ;;  %v5270_v15 = vcombine.low %v1171_v3, %v1175_v4  ;;  %v1116_v1 = vld [vmem:[%s6883_s15 + $0x548] sm:$0xff]  ;;  %v5096_v3 = vcombine.low %v996_v56, %v1000_v57  ;;  %v5224_v4 = vcombine.low %v1124_v58, %v1128_v59 }
 0x10a   : > { %v1039_v11 = vld [vmem:[%s6883_s15 + $0x2e0] sm:$0xff]  ;;  %2535 = vmatpush2.bf16.msra.mxu0 %v5142_v14  ;;  %v1120_v2 = vld [vmem:[%s6883_s15 + $0x568] sm:$0xff]  ;;  %v5089_v5 = vcombine.high %v988_v63, %v992_v0 }
 0x10b   : > { %v1163_v12 = vld [vmem:[%s6883_s15 + $0x6c0] sm:$0xff]  ;;  %v5135_v17 = vcombine.high %v1035_v10, %v1039_v11  ;;  %2575 = vmatprep.subr.bf16.mxu1 %v5271_v9  ;;  %v5134_v23 = vcombine.low %v1035_v10, %v1039_v11  ;;  %v5217_v7 = vcombine.high %v1116_v1, %v1120_v2  ;;  %v980_v8 = vld [vmem:[%s6883_s15 + $0x108] sm:$0xff] }
 0x10c   : > { %v1167_v13 = vld [vmem:[%s6883_s15 + $0x6e0] sm:$0xff]  ;;  %2576 = vmatpush2.bf16.msra.mxu1 %v5270_v15  ;;  %v984_v9 = vld [vmem:[%s6883_s15 + $0x128] sm:$0xff] }
 0x10d   : > { %v5263_v18 = vcombine.high %v1163_v12, %v1167_v13  ;;  %v1027_v19 = vld [vmem:[%s6883_s15 + $0x280] sm:$0xff]  ;;  %2536 = vmatprep.subr.bf16.mxu0 %v5135_v17  ;;  %v5262_v24 = vcombine.low %v1163_v12, %v1167_v13  ;;  %v1108_v10 = vld [vmem:[%s6883_s15 + $0x508] sm:$0xff]  ;;  %v5088_v12 = vcombine.low %v988_v63, %v992_v0  ;;  %v5216_v13 = vcombine.low %v1116_v1, %v1120_v2 }
 0x10e   : > { %v1031_v20 = vld [vmem:[%s6883_s15 + $0x2a0] sm:$0xff]  ;;  %2537 = vmatpush2.bf16.msra.mxu0 %v5134_v23  ;;  %v1112_v11 = vld [vmem:[%s6883_s15 + $0x528] sm:$0xff]  ;;  %v5081_v14 = vcombine.high %v980_v8, %v984_v9 }
 0x10f   : > { %v1155_v21 = vld [vmem:[%s6883_s15 + $0x680] sm:$0xff]  ;;  %v5127_v26 = vcombine.high %v1027_v19, %v1031_v20  ;;  %2577 = vmatprep.subr.bf16.mxu1 %v5263_v18  ;;  %v5126_v33 = vcombine.low %v1027_v19, %v1031_v20  ;;  %v5209_v15 = vcombine.high %v1108_v10, %v1112_v11  ;;  %v972_v17 = vld [vmem:[%s6883_s15 + $0xc8] sm:$0xff] }
 0x110   : > { %v1159_v22 = vld [vmem:[%s6883_s15 + $0x6a0] sm:$0xff]  ;;  %2578 = vmatpush2.bf16.msra.mxu1 %v5262_v24  ;;  %v976_v18 = vld [vmem:[%s6883_s15 + $0xe8] sm:$0xff] }
 0x111   : > { %v5255_v27 = vcombine.high %v1155_v21, %v1159_v22  ;;  %v1019_v29 = vld [vmem:[%s6883_s15 + $0x240] sm:$0xff]  ;;  %2538 = vmatprep.subr.bf16.mxu0 %v5127_v26  ;;  %v5254_v34 = vcombine.low %v1155_v21, %v1159_v22  ;;  %v1100_v19 = vld [vmem:[%s6883_s15 + $0x4c8] sm:$0xff]  ;;  %v5080_v21 = vcombine.low %v980_v8, %v984_v9  ;;  %v5208_v22 = vcombine.low %v1108_v10, %v1112_v11 }
 0x112   : > { %v1023_v30 = vld [vmem:[%s6883_s15 + $0x260] sm:$0xff]  ;;  %2539 = vmatpush2.bf16.msra.mxu0 %v5126_v33  ;;  %v1104_v20 = vld [vmem:[%s6883_s15 + $0x4e8] sm:$0xff]  ;;  %v5073_v23 = vcombine.high %v972_v17, %v976_v18 }
 0x113   : > { %v1147_v31 = vld [vmem:[%s6883_s15 + $0x640] sm:$0xff]  ;;  %v5119_v35 = vcombine.high %v1019_v29, %v1023_v30  ;;  %2579 = vmatprep.subr.bf16.mxu1 %v5255_v27  ;;  %v5118_v43 = vcombine.low %v1019_v29, %v1023_v30  ;;  %v5201_v24 = vcombine.high %v1100_v19, %v1104_v20  ;;  %v964_v26 = vld [vmem:[%s6883_s15 + $0x88] sm:$0xff] }
 0x114   : > { %v1151_v32 = vld [vmem:[%s6883_s15 + $0x660] sm:$0xff]  ;;  %2580 = vmatpush2.bf16.msra.mxu1 %v5254_v34  ;;  %v968_v27 = vld [vmem:[%s6883_s15 + $0xa8] sm:$0xff] }
 0x115   : > { %v5247_v37 = vcombine.high %v1147_v31, %v1151_v32  ;;  %v1011_v38 = vld [vmem:[%s6883_s15 + $0x200] sm:$0xff]  ;;  %2540 = vmatprep.subr.bf16.mxu0 %v5119_v35  ;;  %v5246_v44 = vcombine.low %v1147_v31, %v1151_v32  ;;  %v1092_v29 = vld [vmem:[%s6883_s15 + $0x488] sm:$0xff]  ;;  %v5072_v31 = vcombine.low %v972_v17, %v976_v18  ;;  %v5200_v32 = vcombine.low %v1100_v19, %v1104_v20 }
 0x116   : > { %v1015_v39 = vld [vmem:[%s6883_s15 + $0x220] sm:$0xff]  ;;  %2541 = vmatpush2.bf16.msra.mxu0 %v5118_v43  ;;  %v1096_v30 = vld [vmem:[%s6883_s15 + $0x4a8] sm:$0xff]  ;;  %v5065_v33 = vcombine.high %v964_v26, %v968_v27 }
 0x117   : > { %v1139_v40 = vld [vmem:[%s6883_s15 + $0x600] sm:$0xff]  ;;  %v5111_v45 = vcombine.high %v1011_v38, %v1015_v39  ;;  %2581 = vmatprep.subr.bf16.mxu1 %v5247_v37  ;;  %v5110_v51 = vcombine.low %v1011_v38, %v1015_v39  ;;  %v5193_v34 = vcombine.high %v1092_v29, %v1096_v30  ;;  %v956_v35 = vld [vmem:[%s6883_s15 + $0x48] sm:$0xff] }
 0x118   : > { %v1143_v41 = vld [vmem:[%s6883_s15 + $0x620] sm:$0xff]  ;;  %2582 = vmatpush2.bf16.msra.mxu1 %v5246_v44  ;;  %v960_v37 = vld [vmem:[%s6883_s15 + $0x68] sm:$0xff] }
 0x119   : > { %v5239_v46 = vcombine.high %v1139_v40, %v1143_v41  ;;  %2542 = vmatprep.subr.bf16.mxu0 %v5111_v45  ;;  %v5238_v53 = vcombine.low %v1139_v40, %v1143_v41  ;;  %v1084_v38 = vld [vmem:[%s6883_s15 + $0x448] sm:$0xff]  ;;  %v5064_v40 = vcombine.low %v964_v26, %v968_v27  ;;  %v5192_v41 = vcombine.low %v1092_v29, %v1096_v30 }
 0x11a   : > { %2543 = vmatpush2.bf16.msra.mxu0 %v5110_v51  ;;  %v1088_v39 = vld [vmem:[%s6883_s15 + $0x468] sm:$0xff]  ;;  %v5057_v43 = vcombine.high %v956_v35, %v960_v37  ;;  %v5056_v49 = vcombine.low %v956_v35, %v960_v37 }
 0x11b   : > { %2583 = vmatprep.subr.bf16.mxu1 %v5239_v46  ;;  %2594 = vmatprep.subr.bf16.mxu0 %v5105_v54  ;;  %v5185_v44 = vcombine.high %v1084_v38, %v1088_v39  ;;  %v948_v45 = vld [vmem:[%s6883_s15 + $0x8] sm:$0xff]  ;;  %v5184_v50 = vcombine.low %v1084_v38, %v1088_v39 }
 0x11c   : > { %2584 = vmatpush2.bf16.msra.mxu1 %v5238_v53  ;;  %v952_v46 = vld [vmem:[%s6883_s15 + $0x28] sm:$0xff] }
 0x11d   : > { %2635 = vmatprep.subr.bf16.mxu1 %v5233_v55  ;;  %2545 = vmatmul.mubr.bf16.vlgmr.msra.gmra.mxu0 %v6982_v52  ;;  %v1080_v48 = vld [vmem:[%s6883_s15 + $0x428] sm:$0xff]  ;;  %v5049_v51 = vcombine.high %v948_v45, %v952_v46  ;;  %v5048_v58 = vcombine.low %v948_v45, %v952_v46 }
 0x11e   : > { %2595 = vmatpush1.bf16.msra.mxu0 %v5104_v25  ;;  %2626 = vmatprep.mubr.bf16.mxu0 %v6936_v36  ;;  %v5177_v53 = vcombine.high %v1076_v47, %v1080_v48  ;;  %v1068_v54 = vld [vmem:[%s6883_s15 + $0x3c8] sm:$0xff]  ;;  %v5176_v59 = vcombine.low %v1076_v47, %v1080_v48 }
 0x11f   : > { %2586 = vmatmul.mubr.bf16.vlgmr.msra.gmra.mxu1 %v6990_v60  ;;  %2596 = vmatprep.subr.bf16.mxu0 %v5097_v61  ;;  %v1072_v55 = vld [vmem:[%s6883_s15 + $0x3e8] sm:$0xff] }
 0x120   : > { %2636 = vmatpush1.bf16.msra.mxu1 %v5232_v28  ;;  %2667 = vmatprep.mubr.bf16.mxu1 %v6943_v42  ;;  %v1196_v56 = vld [vmem:[%s6883_s15 + $0x7c8] sm:$0xff]  ;;  %v5169_v25 = vcombine.high %v1068_v54, %v1072_v55  ;;  %v5168_v1 = vcombine.low %v1068_v54, %v1072_v55 }
 0x121   : > { %2637 = vmatprep.subr.bf16.mxu1 %v5225_v62  ;;  %v1200_v57 = vld [vmem:[%s6883_s15 + $0x7e8] sm:$0xff] }
 0x122   : > { %2597 = vmatpush1.bf16.msra.mxu0 %v5096_v3  ;;  %v5297_v28 = vcombine.high %v1196_v56, %v1200_v57  ;;  %v1060_v61 = vld [vmem:[%s6883_s15 + $0x388] sm:$0xff]  ;;  %v5296_v2 = vcombine.low %v1196_v56, %v1200_v57 }
 0x123   : > { %2598 = vmatprep.subr.bf16.mxu0 %v5089_v5  ;;  %v1064_v62 = vld [vmem:[%s6883_s15 + $0x3a8] sm:$0xff] }
 0x124   : > { %2638 = vmatpush1.bf16.msra.mxu1 %v5224_v4  ;;  %v1188_v63 = vld [vmem:[%s6883_s15 + $0x788] sm:$0xff]  ;;  %v5161_v3 = vcombine.high %v1060_v61, %v1064_v62  ;;  %v5160_v10 = vcombine.low %v1060_v61, %v1064_v62  ;;  %v1133_v61 = vld [vmem:[%s6883_s15 + $0x5d0] sm:$0xff] }
 0x125   : > { %2639 = vmatprep.subr.bf16.mxu1 %v5217_v7  ;;  %v1192_v0 = vld [vmem:[%s6883_s15 + $0x7a8] sm:$0xff]  ;;  %v1137_v62 = vld [vmem:[%s6883_s15 + $0x5f0] sm:$0xff] }
 0x126   : > { %2599 = vmatpush1.bf16.msra.mxu0 %v5088_v12  ;;  %v5289_v4 = vcombine.high %v1188_v63, %v1192_v0  ;;  %v1052_v5 = vld [vmem:[%s6883_s15 + $0x348] sm:$0xff]  ;;  %v5288_v11 = vcombine.low %v1188_v63, %v1192_v0 }
 0x127   : > { %2600 = vmatprep.subr.bf16.mxu0 %v5081_v14  ;;  %v1056_v7 = vld [vmem:[%s6883_s15 + $0x368] sm:$0xff] }
 0x128   : > { %2640 = vmatpush1.bf16.msra.mxu1 %v5216_v13  ;;  %v1180_v8 = vld [vmem:[%s6883_s15 + $0x748] sm:$0xff]  ;;  %v5153_v12 = vcombine.high %v1052_v5, %v1056_v7  ;;  %v5152_v19 = vcombine.low %v1052_v5, %v1056_v7  ;;  %v1125_v5 = vld [vmem:[%s6883_s15 + $0x590] sm:$0xff] }
 0x129   : > { %2641 = vmatprep.subr.bf16.mxu1 %v5209_v15  ;;  %v1184_v9 = vld [vmem:[%s6883_s15 + $0x768] sm:$0xff]  ;;  %v1129_v7 = vld [vmem:[%s6883_s15 + $0x5b0] sm:$0xff] }
 0x12a   : > { %2601 = vmatpush1.bf16.msra.mxu0 %v5080_v21  ;;  %v5281_v13 = vcombine.high %v1180_v8, %v1184_v9  ;;  %v1044_v14 = vld [vmem:[%s6883_s15 + $0x308] sm:$0xff]  ;;  %v5280_v20 = vcombine.low %v1180_v8, %v1184_v9  ;;  %v5234_v9 = vcombine.low %v1133_v61, %v1137_v62 }
 0x12b   : > { %2602 = vmatprep.subr.bf16.mxu0 %v5073_v23  ;;  %v1048_v15 = vld [vmem:[%s6883_s15 + $0x328] sm:$0xff] }
 0x12c   : > { %2642 = vmatpush1.bf16.msra.mxu1 %v5208_v22  ;;  %v1172_v17 = vld [vmem:[%s6883_s15 + $0x708] sm:$0xff]  ;;  %v5145_v21 = vcombine.high %v1044_v14, %v1048_v15  ;;  %v5144_v29 = vcombine.low %v1044_v14, %v1048_v15  ;;  %v1117_v14 = vld [vmem:[%s6883_s15 + $0x550] sm:$0xff] }
 0x12d   : > { %2643 = vmatprep.subr.bf16.mxu1 %v5201_v24  ;;  %v1176_v18 = vld [vmem:[%s6883_s15 + $0x728] sm:$0xff]  ;;  %v1121_v15 = vld [vmem:[%s6883_s15 + $0x570] sm:$0xff] }
 0x12e   : > { %2603 = vmatpush1.bf16.msra.mxu0 %v5072_v31  ;;  %v5273_v22 = vcombine.high %v1172_v17, %v1176_v18  ;;  %v1036_v23 = vld [vmem:[%s6883_s15 + $0x2c8] sm:$0xff]  ;;  %v5272_v30 = vcombine.low %v1172_v17, %v1176_v18  ;;  %v5226_v18 = vcombine.low %v1125_v5, %v1129_v7 }
 0x12f   : > { %2604 = vmatprep.subr.bf16.mxu0 %v5065_v33  ;;  %v1040_v24 = vld [vmem:[%s6883_s15 + $0x2e8] sm:$0xff] }
 0x130   : > { %2644 = vmatpush1.bf16.msra.mxu1 %v5200_v32  ;;  %v1164_v26 = vld [vmem:[%s6883_s15 + $0x6c8] sm:$0xff]  ;;  %v5137_v31 = vcombine.high %v1036_v23, %v1040_v24  ;;  %v5136_v38 = vcombine.low %v1036_v23, %v1040_v24  ;;  %v1109_v23 = vld [vmem:[%s6883_s15 + $0x510] sm:$0xff] }
 0x131   : > { %2645 = vmatprep.subr.bf16.mxu1 %v5193_v34  ;;  %v1168_v27 = vld [vmem:[%s6883_s15 + $0x6e8] sm:$0xff]  ;;  %v1113_v24 = vld [vmem:[%s6883_s15 + $0x530] sm:$0xff] }
 0x132   : > { %2605 = vmatpush1.bf16.msra.mxu0 %v5064_v40  ;;  %v5265_v32 = vcombine.high %v1164_v26, %v1168_v27  ;;  %v1028_v33 = vld [vmem:[%s6883_s15 + $0x288] sm:$0xff]  ;;  %v5264_v39 = vcombine.low %v1164_v26, %v1168_v27  ;;  %v5218_v27 = vcombine.low %v1117_v14, %v1121_v15 }
 0x133   : > { %2606 = vmatprep.subr.bf16.mxu0 %v5057_v43  ;;  %v1032_v34 = vld [vmem:[%s6883_s15 + $0x2a8] sm:$0xff] }
 0x134   : > { %2646 = vmatpush1.bf16.msra.mxu1 %v5192_v41  ;;  %v1156_v35 = vld [vmem:[%s6883_s15 + $0x688] sm:$0xff]  ;;  %v5129_v40 = vcombine.high %v1028_v33, %v1032_v34  ;;  %v5128_v47 = vcombine.low %v1028_v33, %v1032_v34  ;;  %v1101_v33 = vld [vmem:[%s6883_s15 + $0x4d0] sm:$0xff] }
 0x135   : > { %2647 = vmatprep.subr.bf16.mxu1 %v5185_v44  ;;  %v1160_v37 = vld [vmem:[%s6883_s15 + $0x6a8] sm:$0xff]  ;;  %v1105_v34 = vld [vmem:[%s6883_s15 + $0x4f0] sm:$0xff] }
 0x136   : > { %2607 = vmatpush1.bf16.msra.mxu0 %v5056_v49  ;;  %v5257_v41 = vcombine.high %v1156_v35, %v1160_v37  ;;  %v1020_v43 = vld [vmem:[%s6883_s15 + $0x248] sm:$0xff]  ;;  %v5256_v48 = vcombine.low %v1156_v35, %v1160_v37  ;;  %v5210_v37 = vcombine.low %v1109_v23, %v1113_v24 }
 0x137   : > { %2608 = vmatprep.subr.bf16.mxu0 %v5049_v51  ;;  %v1024_v44 = vld [vmem:[%s6883_s15 + $0x268] sm:$0xff] }
 0x138   : > { %2648 = vmatpush1.bf16.msra.mxu1 %v5184_v50  ;;  %v1148_v45 = vld [vmem:[%s6883_s15 + $0x648] sm:$0xff]  ;;  %v5121_v49 = vcombine.high %v1020_v43, %v1024_v44  ;;  %v5120_v56 = vcombine.low %v1020_v43, %v1024_v44  ;;  %v1093_v43 = vld [vmem:[%s6883_s15 + $0x490] sm:$0xff] }
 0x139   : > { %2649 = vmatprep.subr.bf16.mxu1 %v5177_v53  ;;  %v1152_v46 = vld [vmem:[%s6883_s15 + $0x668] sm:$0xff]  ;;  %v1097_v44 = vld [vmem:[%s6883_s15 + $0x4b0] sm:$0xff] }
 0x13a   : > { %2609 = vmatpush1.bf16.msra.mxu0 %v5048_v58  ;;  %v5249_v50 = vcombine.high %v1148_v45, %v1152_v46  ;;  %v1012_v51 = vld [vmem:[%s6883_s15 + $0x208] sm:$0xff]  ;;  %v5248_v57 = vcombine.low %v1148_v45, %v1152_v46  ;;  %v5202_v46 = vcombine.low %v1101_v33, %v1105_v34 }
 0x13b   : > { %2610 = vmatprep.subr.bf16.mxu0 %v5169_v25  ;;  %v1016_v53 = vld [vmem:[%s6883_s15 + $0x228] sm:$0xff]  ;;  %v1005_v25 = vld [vmem:[%s6883_s15 + $0x1d0] sm:$0xff] }
 0x13c   : > { %2650 = vmatpush1.bf16.msra.mxu1 %v5176_v59  ;;  %v1140_v54 = vld [vmem:[%s6883_s15 + $0x608] sm:$0xff]  ;;  %v5113_v58 = vcombine.high %v1012_v51, %v1016_v53  ;;  %v5112_v63 = vcombine.low %v1012_v51, %v1016_v53  ;;  %v1085_v51 = vld [vmem:[%s6883_s15 + $0x450] sm:$0xff] }
 0x13d   : > { %2651 = vmatprep.subr.bf16.mxu1 %v5297_v28  ;;  %v1144_v55 = vld [vmem:[%s6883_s15 + $0x628] sm:$0xff]  ;;  %v1009_v28 = vld [vmem:[%s6883_s15 + $0x1f0] sm:$0xff] }
 0x13e   : > { %2611 = vmatpush2.bf16.msra.mxu0 %v5168_v1  ;;  %v5241_v59 = vcombine.high %v1140_v54, %v1144_v55  ;;  %v5240_v0 = vcombine.low %v1140_v54, %v1144_v55  ;;  %v5107_v1 = vcombine.high %v1005_v25, %v1009_v28  ;;  %v5106_v8 = vcombine.low %v1005_v25, %v1009_v28  ;;  %v1089_v53 = vld [vmem:[%s6883_s15 + $0x470] sm:$0xff] }
 0x13f   : > { %2612 = vmatprep.subr.bf16.mxu0 %v5161_v3  ;;  %v997_v3 = vld [vmem:[%s6883_s15 + $0x190] sm:$0xff]  ;;  %v5194_v55 = vcombine.low %v1093_v43, %v1097_v44 }
 0x140   : > { %2652 = vmatpush2.bf16.msra.mxu1 %v5296_v2  ;;  %v5235_v2 = vcombine.high %v1133_v61, %v1137_v62  ;;  %v1077_v25 = vld [vmem:[%s6883_s15 + $0x410] sm:$0xff]  ;;  %v5186_v62 = vcombine.low %v1085_v51, %v1089_v53 }
 0x141   : > { %2653 = vmatprep.subr.bf16.mxu1 %v5289_v4  ;;  %v1001_v4 = vld [vmem:[%s6883_s15 + $0x1b0] sm:$0xff] }
 0x142   : > { %2613 = vmatpush2.bf16.msra.mxu0 %v5160_v10  ;;  %v5099_v10 = vcombine.high %v997_v3, %v1001_v4  ;;  %v5098_v17 = vcombine.low %v997_v3, %v1001_v4  ;;  %v1081_v28 = vld [vmem:[%s6883_s15 + $0x430] sm:$0xff] }
 0x143   : > { %2614 = vmatprep.subr.bf16.mxu0 %v5153_v12  ;;  %v989_v12 = vld [vmem:[%s6883_s15 + $0x150] sm:$0xff] }
 0x144   : > { %2654 = vmatpush2.bf16.msra.mxu1 %v5288_v11  ;;  %v5227_v11 = vcombine.high %v1125_v5, %v1129_v7  ;;  %v1197_v3 = vld [vmem:[%s6883_s15 + $0x7d0] sm:$0xff]  ;;  %v5178_v7 = vcombine.low %v1077_v25, %v1081_v28 }
 0x145   : > { %2655 = vmatprep.subr.bf16.mxu1 %v5281_v13  ;;  %v993_v13 = vld [vmem:[%s6883_s15 + $0x170] sm:$0xff] }
 0x146   : > { %2615 = vmatpush2.bf16.msra.mxu0 %v5152_v19  ;;  %v5091_v19 = vcombine.high %v989_v12, %v993_v13  ;;  %v5090_v26 = vcombine.low %v989_v12, %v993_v13  ;;  %v1201_v4 = vld [vmem:[%s6883_s15 + $0x7f0] sm:$0xff] }
 0x147   : > { %2616 = vmatprep.subr.bf16.mxu0 %v5145_v21  ;;  %v981_v21 = vld [vmem:[%s6883_s15 + $0x110] sm:$0xff] }
 0x148   : > { %2656 = vmatpush2.bf16.msra.mxu1 %v5280_v20  ;;  %v5219_v20 = vcombine.high %v1117_v14, %v1121_v15  ;;  %v1189_v12 = vld [vmem:[%s6883_s15 + $0x790] sm:$0xff]  ;;  %v5298_v15 = vcombine.low %v1197_v3, %v1201_v4 }
 0x149   : > { %2657 = vmatprep.subr.bf16.mxu1 %v5273_v22  ;;  %v985_v22 = vld [vmem:[%s6883_s15 + $0x130] sm:$0xff] }
 0x14a   : > { %2617 = vmatpush2.bf16.msra.mxu0 %v5144_v29  ;;  %v5083_v29 = vcombine.high %v981_v21, %v985_v22  ;;  %v5082_v35 = vcombine.low %v981_v21, %v985_v22  ;;  %v1193_v13 = vld [vmem:[%s6883_s15 + $0x7b0] sm:$0xff] }
 0x14b   : > { %2618 = vmatprep.subr.bf16.mxu0 %v5137_v31  ;;  %v973_v31 = vld [vmem:[%s6883_s15 + $0xd0] sm:$0xff] }
 0x14c   : > { %2658 = vmatpush2.bf16.msra.mxu1 %v5272_v30  ;;  %v5211_v30 = vcombine.high %v1109_v23, %v1113_v24  ;;  %v1181_v21 = vld [vmem:[%s6883_s15 + $0x750] sm:$0xff]  ;;  %v5290_v24 = vcombine.low %v1189_v12, %v1193_v13 }
 0x14d   : > { %2659 = vmatprep.subr.bf16.mxu1 %v5265_v32  ;;  %v977_v32 = vld [vmem:[%s6883_s15 + $0xf0] sm:$0xff] }
 0x14e   : > { %2619 = vmatpush2.bf16.msra.mxu0 %v5136_v38  ;;  %v5075_v38 = vcombine.high %v973_v31, %v977_v32  ;;  %v5074_v45 = vcombine.low %v973_v31, %v977_v32  ;;  %v1185_v22 = vld [vmem:[%s6883_s15 + $0x770] sm:$0xff] }
 0x14f   : > { %2620 = vmatprep.subr.bf16.mxu0 %v5129_v40  ;;  %v965_v40 = vld [vmem:[%s6883_s15 + $0x90] sm:$0xff] }
 0x150   : > { %2660 = vmatpush2.bf16.msra.mxu1 %v5264_v39  ;;  %v5203_v39 = vcombine.high %v1101_v33, %v1105_v34  ;;  %v1173_v31 = vld [vmem:[%s6883_s15 + $0x710] sm:$0xff]  ;;  %v5282_v34 = vcombine.low %v1181_v21, %v1185_v22 }
 0x151   : > { %2661 = vmatprep.subr.bf16.mxu1 %v5257_v41  ;;  %v969_v41 = vld [vmem:[%s6883_s15 + $0xb0] sm:$0xff] }
 0x152   : > { %2621 = vmatpush2.bf16.msra.mxu0 %v5128_v47  ;;  %v5067_v47 = vcombine.high %v965_v40, %v969_v41  ;;  %v5066_v54 = vcombine.low %v965_v40, %v969_v41  ;;  %v1177_v32 = vld [vmem:[%s6883_s15 + $0x730] sm:$0xff] }
 0x153   : > { %2622 = vmatprep.subr.bf16.mxu0 %v5121_v49  ;;  %v957_v49 = vld [vmem:[%s6883_s15 + $0x50] sm:$0xff] }
 0x154   : > { %2662 = vmatpush2.bf16.msra.mxu1 %v5256_v48  ;;  %v5195_v48 = vcombine.high %v1093_v43, %v1097_v44  ;;  %v1165_v40 = vld [vmem:[%s6883_s15 + $0x6d0] sm:$0xff]  ;;  %v5274_v44 = vcombine.low %v1173_v31, %v1177_v32 }
 0x155   : > { %2663 = vmatprep.subr.bf16.mxu1 %v5249_v50  ;;  %v961_v50 = vld [vmem:[%s6883_s15 + $0x70] sm:$0xff] }
 0x156   : > { %2623 = vmatpush2.bf16.msra.mxu0 %v5120_v56  ;;  %v5059_v56 = vcombine.high %v957_v49, %v961_v50  ;;  %v5058_v61 = vcombine.low %v957_v49, %v961_v50  ;;  %v1169_v41 = vld [vmem:[%s6883_s15 + $0x6f0] sm:$0xff] }
 0x157   : > { %2624 = vmatprep.subr.bf16.mxu0 %v5113_v58  ;;  %v949_v58 = vld [vmem:[%s6883_s15 + $0x10] sm:$0xff] }
 0x158   : > { %2664 = vmatpush2.bf16.msra.mxu1 %v5248_v57  ;;  %v5187_v57 = vcombine.high %v1085_v51, %v1089_v53  ;;  %v1157_v49 = vld [vmem:[%s6883_s15 + $0x690] sm:$0xff]  ;;  %v5266_v53 = vcombine.low %v1165_v40, %v1169_v41 }
 0x159   : > { %2665 = vmatprep.subr.bf16.mxu1 %v5241_v59  ;;  %v953_v59 = vld [vmem:[%s6883_s15 + $0x30] sm:$0xff] }
 0x15a   : > { %2625 = vmatpush2.bf16.msra.mxu0 %v5112_v63  ;;  %v5051_v63 = vcombine.high %v949_v58, %v953_v59  ;;  %v5050_v5 = vcombine.low %v949_v58, %v953_v59  ;;  %v1161_v50 = vld [vmem:[%s6883_s15 + $0x6b0] sm:$0xff] }
 0x15b   : > { %2676 = vmatprep.subr.bf16.mxu0 %v5107_v1  ;;  %v1069_v1 = vld [vmem:[%s6883_s15 + $0x3d0] sm:$0xff] }
 0x15c   : > { %2666 = vmatpush2.bf16.msra.mxu1 %v5240_v0  ;;  %v5179_v0 = vcombine.high %v1077_v25, %v1081_v28  ;;  %v1149_v58 = vld [vmem:[%s6883_s15 + $0x650] sm:$0xff]  ;;  %v5258_v28 = vcombine.low %v1157_v49, %v1161_v50 }
 0x15d   : > { %2717 = vmatprep.subr.bf16.mxu1 %v5235_v2  ;;  %2627 = vmatmul.mubr.bf16.vlgmr.msra.gmra.mxu0 %v6982_v52  ;;  %v1073_v2 = vld [vmem:[%s6883_s15 + $0x3f0] sm:$0xff] }
 0x15e   : > { %2677 = vmatpush1.bf16.msra.mxu0 %v5106_v8  ;;  %2708 = vmatprep.mubr.bf16.mxu0 %v6936_v36  ;;  %v5171_v8 = vcombine.high %v1069_v1, %v1073_v2  ;;  %v5170_v14 = vcombine.low %v1069_v1, %v1073_v2  ;;  %v1153_v59 = vld [vmem:[%s6883_s15 + $0x670] sm:$0xff] }
 0x15f   : > { %2668 = vmatmul.mubr.bf16.vlgmr.msra.gmra.mxu1 %v6990_v60  ;;  %2678 = vmatprep.subr.bf16.mxu0 %v5099_v10  ;;  %v1061_v10 = vld [vmem:[%s6883_s15 + $0x390] sm:$0xff] }
 0x160   : > { %2718 = vmatpush1.bf16.msra.mxu1 %v5234_v9  ;;  %2749 = vmatprep.mubr.bf16.mxu1 %v6943_v42  ;;  %v5299_v9 = vcombine.high %v1197_v3, %v1201_v4  ;;  %v1141_v1 = vld [vmem:[%s6883_s15 + $0x610] sm:$0xff]  ;;  %v5250_v4 = vcombine.low %v1149_v58, %v1153_v59 }
 0x161   : > { %2719 = vmatprep.subr.bf16.mxu1 %v5227_v11  ;;  %v1065_v11 = vld [vmem:[%s6883_s15 + $0x3b0] sm:$0xff] }
 0x162   : > { %2679 = vmatpush1.bf16.msra.mxu0 %v5098_v17  ;;  %v5163_v17 = vcombine.high %v1061_v10, %v1065_v11  ;;  %v5162_v23 = vcombine.low %v1061_v10, %v1065_v11  ;;  %v1145_v2 = vld [vmem:[%s6883_s15 + $0x630] sm:$0xff]  ;;  %v1134_v10 = vld [vmem:[%s6883_s15 + $0x5d8] sm:$0xff] }
 0x163   : > { %2680 = vmatprep.subr.bf16.mxu0 %v5091_v19  ;;  %v1053_v19 = vld [vmem:[%s6883_s15 + $0x350] sm:$0xff]  ;;  %v1138_v11 = vld [vmem:[%s6883_s15 + $0x5f8] sm:$0xff] }
 0x164   : > { %2720 = vmatpush1.bf16.msra.mxu1 %v5226_v18  ;;  %v5291_v18 = vcombine.high %v1189_v12, %v1193_v13  ;;  %v5242_v13 = vcombine.low %v1141_v1, %v1145_v2 }
 0x165   : > { %2721 = vmatprep.subr.bf16.mxu1 %v5219_v20  ;;  %v1057_v20 = vld [vmem:[%s6883_s15 + $0x370] sm:$0xff] }
 0x166   : > { %2681 = vmatpush1.bf16.msra.mxu0 %v5090_v26  ;;  %v5155_v26 = vcombine.high %v1053_v19, %v1057_v20  ;;  %v5154_v33 = vcombine.low %v1053_v19, %v1057_v20  ;;  %v1126_v19 = vld [vmem:[%s6883_s15 + $0x598] sm:$0xff] }
 0x167   : > { %2682 = vmatprep.subr.bf16.mxu0 %v5083_v29  ;;  %v1045_v29 = vld [vmem:[%s6883_s15 + $0x310] sm:$0xff]  ;;  %v1130_v20 = vld [vmem:[%s6883_s15 + $0x5b8] sm:$0xff] }
 0x168   : > { %2722 = vmatpush1.bf16.msra.mxu1 %v5218_v27  ;;  %v5283_v27 = vcombine.high %v1181_v21, %v1185_v22  ;;  %v5236_v22 = vcombine.low %v1134_v10, %v1138_v11 }
 0x169   : > { %2723 = vmatprep.subr.bf16.mxu1 %v5211_v30  ;;  %v1049_v30 = vld [vmem:[%s6883_s15 + $0x330] sm:$0xff] }
 0x16a   : > { %2683 = vmatpush1.bf16.msra.mxu0 %v5082_v35  ;;  %v5147_v35 = vcombine.high %v1045_v29, %v1049_v30  ;;  %v5146_v43 = vcombine.low %v1045_v29, %v1049_v30  ;;  %v1118_v29 = vld [vmem:[%s6883_s15 + $0x558] sm:$0xff] }
 0x16b   : > { %2684 = vmatprep.subr.bf16.mxu0 %v5075_v38  ;;  %v1037_v38 = vld [vmem:[%s6883_s15 + $0x2d0] sm:$0xff]  ;;  %v1122_v30 = vld [vmem:[%s6883_s15 + $0x578] sm:$0xff] }
 0x16c   : > { %2724 = vmatpush1.bf16.msra.mxu1 %v5210_v37  ;;  %v5275_v37 = vcombine.high %v1173_v31, %v1177_v32  ;;  %v5228_v32 = vcombine.low %v1126_v19, %v1130_v20 }
 0x16d   : > { %2725 = vmatprep.subr.bf16.mxu1 %v5203_v39  ;;  %v1041_v39 = vld [vmem:[%s6883_s15 + $0x2f0] sm:$0xff] }
 0x16e   : > { %2685 = vmatpush1.bf16.msra.mxu0 %v5074_v45  ;;  %v5139_v45 = vcombine.high %v1037_v38, %v1041_v39  ;;  %v5138_v51 = vcombine.low %v1037_v38, %v1041_v39  ;;  %v1110_v38 = vld [vmem:[%s6883_s15 + $0x518] sm:$0xff] }
 0x16f   : > { %2686 = vmatprep.subr.bf16.mxu0 %v5067_v47  ;;  %v1029_v47 = vld [vmem:[%s6883_s15 + $0x290] sm:$0xff]  ;;  %v1114_v39 = vld [vmem:[%s6883_s15 + $0x538] sm:$0xff] }
 0x170   : > { %2726 = vmatpush1.bf16.msra.mxu1 %v5202_v46  ;;  %v5267_v46 = vcombine.high %v1165_v40, %v1169_v41  ;;  %v5220_v41 = vcombine.low %v1118_v29, %v1122_v30 }
 0x171   : > { %2727 = vmatprep.subr.bf16.mxu1 %v5195_v48  ;;  %v1033_v48 = vld [vmem:[%s6883_s15 + $0x2b0] sm:$0xff] }
 0x172   : > { %2687 = vmatpush1.bf16.msra.mxu0 %v5066_v54  ;;  %v5131_v54 = vcombine.high %v1029_v47, %v1033_v48  ;;  %v5130_v25 = vcombine.low %v1029_v47, %v1033_v48  ;;  %v1102_v47 = vld [vmem:[%s6883_s15 + $0x4d8] sm:$0xff] }
 0x173   : > { %2688 = vmatprep.subr.bf16.mxu0 %v5059_v56  ;;  %v1021_v56 = vld [vmem:[%s6883_s15 + $0x250] sm:$0xff] }
 0x174   : > { %2728 = vmatpush1.bf16.msra.mxu1 %v5194_v55  ;;  %v5259_v55 = vcombine.high %v1157_v49, %v1161_v50 }
 0x175   : > { %2729 = vmatprep.subr.bf16.mxu1 %v5187_v57  ;;  %v1025_v57 = vld [vmem:[%s6883_s15 + $0x270] sm:$0xff] }
 0x176   : > { %2689 = vmatpush1.bf16.msra.mxu0 %v5058_v61  ;;  %v5123_v61 = vcombine.high %v1021_v56, %v1025_v57  ;;  %v5122_v3 = vcombine.low %v1021_v56, %v1025_v57 }
 0x177   : > { %2690 = vmatprep.subr.bf16.mxu0 %v5051_v63  ;;  %v1013_v63 = vld [vmem:[%s6883_s15 + $0x210] sm:$0xff] }
 0x178   : > { %2730 = vmatpush1.bf16.msra.mxu1 %v5186_v62  ;;  %v5251_v62 = vcombine.high %v1149_v58, %v1153_v59 }
 0x179   : > { %2731 = vmatprep.subr.bf16.mxu1 %v5179_v0  ;;  %v1017_v0 = vld [vmem:[%s6883_s15 + $0x230] sm:$0xff] }
 0x17a   : > { %2691 = vmatpush1.bf16.msra.mxu0 %v5050_v5  ;;  %v5115_v5 = vcombine.high %v1013_v63, %v1017_v0  ;;  %v5114_v12 = vcombine.low %v1013_v63, %v1017_v0 }
 0x17b   : > { %2692 = vmatprep.subr.bf16.mxu0 %v5171_v8  ;;  %v1006_v8 = vld [vmem:[%s6883_s15 + $0x1d8] sm:$0xff] }
 0x17c   : > { %2732 = vmatpush1.bf16.msra.mxu1 %v5178_v7  ;;  %v5243_v7 = vcombine.high %v1141_v1, %v1145_v2 }
 0x17d   : > { %2733 = vmatprep.subr.bf16.mxu1 %v5299_v9  ;;  %v1010_v9 = vld [vmem:[%s6883_s15 + $0x1f8] sm:$0xff] }
 0x17e   : > { %2693 = vmatpush2.bf16.msra.mxu0 %v5170_v14  ;;  %v5109_v14 = vcombine.high %v1006_v8, %v1010_v9  ;;  %v5108_v21 = vcombine.low %v1006_v8, %v1010_v9 }
 0x17f   : > { %2694 = vmatprep.subr.bf16.mxu0 %v5163_v17  ;;  %v998_v17 = vld [vmem:[%s6883_s15 + $0x198] sm:$0xff] }
 0x180   : > { %2734 = vmatpush2.bf16.msra.mxu1 %v5298_v15  ;;  %v5237_v15 = vcombine.high %v1134_v10, %v1138_v11 }
 0x181   : > { %2735 = vmatprep.subr.bf16.mxu1 %v5291_v18  ;;  %v1002_v18 = vld [vmem:[%s6883_s15 + $0x1b8] sm:$0xff] }
 0x182   : > { %2695 = vmatpush2.bf16.msra.mxu0 %v5162_v23  ;;  %v5101_v23 = vcombine.high %v998_v17, %v1002_v18  ;;  %v5100_v31 = vcombine.low %v998_v17, %v1002_v18 }
 0x183   : > { %2696 = vmatprep.subr.bf16.mxu0 %v5155_v26  ;;  %v990_v26 = vld [vmem:[%s6883_s15 + $0x158] sm:$0xff] }
 0x184   : > { %2736 = vmatpush2.bf16.msra.mxu1 %v5290_v24  ;;  %v5229_v24 = vcombine.high %v1126_v19, %v1130_v20 }
 0x185   : > { %2737 = vmatprep.subr.bf16.mxu1 %v5283_v27  ;;  %v994_v27 = vld [vmem:[%s6883_s15 + $0x178] sm:$0xff] }
 0x186   : > { %2697 = vmatpush2.bf16.msra.mxu0 %v5154_v33  ;;  %v5093_v33 = vcombine.high %v990_v26, %v994_v27  ;;  %v5092_v40 = vcombine.low %v990_v26, %v994_v27 }
 0x187   : > { %2698 = vmatprep.subr.bf16.mxu0 %v5147_v35  ;;  %v982_v35 = vld [vmem:[%s6883_s15 + $0x118] sm:$0xff] }
 0x188   : > { %2738 = vmatpush2.bf16.msra.mxu1 %v5282_v34  ;;  %v5221_v34 = vcombine.high %v1118_v29, %v1122_v30 }
 0x189   : > { %2739 = vmatprep.subr.bf16.mxu1 %v5275_v37  ;;  %v986_v37 = vld [vmem:[%s6883_s15 + $0x138] sm:$0xff] }
 0x18a   : > { %2699 = vmatpush2.bf16.msra.mxu0 %v5146_v43  ;;  %v5085_v43 = vcombine.high %v982_v35, %v986_v37  ;;  %v5084_v48 = vcombine.low %v982_v35, %v986_v37 }
 0x18b   : > { %2700 = vmatprep.subr.bf16.mxu0 %v5139_v45  ;;  %v974_v45 = vld [vmem:[%s6883_s15 + $0xd8] sm:$0xff] }
 0x18c   : > { %2740 = vmatpush2.bf16.msra.mxu1 %v5274_v44  ;;  %v5213_v44 = vcombine.high %v1110_v38, %v1114_v39 }
 0x18d   : > { %2741 = vmatprep.subr.bf16.mxu1 %v5267_v46  ;;  %v978_v46 = vld [vmem:[%s6883_s15 + $0xf8] sm:$0xff] }
 0x18e   : > { %2701 = vmatpush2.bf16.msra.mxu0 %v5138_v51  ;;  %v5077_v49 = vcombine.high %v974_v45, %v978_v46  ;;  %v966_v51 = vld [vmem:[%s6883_s15 + $0x98] sm:$0xff]  ;;  %v5076_v56 = vcombine.low %v974_v45, %v978_v46 }
 0x18f   : > { %2702 = vmatprep.subr.bf16.mxu0 %v5131_v54  ;;  %v1094_v54 = vld [vmem:[%s6883_s15 + $0x498] sm:$0xff] }
 0x190   : > { %2742 = vmatpush2.bf16.msra.mxu1 %v5266_v53  ;;  %v970_v53 = vld [vmem:[%s6883_s15 + $0xb8] sm:$0xff] }
 0x191   : > { %2743 = vmatprep.subr.bf16.mxu1 %v5259_v55  ;;  %v1098_v55 = vld [vmem:[%s6883_s15 + $0x4b8] sm:$0xff]  ;;  %v5069_v58 = vcombine.high %v966_v51, %v970_v53  ;;  %v5068_v63 = vcombine.low %v966_v51, %v970_v53 }
 0x192   : > { %2703 = vmatpush2.bf16.msra.mxu0 %v5130_v25  ;;  %v5197_v59 = vcombine.high %v1094_v54, %v1098_v55  ;;  %v958_v25 = vld [vmem:[%s6883_s15 + $0x58] sm:$0xff]  ;;  %v5196_v0 = vcombine.low %v1094_v54, %v1098_v55 }
 0x193   : > { %2704 = vmatprep.subr.bf16.mxu0 %v5123_v61  ;;  %v1086_v61 = vld [vmem:[%s6883_s15 + $0x458] sm:$0xff] }
 0x194   : > { %2744 = vmatpush2.bf16.msra.mxu1 %v5258_v28  ;;  %v962_v28 = vld [vmem:[%s6883_s15 + $0x78] sm:$0xff] }
 0x195   : > { %2745 = vmatprep.subr.bf16.mxu1 %v5251_v62  ;;  %v1090_v62 = vld [vmem:[%s6883_s15 + $0x478] sm:$0xff]  ;;  %v5061_v1 = vcombine.high %v958_v25, %v962_v28  ;;  %v5060_v8 = vcombine.low %v958_v25, %v962_v28 }
 0x196   : > { %2705 = vmatpush2.bf16.msra.mxu0 %v5122_v3  ;;  %v5189_v2 = vcombine.high %v1086_v61, %v1090_v62  ;;  %v950_v3 = vld [vmem:[%s6883_s15 + $0x18] sm:$0xff]  ;;  %v5188_v9 = vcombine.low %v1086_v61, %v1090_v62 }
 0x197   : > { %2706 = vmatprep.subr.bf16.mxu0 %v5115_v5  ;;  %v1078_v5 = vld [vmem:[%s6883_s15 + $0x418] sm:$0xff] }
 0x198   : > { %2746 = vmatpush2.bf16.msra.mxu1 %v5250_v4  ;;  %v954_v4 = vld [vmem:[%s6883_s15 + $0x38] sm:$0xff] }
 0x199   : > { %2747 = vmatprep.subr.bf16.mxu1 %v5243_v7  ;;  %v1082_v7 = vld [vmem:[%s6883_s15 + $0x438] sm:$0xff]  ;;  %v5053_v10 = vcombine.high %v950_v3, %v954_v4  ;;  %v5052_v17 = vcombine.low %v950_v3, %v954_v4 }
 0x19a   : > { %2707 = vmatpush2.bf16.msra.mxu0 %v5114_v12  ;;  %v5181_v11 = vcombine.high %v1078_v5, %v1082_v7  ;;  %v1070_v12 = vld [vmem:[%s6883_s15 + $0x3d8] sm:$0xff]  ;;  %v5180_v18 = vcombine.low %v1078_v5, %v1082_v7 }
 0x19b   : > { %2758 = vmatprep.subr.bf16.mxu0 %v5109_v14  ;;  %v1198_v14 = vld [vmem:[%s6883_s15 + $0x7d8] sm:$0xff] }
 0x19c   : > { %2748 = vmatpush2.bf16.msra.mxu1 %v5242_v13  ;;  %v1074_v13 = vld [vmem:[%s6883_s15 + $0x3f8] sm:$0xff] }
 0x19d   : > { %2799 = vmatprep.subr.bf16.mxu1 %v5237_v15  ;;  %2709 = vmatmul.mubr.bf16.vlgmr.msra.gmra.mxu0 %v6982_v52  ;;  %v1202_v15 = vld [vmem:[%s6883_s15 + $0x7f8] sm:$0xff]  ;;  %v5173_v19 = vcombine.high %v1070_v12, %v1074_v13  ;;  %v5172_v26 = vcombine.low %v1070_v12, %v1074_v13 }
 0x19e   : > { %2759 = vmatpush1.bf16.msra.mxu0 %v5108_v21  ;;  %2790 = vmatprep.mubr.bf16.mxu0 %v6936_v36  ;;  %v1106_v36 = vld [vmem:[%s6883_s15 + $0x4f8] sm:$0xff]  ;;  %v5301_v20 = vcombine.high %v1198_v14, %v1202_v15  ;;  %v5300_v27 = vcombine.low %v1198_v14, %v1202_v15 }
 0x19f   : > { %2750 = vmatmul.mubr.bf16.vlgmr.msra.gmra.mxu1 %v6990_v60  ;;  %2760 = vmatprep.subr.bf16.mxu0 %v5101_v23  ;;  %v5205_v50 = vcombine.high %v1102_v47, %v1106_v36  ;;  %v5204_v57 = vcombine.low %v1102_v47, %v1106_v36  ;;  %v1062_v21 = vld [vmem:[%s6883_s15 + $0x398] sm:$0xff] }
 0x1a0   : > { %2800 = vmatpush1.bf16.msra.mxu1 %v5236_v22  ;;  %2831 = vmatprep.mubr.bf16.mxu1 %v6943_v42  ;;  %v5212_v42 = vcombine.low %v1110_v38, %v1114_v39  ;;  %v1066_v22 = vld [vmem:[%s6883_s15 + $0x3b8] sm:$0xff] }
 0x1a1   : > { %2801 = vmatprep.subr.bf16.mxu1 %v5229_v24  ;;  %v1190_v23 = vld [vmem:[%s6883_s15 + $0x798] sm:$0xff]  ;;  %v5165_v29 = vcombine.high %v1062_v21, %v1066_v22  ;;  %v5164_v35 = vcombine.low %v1062_v21, %v1066_v22 }
 0x1a2   : > { %2761 = vmatpush1.bf16.msra.mxu0 %v5100_v31  ;;  %v1194_v24 = vld [vmem:[%s6883_s15 + $0x7b8] sm:$0xff] }
 0x1a3   : > { %2762 = vmatprep.subr.bf16.mxu0 %v5093_v33  ;;  %v5293_v30 = vcombine.high %v1190_v23, %v1194_v24  ;;  %v1054_v31 = vld [vmem:[%s6883_s15 + $0x358] sm:$0xff]  ;;  %v5292_v37 = vcombine.low %v1190_v23, %v1194_v24 }
 0x1a4   : > { %2802 = vmatpush1.bf16.msra.mxu1 %v5228_v32  ;;  %v1058_v32 = vld [vmem:[%s6883_s15 + $0x378] sm:$0xff] }
 0x1a5   : > { %2803 = vmatprep.subr.bf16.mxu1 %v5221_v34  ;;  %v1182_v33 = vld [vmem:[%s6883_s15 + $0x758] sm:$0xff]  ;;  %v5157_v38 = vcombine.high %v1054_v31, %v1058_v32  ;;  %v5156_v45 = vcombine.low %v1054_v31, %v1058_v32  ;;  %v6144_v32 = vmov 1983009808  }
 0x1a6   : > { %2763 = vmatpush1.bf16.msra.mxu0 %v5092_v40  ;;  %v1186_v34 = vld [vmem:[%s6883_s15 + $0x778] sm:$0xff] }
 0x1a7   : > { %2764 = vmatprep.subr.bf16.mxu0 %v5085_v43  ;;  %v5285_v39 = vcombine.high %v1182_v33, %v1186_v34  ;;  %v1046_v40 = vld [vmem:[%s6883_s15 + $0x318] sm:$0xff]  ;;  %v5284_v46 = vcombine.low %v1182_v33, %v1186_v34  ;;  %v2851_v33 = vunpack.c.l.s4 %v6144_v32 }
 0x1a8   : > { %2804 = vmatpush1.bf16.msra.mxu1 %v5220_v41  ;;  %v1050_v41 = vld [vmem:[%s6883_s15 + $0x338] sm:$0xff] }
 0x1a9   : > { %2805 = vmatprep.subr.bf16.mxu1 %v5213_v44  ;;  %v1174_v43 = vld [vmem:[%s6883_s15 + $0x718] sm:$0xff]  ;;  %v5149_v47 = vcombine.high %v1046_v40, %v1050_v41  ;;  %v5148_v51 = vcombine.low %v1046_v40, %v1050_v41  ;;  %v2852_v34 = vunpack.c.0.s8 %v2851_v33 }
 0x1aa   : > { %2765 = vmatpush1.bf16.msra.mxu0 %v5084_v48  ;;  %v1178_v44 = vld [vmem:[%s6883_s15 + $0x738] sm:$0xff] }
 0x1ab   : > { %2766 = vmatprep.subr.bf16.mxu0 %v5077_v49  ;;  %v5277_v36 = vcombine.high %v1174_v43, %v1178_v44  ;;  %v1038_v48 = vld [vmem:[%s6883_s15 + $0x2d8] sm:$0xff]  ;;  %v5276_v53 = vcombine.low %v1174_v43, %v1178_v44  ;;  %v7191_v40 = vsub.s32 %v2852_v34, %v6913_v16 }
 0x1ac   : > { %2806 = vmatpush1.bf16.msra.mxu1 %v5212_v42  ;;  %v1042_v42 = vld [vmem:[%s6883_s15 + $0x2f8] sm:$0xff] }
 0x1ad   : > { %2807 = vmatprep.subr.bf16.mxu1 %v5205_v50  ;;  %v1166_v49 = vld [vmem:[%s6883_s15 + $0x6d8] sm:$0xff]  ;;  %v5141_v54 = vcombine.high %v1038_v48, %v1042_v42  ;;  %v5140_v25 = vcombine.low %v1038_v48, %v1042_v42  ;;  %9096 = vst [vmem:[#allocation6_spill] sm:$0xff] %v7191_v40  ;;  %v944_v48 = vld [vmem:[#allocation2] sm:$0xff] }
 0x1ae   : > { %2767 = vmatpush1.bf16.msra.mxu0 %v5076_v56  ;;  %v1170_v50 = vld [vmem:[%s6883_s15 + $0x6f8] sm:$0xff] }
 0x1af   : > { %2768 = vmatprep.subr.bf16.mxu0 %v5069_v58  ;;  %v5269_v55 = vcombine.high %v1166_v49, %v1170_v50  ;;  %v1030_v56 = vld [vmem:[%s6883_s15 + $0x298] sm:$0xff]  ;;  %v5268_v28 = vcombine.low %v1166_v49, %v1170_v50 }
 0x1b0   : > { %2808 = vmatpush1.bf16.msra.mxu1 %v5204_v57  ;;  %v1034_v57 = vld [vmem:[%s6883_s15 + $0x2b8] sm:$0xff] }
 0x1b1   : > { %2809 = vmatprep.subr.bf16.mxu1 %v5197_v59  ;;  %v1158_v58 = vld [vmem:[%s6883_s15 + $0x698] sm:$0xff]  ;;  %v5133_v61 = vcombine.high %v1030_v56, %v1034_v57  ;;  %v5132_v3 = vcombine.low %v1030_v56, %v1034_v57 }
 0x1b2   : > { %2769 = vmatpush1.bf16.msra.mxu0 %v5068_v63  ;;  %v1162_v59 = vld [vmem:[%s6883_s15 + $0x6b8] sm:$0xff] }
 0x1b3   : > { %2770 = vmatprep.subr.bf16.mxu0 %v5061_v1  ;;  %v5261_v62 = vcombine.high %v1158_v58, %v1162_v59  ;;  %v1022_v63 = vld [vmem:[%s6883_s15 + $0x258] sm:$0xff]  ;;  %v5260_v4 = vcombine.low %v1158_v58, %v1162_v59 }
 0x1b4   : > { %2810 = vmatpush1.bf16.msra.mxu1 %v5196_v0  ;;  %v1026_v0 = vld [vmem:[%s6883_s15 + $0x278] sm:$0xff] }
 0x1b5   : > { %2811 = vmatprep.subr.bf16.mxu1 %v5189_v2  ;;  %v1150_v1 = vld [vmem:[%s6883_s15 + $0x658] sm:$0xff]  ;;  %v5125_v5 = vcombine.high %v1022_v63, %v1026_v0  ;;  %v5124_v12 = vcombine.low %v1022_v63, %v1026_v0 }
 0x1b6   : > { %2771 = vmatpush1.bf16.msra.mxu0 %v5060_v8  ;;  %v1154_v2 = vld [vmem:[%s6883_s15 + $0x678] sm:$0xff] }
 0x1b7   : > { %2772 = vmatprep.subr.bf16.mxu0 %v5053_v10  ;;  %v5253_v7 = vcombine.high %v1150_v1, %v1154_v2  ;;  %v1014_v8 = vld [vmem:[%s6883_s15 + $0x218] sm:$0xff]  ;;  %v5252_v13 = vcombine.low %v1150_v1, %v1154_v2 }
 0x1b8   : > { %2812 = vmatpush1.bf16.msra.mxu1 %v5188_v9  ;;  %v1018_v9 = vld [vmem:[%s6883_s15 + $0x238] sm:$0xff] }
 0x1b9   : > { %2813 = vmatprep.subr.bf16.mxu1 %v5181_v11  ;;  %v1142_v10 = vld [vmem:[%s6883_s15 + $0x618] sm:$0xff]  ;;  %v5117_v14 = vcombine.high %v1014_v8, %v1018_v9 }
 0x1ba   : > { %2773 = vmatpush1.bf16.msra.mxu0 %v5052_v17  ;;  %v1146_v11 = vld [vmem:[%s6883_s15 + $0x638] sm:$0xff]  ;;  %v5116_v17 = vcombine.low %v1014_v8, %v1018_v9 }
 0x1bb   : > { %2774 = vmatprep.subr.bf16.mxu0 %v5173_v19  ;;  %v5245_v15 = vcombine.high %v1142_v10, %v1146_v11 }
 0x1bc   : > { %2814 = vmatpush1.bf16.msra.mxu1 %v5180_v18  ;;  %v5244_v18 = vcombine.low %v1142_v10, %v1146_v11  ;;  %v945_v11 = vld [vmem:[#allocation2 + $0x8] sm:$0xff] }
 0x1bd   : > { %2815 = vmatprep.subr.bf16.mxu1 %v5301_v20 }
 0x1be   : > { %2775 = vmatpush2.bf16.msra.mxu0 %v5172_v26 }
 0x1bf   : > { %2776 = vmatprep.subr.bf16.mxu0 %v5165_v29 }
 0x1c0   : > { %2816 = vmatpush2.bf16.msra.mxu1 %v5300_v27 }
 0x1c1   : > { %2817 = vmatprep.subr.bf16.mxu1 %v5293_v30 }
 0x1c2   : > { %2777 = vmatpush2.bf16.msra.mxu0 %v5164_v35 }
 0x1c3   : > { %2778 = vmatprep.subr.bf16.mxu0 %v5157_v38 }
 0x1c4   : > { %2818 = vmatpush2.bf16.msra.mxu1 %v5292_v37 }
 0x1c5   : > { %2819 = vmatprep.subr.bf16.mxu1 %v5285_v39 }
 0x1c6   : > { %2779 = vmatpush2.bf16.msra.mxu0 %v5156_v45 }
 0x1c7   : > { %2780 = vmatprep.subr.bf16.mxu0 %v5149_v47 }
 0x1c8   : > { %2820 = vmatpush2.bf16.msra.mxu1 %v5284_v46 }
 0x1c9   : > { %2821 = vmatprep.subr.bf16.mxu1 %v5277_v36 }
 0x1ca   : > { %2781 = vmatpush2.bf16.msra.mxu0 %v5148_v51 }
 0x1cb   : > { %2782 = vmatprep.subr.bf16.mxu0 %v5141_v54 }
 0x1cc   : > { %2822 = vmatpush2.bf16.msra.mxu1 %v5276_v53 }
 0x1cd   : > { %2823 = vmatprep.subr.bf16.mxu1 %v5269_v55 }
 0x1ce   : > { %2783 = vmatpush2.bf16.msra.mxu0 %v5140_v25 }
 0x1cf   : > { %2784 = vmatprep.subr.bf16.mxu0 %v5133_v61 }
 0x1d0   : > { %2824 = vmatpush2.bf16.msra.mxu1 %v5268_v28 }
 0x1d1   : > { %2825 = vmatprep.subr.bf16.mxu1 %v5261_v62 }
 0x1d2   : > { %2785 = vmatpush2.bf16.msra.mxu0 %v5132_v3 }
 0x1d3   : > { %2786 = vmatprep.subr.bf16.mxu0 %v5125_v5 }
 0x1d4   : > { %2826 = vmatpush2.bf16.msra.mxu1 %v5260_v4 }
 0x1d5   : > { %2827 = vmatprep.subr.bf16.mxu1 %v5253_v7 }
 0x1d6   : > { %2787 = vmatpush2.bf16.msra.mxu0 %v5124_v12 }
 0x1d7   : > { %2788 = vmatprep.subr.bf16.mxu0 %v5117_v14 }
 0x1d8   : > { %2828 = vmatpush2.bf16.msra.mxu1 %v5252_v13 }
 0x1d9   : > { %2829 = vmatprep.subr.bf16.mxu1 %v5245_v15 }
 0x1da   : > { %2789 = vmatpush2.bf16.msra.mxu0 %v5116_v17 }
 0x1dc   : > { %2830 = vmatpush2.bf16.msra.mxu1 %v5244_v18 }
 0x1dd   : > { %v2546_v19 = vpop.f32.mrf.mxu0  ;;  %2791 = vmatmul.mubr.bf16.vlgmr.msra.gmra.mxu0 %v6982_v52 }
 0x1df   : > { %v2587_v20 = vpop.f32.mrf.mxu1  ;;  %2832 = vmatmul.mubr.bf16.vlgmr.msra.gmra.mxu1 %v6990_v60  ;;  %v2548_v22 = vpop.f32.mrf.mxu0 }
 0x1e0   : > { %v2588_v21 = vadd.f32 %v2587_v20, %v2546_v19 }
 0x1e1   : > { %v2589_v23 = vpop.f32.mrf.mxu1  ;;  %v2550_v26 = vpop.f32.mrf.mxu0 }
 0x1e2   : > { %v2590_v24 = vadd.f32 %v2589_v23, %v2548_v22 }
 0x1e3   : > { %v2591_v27 = vpop.f32.mrf.mxu1  ;;  %v2551_v30 = vpop.f32.mrf.mxu0 }
 0x1e4   : > { %v2848_v29 = vcombine.low %v2588_v21, %v2590_v24 }
 0x1e5   : > { %v2592_v31 = vpop.f32.mrf.mxu1 }
 0x1e6   : > { %v2856_v47 = vrot.slane %v2848_v29, %v7191_v40 }
 0x21d   : > { %v2628_v35 = vpop.f32.mrf.mxu0 }
 0x21f   : > { %v2669_v37 = vpop.f32.mrf.mxu1  ;;  %v2630_v39 = vpop.f32.mrf.mxu0 }
 0x220   : > { %v2670_v38 = vadd.f32 %v2669_v37, %v2628_v35 }
 0x221   : > { %v2671_v52 = vpop.f32.mrf.mxu1  ;;  %v2632_v41 = vpop.f32.mrf.mxu0 }
 0x222   : > { %v2672_v60 = vadd.f32 %v2671_v52, %v2630_v39 }
 0x223   : > { %v2673_v43 = vpop.f32.mrf.mxu1  ;;  %v2633_v45 = vpop.f32.mrf.mxu0 }
 0x224   : > { %v2849_v44 = vcombine.low %v2670_v38, %v2672_v60 }
 0x225   : > { %v2674_v46 = vpop.f32.mrf.mxu1 }
 0x226   : > { %v2863_v36 = vrot.slane %v2849_v44, %v7191_v40 }
 0x228   : > { %v2864_v42 = vcombine.low %v2856_v47, %v2863_v36 }
 0x22a   : > { %v2884_v49 = vadd.f32 %v2864_v42, %v944_v48 }
 0x22c   : > { %2886 = vst [vmem:[#allocation2] sm:$0xff] %v2884_v49 }
 0x25d   : > { %v2710_v50 = vpop.f32.mrf.mxu0 }
 0x25f   : > { %v2751_v51 = vpop.f32.mrf.mxu1  ;;  %v2712_v54 = vpop.f32.mrf.mxu0 }
 0x260   : > { %v2752_v53 = vadd.f32 %v2751_v51, %v2710_v50 }
 0x261   : > { %v2753_v55 = vpop.f32.mrf.mxu1  ;;  %v2714_v57 = vpop.f32.mrf.mxu0 }
 0x262   : > { %v2754_v56 = vadd.f32 %v2753_v55, %v2712_v54 }
 0x263   : > { %v2755_v58 = vpop.f32.mrf.mxu1  ;;  %v2715_v25 = vpop.f32.mrf.mxu0 }
 0x264   : > { %v2865_v59 = vcombine.low %v2752_v53, %v2754_v56 }
 0x265   : > { %v2756_v28 = vpop.f32.mrf.mxu1 }
 0x266   : > { %v2873_v9 = vrot.slane %v2865_v59, %v7191_v40 }
 0x29d   : > { %v2792_v61 = vpop.f32.mrf.mxu0 }
 0x29f   : > { %v2833_v62 = vpop.f32.mrf.mxu1  ;;  %v2794_v63 = vpop.f32.mrf.mxu0 }
 0x2a0   : > { %v2834_v1 = vadd.f32 %v2833_v62, %v2792_v61 }
 0x2a1   : > { %v2835_v0 = vpop.f32.mrf.mxu1  ;;  %v2796_v3 = vpop.f32.mrf.mxu0 }
 0x2a2   : > { %v2836_v2 = vadd.f32 %v2835_v0, %v2794_v63 }
 0x2a3   : > { %v2837_v4 = vpop.f32.mrf.mxu1  ;;  %v2797_v7 = vpop.f32.mrf.mxu0 }
 0x2a4   : > { %v2866_v5 = vcombine.low %v2834_v1, %v2836_v2 }
 0x2a5   : > { %v2838_v8 = vpop.f32.mrf.mxu1 }
 0x2a6   : > { %v2880_v10 = vrot.slane %v2866_v5, %v7191_v40 }
 0x2a8   : > { %v2881_v12 = vcombine.low %v2873_v9, %v2880_v10  ;;  %2891 = sbr.rel (%p5302_p3) target bundleno = 1658 (0x67a), region = 94 }
 0x2aa   : > { %v2885_v13 = vadd.f32 %v2881_v12, %v945_v11 }
 0x2ac   : > { %2887 = vst [vmem:[#allocation2 + $0x8] sm:$0xff] %v2885_v13 }
 0x2ad   : > { %v2894_v14 = vld [vmem:[%s923_s17] sm:$0xff]  ;;  %v2898_v15 = vsub.s32 0, %v6913_v16  ;;  %v2902_v17 = vsub.s32 1, %v6913_v16  ;;  %v2906_v18 = vsub.s32 2, %v6913_v16  ;;  %v2910_v19 = vsub.s32 3, %v6913_v16  ;;  %v7212_v29 = vld [vmem:[%s6881_s14 + $0x78] sm:$0xff]  }
 0x2ae   : > { %v2914_v20 = vsub.s32 4, %v6913_v16  ;;  %v2918_v21 = vsub.s32 5, %v6913_v16  ;;  %v2922_v22 = vsub.s32 6, %v6913_v16  ;;  %v2926_v27 = vsub.s32 7, %v6913_v16  ;;  %v2892_v50 = vld [vmem:[#allocation2] sm:$0xff]  ;;  %v7250_v63 = vld [vmem:[%s6881_s14 + $0xf8] sm:$0xff]  }
 0x2af   : > { %v2899_v23 = vrot.slane %v2894_v14, %v2898_v15  ;;  %v2903_v24 = vrot.slane %v2894_v14, %v2902_v17  ;;  %v2907_v26 = vrot.slane %v2894_v14, %v2906_v18  ;;  %v2911_v30 = vrot.slane %v2894_v14, %v2910_v19 }
 0x2b0   : > { %v2915_v31 = vrot.slane %v2894_v14, %v2914_v20  ;;  %v2919_v32 = vrot.slane %v2894_v14, %v2918_v21  ;;  %v2923_v33 = vrot.slane %v2894_v14, %v2922_v22  ;;  %v2927_v34 = vrot.slane %v2894_v14, %v2926_v27 }
 0x2b1   : > { %v2928_v35 = vcombine.low %v2899_v23, %v2903_v24  ;;  %v2929_v37 = vcombine.low %v2907_v26, %v2911_v30  ;;  %v2967_v39 = vand.u32 127, %v1215_v6  ;;  %v8899_v52 = vunpack.c.h.bf16 %v7212_v29 }
 0x2b2   : > { %v2945_v38 = vcombine.low %v2915_v31, %v2919_v32  ;;  %v2946_v60 = vcombine.low %v2923_v33, %v2927_v34  ;;  %vm3515_vm1 = vcmask 1041408   ;;  %v9103_v0 = vmov 0 }
 0x2b3   : > { %5642 = vmatprep.subr.mxu0 %v8899_v52  ;;  %v2936_v16 = vrot.slane %v2928_v35, %v7191_v40  ;;  %v2943_v41 = vrot.slane %v2929_v37, %v7191_v40  ;;  %v2968_v45 = vadd.s32 128, %v2967_v39  ;;  %v2969_v46 = vadd.s32 256, %v2967_v39  ;;  %v2893_v51 = vld [vmem:[#allocation2 + $0x8] sm:$0xff]  ;;  %v7399_v37 = vld [vmem:[%s6881_s14 + $0x38] sm:$0xff]   ;;  %v7571_v52 = vld [vmem:[%s6881_s14 + $0x50] sm:$0xff]  }
 0x2b4   : > { %v2953_v43 = vrot.slane %v2945_v38, %v7191_v40  ;;  %v2960_v44 = vrot.slane %v2946_v60, %v7191_v40  ;;  %v2970_v47 = vadd.s32 384, %v2967_v39  ;;  %v2971_v36 = vadd.s32 512, %v2967_v39 }
 0x2b5   : > { %v2972_v48 = vadd.s32 640, %v2967_v39  ;;  %v2944_v6 = vcombine.low %v2936_v16, %v2943_v41  ;;  %v7222_v49 = vand.u32 31, %v2967_v39  ;;  %v2973_v53 = vadd.s32 768, %v2967_v39  ;;  %v7411_v41 = vld [vmem:[%s6881_s14 + $0xb8] sm:$0xff]  }
 0x2b6   : > { %v2961_v42 = vcombine.low %v2953_v43, %v2960_v44  ;;  %v2974_v54 = vadd.s32 896, %v2967_v39  ;;  %v7224_v55 = vand.u32 31, %v2968_v45  ;;  %v7226_v56 = vand.u32 31, %v2969_v46  ;;  %v7414_v43 = vld [vmem:[%s6881_s14 + $0x70] sm:$0xff]  }
 0x2b7   : > { %v7228_v57 = vand.u32 31, %v2970_v47  ;;  %v7230_v58 = vand.u32 31, %v2971_v36  ;;  %v7232_v59 = vand.u32 31, %v2972_v48  ;;  %v7234_v25 = vadd.f32 %v2944_v6, %v2892_v50  ;;  %v7422_v36 = vld [vmem:[%s6881_s14 + $0xf0] sm:$0xff]  }
 0x2b8   : > { %v7236_v28 = vadd.f32 %v2961_v42, %v2893_v51  ;;  %vm3087_vm0 = vcmp.ge.s32.totalorder %v7222_v49, 10  ;;  %v7239_v61 = vand.u32 31, %v2973_v53  ;;  %v7241_v62 = vand.u32 31, %v2974_v54  ;;  %v7427_v51 = vld [vmem:[%s6881_s14 + $0x30] sm:$0xff]  }
 0x2b9   : > { %9097 = vst [vmem:[#allocation7_spill] sm:$0xff] %v7230_v58  ;;  %9098 = vst [vmem:[#allocation8_spill] sm:$0xff] %v7232_v59  ;;  %vm3088_vm2 = vcmp.ge.s32.totalorder %v7224_v55, 10  ;;  %vm3089_vm3 = vcmp.ge.s32.totalorder %v7226_v56, 10  ;;  %vm3090_vm4 = vcmp.ge.s32.totalorder %v7228_v57, 10  ;;  %vm3095_vm5 = vcmp.lt.s32.totalorder %v7222_v49, 30 }
 0x2ba   : > { %9099 = vst [vmem:[#allocation9_spill] sm:$0xff] %v7234_v25  ;;  %9100 = vst [vmem:[#allocation10_spill] sm:$0xff] %v7236_v28  ;;  %vm3096_vm6 = vcmp.lt.s32.totalorder %v7224_v55, 30  ;;  %vm3097_vm7 = vcmp.lt.s32.totalorder %v7226_v56, 30  ;;  %vm3091_vm8 = vcmp.ge.s32.totalorder %v7230_v58, 10  ;;  %vm3092_vm9 = vcmp.ge.s32.totalorder %v7232_v59, 10 }
 0x2bb   : > { %9101 = vst [vmem:[#allocation11_spill] sm:$0xff] %v7239_v61  ;;  %9102 = vst [vmem:[#allocation12_spill] sm:$0xff] %v7241_v62  ;;  %vm3098_vm10 = vcmp.lt.s32.totalorder %v7228_v57, 30  ;;  %vm3099_vm11 = vcmp.lt.s32.totalorder %v7230_v58, 30  ;;  %v9106_v1 = vmov 0  ;;  %v3465_v2 = vcombine.high %v7234_v25, %v7234_v25  ;;  %v7430_v53 = vld [vmem:[%s6881_s14 + $0xb0] sm:$0xff]  }
 0x2bc   : > { %vm7258_vm12 = vmand %vm3087_vm0, %vm3095_vm5  ;;  %v7270_v3 = vrot.slane %v7234_v25, %v7191_v40  ;;  %v3482_v4 = vcombine.high %v7236_v28, %v7236_v28  ;;  %v7276_v5 = vrot.slane %v7236_v28, %v7191_v40  ;;  %vm3093_vm14 = vcmp.ge.s32.totalorder %v7239_v61, 10 }
 0x2bd   : > { %v9104_v0 = vsel %vm7258_vm12, 4294967295, %v9103_v0  ;;  %vm7262_vm13 = vmand %vm3088_vm2, %vm3096_vm6  ;;  %vm3100_vm15 = vcmp.lt.s32.totalorder %v7232_v59, 30  ;;  %vm3101_vm0 = vcmp.lt.s32.totalorder %v7239_v61, 30  ;;  %v9110_v7 = vmov 0  ;;  %v7770_v61 = vld [vmem:[%s6881_s14 + $0x1e8] sm:$0xff]   ;;  %v7796_v59 = vld [vmem:[%s6881_s14 + $0x160] sm:$0xff]  }
 0x2be   : > { %9105 = vst [vmem:[#allocation13_spill] sm:$0xff] %v9104_v0  ;;  %v9107_v1 = vsel %vm7262_vm13, 4294967295, %v9106_v1  ;;  %9109 = vst [vmem:[#allocation15_spill] sm:$0xff] %v7276_v5  ;;  %v8898_v8 = vunpack.c.h.bf16 %v7250_v63  ;;  %v9113_v9 = vmov 0  ;;  %v7297_v10 = vrot.slane %v3465_v2, %v7191_v40  ;;  %v7623_v0 = vld [vmem:[%s6881_s14 + $0x40] sm:$0xff]  }
 0x2bf   : > { %9108 = vst [vmem:[#allocation14_spill] sm:$0xff] %v9107_v1  ;;  %vm7285_vm2 = vmand %vm3089_vm3, %vm3097_vm7  ;;  %v7301_v11 = vcombine.high %v7270_v3, %v7270_v3  ;;  %v7304_v12 = vrot.slane %v3482_v4, %v7191_v40  ;;  %v7308_v13 = vcombine.high %v7276_v5, %v7276_v5  ;;  %vm3094_vm3 = vcmp.ge.s32.totalorder %v7241_v62, 10  ;;  %v7635_v40 = vld [vmem:[%s6881_s14] sm:$0xff]  }
 0x2c0   : > { %v9111_v7 = vsel %vm7285_vm2, 4294967295, %v9110_v7  ;;  %vm7292_vm5 = vmand %vm3090_vm4, %vm3098_vm10  ;;  %vm3102_vm4 = vcmp.lt.s32.totalorder %v7241_v62, 30  ;;  %v9118_v14 = vmov 0  ;;  %v7323_v15 = vsel %vm7258_vm12, %v7270_v3, -inf  ;;  %5677 = vmatprep.subr.mxu1 %v8898_v8  ;;  %v7586_v8 = vld [vmem:[%s6881_s14 + $0x90] sm:$0xff]   ;;  %9174 = vst [vmem:[#allocation39_spill] sm:$0xff] %v7796_v59 }
 0x2c1   : > { %9112 = vst [vmem:[#allocation16_spill] sm:$0xff] %v9111_v7  ;;  %v9114_v9 = vsel %vm7292_vm5, 4294967295, %v9113_v9  ;;  %9116 = vst [vmem:[#allocation18_spill] sm:$0xff] %v7304_v12  ;;  %v8872_v17 = vunpack.c.l.bf16 %v7212_v29  ;;  %v9121_v18 = vmov 0  ;;  %v7338_v19 = vcombine.high %v7297_v10, %v7297_v10 }
 0x2c2   : > { %9115 = vst [vmem:[#allocation17_spill] sm:$0xff] %v9114_v9  ;;  %9117 = vst [vmem:[#allocation19_spill] sm:$0xff] %v7308_v13  ;;  %v7342_v20 = vcombine.high %v7304_v12, %v7304_v12  ;;  %v7347_v21 = vsel %vm7262_vm13, %v7301_v11, -inf  ;;  %v7352_v22 = vsel %vm7285_vm2, %v7297_v10, -inf  ;;  %v9125_v23 = vmov 0  ;;  %v7608_v9 = vld [vmem:[%s6881_s14 + $0x88] sm:$0xff]  }
 0x2c3   : > { %vm7316_vm6 = vmand %vm3091_vm8, %vm3099_vm11  ;;  %v3516_v27 = vsel %vm3515_vm1, %v7323_v15, -inf  ;;  %v3517_v30 = vsel %vm3515_vm1, %v7347_v21, -inf  ;;  %v9128_v31 = vmov 0  ;;  %v7387_v32 = vsel %vm7292_vm5, %v7338_v19, -inf }
 0x2c4   : > { %v9119_v14 = vsel %vm7316_vm6, 4294967295, %v9118_v14  ;;  %vm7332_vm7 = vmand %vm3092_vm9, %vm3100_vm15  ;;  %9124 = vst [vmem:[#allocation22_spill] sm:$0xff] %v7342_v20  ;;  %v7365_v24 = vsel %vm7316_vm6, %v7276_v5, -inf  ;;  %v3518_v34 = vsel %vm3515_vm1, %v7352_v22, -inf  ;;  %v3519_v39 = vsel %vm3515_vm1, %v7387_v32, -inf }
 0x2c5   : > { %9120 = vst [vmem:[#allocation20_spill] sm:$0xff] %v9119_v14  ;;  %v9122_v18 = vsel %vm7332_vm7, 4294967295, %v9121_v18  ;;  %vm7358_vm8 = vmand %vm3093_vm14, %vm3101_vm0  ;;  %v7370_v26 = vsel %vm7332_vm7, %v7308_v13, -inf  ;;  %v3520_v35 = vsel %vm3515_vm1, %v7365_v24, -inf  ;;  %v8869_v47 = vunpack.c.l.bf16 %v7250_v63  ;;  %v7602_v14 = vld [vmem:[%s6881_s14 + $0xc8] sm:$0xff]  }
 0x2c6   : > { %9123 = vst [vmem:[#allocation21_spill] sm:$0xff] %v9122_v18  ;;  %v9126_v23 = vsel %vm7358_vm8, 4294967295, %v9125_v23  ;;  %vm7380_vm9 = vmand %vm3094_vm3, %vm3102_vm4  ;;  %v7392_v33 = vsel %vm7358_vm8, %v7304_v12, -inf  ;;  %v3521_v60 = vmax.f32 %v3516_v27, %v3520_v35  ;;  %v3522_v16 = vsel %vm3515_vm1, %v7370_v26, -inf  ;;  %v7591_v18 = vld [vmem:[%s6881_s14 + $0x48] sm:$0xff]  }
 0x2c7   : > { %9127 = vst [vmem:[#allocation23_spill] sm:$0xff] %v9126_v23  ;;  %v9129_v31 = vsel %vm7380_vm9, 4294967295, %v9128_v31  ;;  %v7404_v38 = vsel %vm7380_vm9, %v7342_v20, -inf  ;;  %v3523_v44 = vmax.f32 %v3517_v30, %v3522_v16  ;;  %v3524_v45 = vsel %vm3515_vm1, %v7392_v33, -inf  ;;  %v7448_v16 = vld [vmem:[%s6881_s14 + $0xe8] sm:$0xff]  }
 0x2c8   : > { %9130 = vst [vmem:[#allocation24_spill] sm:$0xff] %v9129_v31  ;;  %v3526_v46 = vsel %vm3515_vm1, %v7404_v38, -inf  ;;  %v3525_v48 = vmax.f32 %v3518_v34, %v3524_v45  ;;  %v8868_v42 = vunpack.c.l.bf16 %v7399_v37  ;;  %v8895_v50 = vunpack.c.h.bf16 %v7399_v37  ;;  %v7605_v31 = vld [vmem:[%s6881_s14 + $0x8] sm:$0xff]  }
 0x2c9   : > { %v3527_v6 = vmax.f32 %v3519_v39, %v3526_v46  ;;  %v3528_v54 = vmax.f32 %v3521_v60, %v3523_v44  ;;  %v8871_v2 = vunpack.c.l.bf16 %v7411_v41  ;;  %v8876_v4 = vunpack.c.h.bf16 %v7411_v41  ;;  %v7445_v60 = vld [vmem:[%s6881_s14 + $0x68] sm:$0xff]  }
 0x2ca   : > { %v8870_v27 = vunpack.c.h.bf16 %v7414_v43  ;;  %5643 = vmatpush3.msra.mxu0 %v8895_v50  ;;  %v8873_v34 = vunpack.c.h.bf16 %v7422_v36  ;;  %v8874_v35 = vunpack.c.h.bf16 %v7427_v51  ;;  %v8875_v39 = vunpack.c.h.bf16 %v7430_v53 }
 0x2cb   : > { %v3529_v30 = vmax.f32 %v3525_v48, %v3527_v6  ;;  %5678 = vmatpush3.msra.mxu1 %v8876_v4  ;;  %5644 = vmatprep.subr.mxu0 %v8872_v17  ;;  %v8878_v45 = vunpack.c.l.bf16 %v7414_v43  ;;  %v8877_v46 = vunpack.c.l.bf16 %v7422_v36  ;;  %v7457_v48 = vld [vmem:[%s6881_s14 + $0x28] sm:$0xff]   ;;  %v7479_v17 = vld [vmem:[%s6881_s14 + $0x60] sm:$0xff]   ;;  %v9139_v1 = vunpack.c.l.bf16 %v7586_v8 }
 0x2cc   : > { %5679 = vmatprep.subr.mxu1 %v8869_v47  ;;  %5645 = vmatpush3.msra.mxu0 %v8868_v42  ;;  %v7460_v6 = vld [vmem:[%s6881_s14 + $0xa8] sm:$0xff]   ;;  %v8888_v42 = vunpack.c.h.bf16 %v7445_v60  ;;  %v8887_v47 = vunpack.c.h.bf16 %v7448_v16  ;;  %v9141_v23 = vunpack.c.h.bf16 %v7602_v14  ;;  %v9142_v12 = vunpack.c.h.bf16 %v7605_v31 }
 0x2cd   : > { %v3530_v44 = vmax.f32 %v3528_v54, %v3529_v30  ;;  %5680 = vmatpush3.msra.mxu1 %v8871_v2  ;;  %5646 = vmatprep.subr.mxu0 %v8870_v27  ;;  %v8892_v54 = vunpack.c.l.bf16 %v7427_v51  ;;  %v8889_v30 = vunpack.c.l.bf16 %v7430_v53  ;;  %v8882_v27 = vunpack.c.h.bf16 %v7457_v48 }
 0x2ce   : > { %5681 = vmatprep.subr.mxu1 %v8873_v34  ;;  %5647 = vmatpush3.msra.mxu0 %v8874_v35  ;;  %v8879_v2 = vunpack.c.h.bf16 %v7460_v6  ;;  %v8880_v34 = vunpack.c.l.bf16 %v7445_v60  ;;  %v8881_v35 = vunpack.c.l.bf16 %v7448_v16  ;;  %v8884_v4 = vunpack.c.l.bf16 %v7460_v6 }
 0x2cf   : > { %3531 = vmax.xlane.f32.xlu0 %v3530_v44  ;;  %5682 = vmatpush3.msra.mxu1 %v8875_v39  ;;  %v7482_v44 = vld [vmem:[%s6881_s14 + $0xe0] sm:$0xff]   ;;  %v8883_v39 = vunpack.c.l.bf16 %v7457_v48  ;;  %v9144_v28 = vunpack.c.l.bf16 %v7591_v18  ;;  %vm3837_vm1 = vcmask 523264   ;;  %vm4142_vm10 = vcmp.eq.s32.totalorder %v7224_v55, 9 }
 0x2d0   : > { %5648 = vmatprep.subr.mxu0 %v8878_v45  ;;  %5683 = vmatprep.subr.mxu1 %v8877_v46  ;;  %v8886_v46 = vunpack.c.h.bf16 %v7479_v17  ;;  %v8885_v45 = vunpack.c.h.bf16 %v7482_v44  ;;  %vm4144_vm11 = vcmp.eq.s32.totalorder %v7228_v57, 9  ;;  %vm4141_vm14 = vcmp.eq.s32.totalorder %v7222_v49, 9 }
 0x2d1   : > { %5649 = vmatpush3.msra.mxu0 %v8892_v54  ;;  %5684 = vmatpush3.msra.mxu1 %v8889_v30  ;;  %v7550_v54 = vld [vmem:[%s6881_s14 + $0x98] sm:$0xff]   ;;  %vm4143_vm15 = vcmp.eq.s32.totalorder %v7226_v56, 9 }
 0x2d2   : > { %5650 = vmatprep.subr.mxu0 %v8888_v42  ;;  %5685 = vmatprep.subr.mxu1 %v8887_v47  ;;  %v7535_v47 = vld [vmem:[%s6881_s14 + $0x58] sm:$0xff]  }
 0x2d3   : > { %5651 = vmatpush3.msra.mxu0 %v8882_v27  ;;  %5686 = vmatpush3.msra.mxu1 %v8879_v2  ;;  %v7519_v2 = vld [vmem:[%s6881_s14 + $0x20] sm:$0xff]   ;;  %v7538_v42 = vld [vmem:[%s6881_s14 + $0xd8] sm:$0xff]   ;;  %v8900_v30 = vunpack.c.h.bf16 %v7535_v47  ;;  %v8906_v50 = vunpack.c.l.bf16 %v7535_v47 }
 0x2d4   : > { %5652 = vmatprep.subr.mxu0 %v8880_v34  ;;  %5687 = vmatprep.subr.mxu1 %v8881_v35  ;;  %v7522_v34 = vld [vmem:[%s6881_s14 + $0xa0] sm:$0xff]   ;;  %v8890_v35 = vunpack.c.h.bf16 %v7519_v2 }
 0x2d5   : > { %5653 = vmatpush3.msra.mxu0 %v8883_v39  ;;  %5688 = vmatpush3.msra.mxu1 %v8884_v4  ;;  %v8891_v27 = vunpack.c.h.bf16 %v7522_v34  ;;  %v8893_v39 = vunpack.c.l.bf16 %v7479_v17  ;;  %v8894_v4 = vunpack.c.l.bf16 %v7482_v44 }
 0x2d6   : > { %5654 = vmatprep.subr.mxu0 %v8886_v46  ;;  %5689 = vmatprep.subr.mxu1 %v8885_v45  ;;  %v8896_v45 = vunpack.c.l.bf16 %v7519_v2  ;;  %v8897_v46 = vunpack.c.l.bf16 %v7522_v34 }
 0x2d7   : > { %5655 = vmatpush3.msra.mxu0 %v8890_v35  ;;  %5690 = vmatpush3.msra.mxu1 %v8891_v27  ;;  %v8903_v35 = vunpack.c.h.bf16 %v7538_v42  ;;  %v7547_v27 = vld [vmem:[%s6881_s14 + $0x18] sm:$0xff]  }
 0x2d8   : > { %5656 = vmatprep.subr.mxu0 %v8893_v39  ;;  %5691 = vmatprep.subr.mxu1 %v8894_v4  ;;  %v8901_v39 = vunpack.c.h.bf16 %v7547_v27  ;;  %v8902_v4 = vunpack.c.h.bf16 %v7550_v54 }
 0x2d9   : > { %5657 = vmatpush3.msra.mxu0 %v8896_v45  ;;  %5692 = vmatpush3.msra.mxu1 %v8897_v46  ;;  %v8907_v45 = vunpack.c.l.bf16 %v7538_v42  ;;  %v9135_v46 = vunpack.c.h.bf16 %v7586_v8 }
 0x2da   : > { %5658 = vmatprep.subr.mxu0 %v8900_v30  ;;  %5693 = vmatprep.subr.mxu1 %v8903_v35  ;;  %v7574_v30 = vld [vmem:[%s6881_s14 + $0xd0] sm:$0xff]  }
 0x2db   : > { %5659 = vmatpush3.msra.mxu0 %v8901_v39  ;;  %5694 = vmatpush3.msra.mxu1 %v8902_v4  ;;  %v7583_v35 = vld [vmem:[%s6881_s14 + $0x10] sm:$0xff]   ;;  %v9137_v4 = vunpack.c.l.bf16 %v7574_v30 }
 0x2dc   : > { %5660 = vmatprep.subr.mxu0 %v8906_v50  ;;  %5695 = vmatprep.subr.mxu1 %v8907_v45  ;;  %v9131_v50 = vunpack.c.l.bf16 %v7547_v27  ;;  %v9132_v45 = vunpack.c.l.bf16 %v7550_v54  ;;  %v8914_v39 = vunpack.c.h.bf16 %v7583_v35  ;;  %v9138_v7 = vunpack.c.l.bf16 %v7583_v35 }
 0x2de   : > { %5661 = vmatpush3.msra.mxu0 %v9131_v50  ;;  %5696 = vmatpush3.msra.mxu1 %v9132_v45  ;;  %v9133_v50 = vunpack.c.h.bf16 %v7571_v52  ;;  %v9134_v45 = vunpack.c.h.bf16 %v7574_v30 }
 0x2e0   : > { %5662 = vmatprep.subr.mxu0 %v9133_v50  ;;  %5697 = vmatprep.subr.mxu1 %v9134_v45  ;;  %v7626_v50 = vld [vmem:[%s6881_s14 + $0xc0] sm:$0xff]   ;;  %v9136_v45 = vunpack.c.l.bf16 %v7571_v52 }
 0x2e1   : > { %5663 = vmatpush3.msra.mxu0 %v8914_v39  ;;  %5698 = vmatpush3.msra.mxu1 %v9135_v46  ;;  %v7638_v46 = vld [vmem:[%s6881_s14 + $0x80] sm:$0xff]   ;;  %v8924_v39 = vunpack.c.h.bf16 %v7623_v0 }
 0x2e2   : > { %5664 = vmatprep.subr.mxu0 %v9136_v45  ;;  %5699 = vmatprep.subr.mxu1 %v9137_v4  ;;  %v9140_v4 = vunpack.c.h.bf16 %v7591_v18  ;;  %v8921_v45 = vunpack.c.l.bf16 %v7635_v40  ;;  %v9150_v25 = vunpack.c.h.bf16 %v7638_v46 }
 0x2e3   : > { %5665 = vmatpush3.msra.mxu0 %v9138_v7  ;;  %5700 = vmatpush3.msra.mxu1 %v9139_v1  ;;  %v9143_v7 = vunpack.c.h.bf16 %v7608_v9  ;;  %v8922_v1 = vunpack.c.l.bf16 %v7638_v46 }
 0x2e4   : > { %5666 = vmatprep.subr.mxu0 %v9140_v4  ;;  %5701 = vmatprep.subr.mxu1 %v9141_v23  ;;  %v9145_v4 = vunpack.c.l.bf16 %v7602_v14  ;;  %v8923_v23 = vunpack.c.l.bf16 %v7623_v0 }
 0x2e5   : > { %5667 = vmatpush3.msra.mxu0 %v9142_v12  ;;  %5702 = vmatpush3.msra.mxu1 %v9143_v7  ;;  %v9146_v12 = vunpack.c.l.bf16 %v7605_v31  ;;  %v9147_v7 = vunpack.c.l.bf16 %v7608_v9 }
 0x2e6   : > { %5668 = vmatprep.subr.mxu0 %v9144_v28  ;;  %5703 = vmatprep.subr.mxu1 %v9145_v4  ;;  %v9148_v28 = vunpack.c.h.bf16 %v7626_v50  ;;  %v9149_v4 = vunpack.c.h.bf16 %v7635_v40 }
 0x2e7   : > { %5669 = vmatpush3.msra.mxu0 %v9146_v12  ;;  %5704 = vmatpush3.msra.mxu1 %v9147_v7  ;;  %v9151_v12 = vunpack.c.l.bf16 %v7626_v50  ;;  %v7687_v7 = vld [vmem:[%s6881_s14 + $0x178] sm:$0xff]  }
 0x2e8   : > { %5670 = vmatprep.subr.mxu0 %v8924_v39  ;;  %5705 = vmatprep.subr.mxu1 %v9148_v28  ;;  %v7690_v28 = vld [vmem:[%s6881_s14 + $0x1f8] sm:$0xff]  }
 0x2e9   : > { %5671 = vmatpush3.msra.mxu0 %v9149_v4  ;;  %5706 = vmatpush3.msra.mxu1 %v9150_v25  ;;  %v8925_v4 = vunpack.c.h.bf16 %v7687_v7  ;;  %v8928_v25 = vunpack.c.h.bf16 %v7690_v28 }
 0x2ea   : > { %5672 = vmatprep.subr.mxu0 %v8923_v23  ;;  %5707 = vmatprep.subr.mxu1 %v9151_v12 }
 0x2eb   : > { %5673 = vmatpush3.msra.mxu0 %v8921_v45  ;;  %5708 = vmatpush3.msra.mxu1 %v8922_v1 }
 0x2ec   : > { %5712 = vmatprep.subr.mxu0 %v8925_v4  ;;  %5747 = vmatprep.subr.mxu1 %v8928_v25 }
 0x358   : > { %v7698_v12 = vpop.xlane.xlu0 %3531 }
 0x359   : > { %v3533_v45 = vsub.f32 %v7323_v15, %v7698_v12  ;;  %v3535_v1 = vsub.f32 %v7352_v22, %v7698_v12  ;;  %v3534_v23 = vsub.f32 %v7347_v21, %v7698_v12  ;;  %v3536_v39 = vsub.f32 %v7387_v32, %v7698_v12  ;;  %v7713_v32 = vld [vmem:[%s6881_s14 + $0x138] sm:$0xff]  }
 0x35a   : > { %v3538_v25 = vsub.f32 %v7370_v26, %v7698_v12  ;;  %v3540_v15 = vsub.f32 %v7404_v38, %v7698_v12 }
 0x35b   : > { %v3541_v4 = vmul.f32 1.442695, %v3533_v45  ;;  %v3545_v5 = vmul.f32 1.442695, %v3535_v1  ;;  %v3543_v20 = vmul.f32 1.442695, %v3534_v23 }
 0x35c   : > { %v3547_v13 = vmul.f32 1.442695, %v3536_v39  ;;  %v3551_v22 = vmul.f32 1.442695, %v3538_v25  ;;  %v3555_v21 = vmul.f32 1.442695, %v3540_v15  ;;  %v8937_v39 = vunpack.c.h.bf16 %v7713_v32 }
 0x35d   : > { %5998 = vpow2.f32 %v3541_v4  ;;  %v7716_v45 = vld [vmem:[%s6881_s14 + $0x1b8] sm:$0xff]   ;;  %v7728_v1 = vld [vmem:[%s6881_s14 + $0x170] sm:$0xff]  }
 0x35e   : > { %6000 = vpow2.f32 %v3545_v5  ;;  %9152 = vst [vmem:[#allocation25_spill] sm:$0xff] %v7716_v45  ;;  %9156 = vst [vmem:[#allocation29_spill] sm:$0xff] %v7728_v1  ;;  %v7735_v25 = vld [vmem:[%s6881_s14 + $0x1f0] sm:$0xff]   ;;  %v9171_v4 = vunpack.c.h.bf16 %v7728_v1 }
 0x35f   : > { %6002 = vpow2.f32 %v3543_v20  ;;  %9158 = vst [vmem:[#allocation31_spill] sm:$0xff] %v7735_v25  ;;  %v7738_v15 = vld [vmem:[%s6881_s14 + $0x130] sm:$0xff]  }
 0x360   : > { %6004 = vpow2.f32 %v3547_v13  ;;  %9159 = vst [vmem:[#allocation32_spill] sm:$0xff] %v7738_v15  ;;  %v9166_v13 = vunpack.c.l.bf16 %v7690_v28  ;;  %v9179_v62 = vunpack.c.l.bf16 %v7738_v15 }
 0x361   : > { %6006 = vpow2.f32 %v3551_v22  ;;  %v9163_v22 = vunpack.c.l.bf16 %v7687_v7 }
 0x362   : > { %6008 = vpow2.f32 %v3555_v21  ;;  %v7744_v21 = vld [vmem:[%s6881_s14 + $0x1b0] sm:$0xff]  }
 0x363   : > { %9160 = vst [vmem:[#allocation33_spill] sm:$0xff] %v7744_v21  ;;  %v9181_v58 = vunpack.c.l.bf16 %v7744_v21 }
 0x36a   : > { %v7718_v26 = vpop.eup %5998 }
 0x36b   : > { %9153 = vst [vmem:[#allocation26_spill] sm:$0xff] %v7718_v26  ;;  %v7720_v38 = vpop.eup %6000 }
 0x36c   : > { %9154 = vst [vmem:[#allocation27_spill] sm:$0xff] %v7720_v38  ;;  %v7723_v5 = vpop.eup %6002 }
 0x36d   : > { %9155 = vst [vmem:[#allocation28_spill] sm:$0xff] %v7723_v5  ;;  %v7730_v23 = vpop.eup %6004  ;;  %3621 = vmatprep.mubr.f32.mxu0 %v7723_v5  ;;  %v9173_v5 = vunpack.c.h.bf16 %v7738_v15  ;;  %v7832_v15 = vld [vmem:[%s6881_s14 + $0x158] sm:$0xff]  }
 0x36e   : > { %9157 = vst [vmem:[#allocation30_spill] sm:$0xff] %v7730_v23  ;;  %3691 = vmatprep.mubr.f32.mxu1 %v7730_v23  ;;  %3622 = vmatmul.mubr.f32.vlgmr.msra.gmra.mxu0 %v7718_v26  ;;  %v7751_v20 = vpop.eup %6006  ;;  %v9162_v23 = vunpack.c.h.bf16 %v7716_v45  ;;  %v7760_v26 = vld [vmem:[%s6881_s14 + $0x168] sm:$0xff]   ;;  %9185 = vst [vmem:[#allocation42_spill] sm:$0xff] %v7832_v15 }
 0x36f   : > { %3692 = vmatmul.mubr.f32.vlgmr.msra.gmra.mxu1 %v7720_v38  ;;  %5713 = vmatpush3.msra.mxu0 %v8937_v39  ;;  %9161 = vst [vmem:[#allocation34_spill] sm:$0xff] %v7751_v20  ;;  %9164 = vst [vmem:[#allocation35_spill] sm:$0xff] %v7760_v26  ;;  %v7762_v39 = vpop.eup %6008  ;;  %v9168_v38 = vunpack.c.l.bf16 %v7713_v32 }
 0x370   : > { %5748 = vmatpush3.msra.mxu1 %v9162_v23  ;;  %5714 = vmatprep.subr.mxu0 %v9163_v22  ;;  %9165 = vst [vmem:[#allocation36_spill] sm:$0xff] %v7762_v39  ;;  %v7773_v22 = vld [vmem:[%s6881_s14 + $0x128] sm:$0xff]   ;;  %v9170_v23 = vunpack.c.l.bf16 %v7716_v45  ;;  %v9194_v45 = vunpack.c.h.bf16 %v7796_v59 }
 0x371   : > { %3761 = vmatprep.mubr.f32.mxu0 %v7751_v20  ;;  %5749 = vmatprep.subr.mxu1 %v9166_v13  ;;  %9167 = vst [vmem:[#allocation37_spill] sm:$0xff] %v7773_v22  ;;  %v7781_v13 = vld [vmem:[%s6881_s14 + $0x1a8] sm:$0xff]   ;;  %v9178_v20 = vunpack.c.l.bf16 %v7735_v25 }
 0x372   : > { %3831 = vmatprep.mubr.f32.mxu1 %v7762_v39  ;;  %5715 = vmatpush3.msra.mxu0 %v9168_v38  ;;  %9169 = vst [vmem:[#allocation38_spill] sm:$0xff] %v7781_v13  ;;  %v9172_v38 = vunpack.c.h.bf16 %v7735_v25  ;;  %v9182_v39 = vunpack.c.h.bf16 %v7760_v26  ;;  %v7843_v25 = vld [vmem:[%s6881_s14 + $0x1d8] sm:$0xff]  }
 0x373   : > { %5750 = vmatpush3.msra.mxu1 %v9170_v23  ;;  %5716 = vmatprep.subr.mxu0 %v9171_v4  ;;  %v9175_v23 = vunpack.c.h.bf16 %v7744_v21  ;;  %v9176_v4 = vunpack.c.l.bf16 %v7728_v1  ;;  %9188 = vst [vmem:[#allocation43_spill] sm:$0xff] %v7843_v25  ;;  %v7846_v1 = vld [vmem:[%s6881_s14 + $0x118] sm:$0xff]   ;;  %v3539_v21 = vsub.f32 %v7392_v33, %v7698_v12  ;;  %v9199_v33 = vunpack.c.l.bf16 %v7796_v59 }
 0x374   : > { %5751 = vmatprep.subr.mxu1 %v9172_v38  ;;  %5717 = vmatpush3.msra.mxu0 %v9173_v5  ;;  %v7805_v38 = vld [vmem:[%s6881_s14 + $0x1e0] sm:$0xff]   ;;  %9189 = vst [vmem:[#allocation44_spill] sm:$0xff] %v7846_v1  ;;  %v9206_v59 = vunpack.c.h.bf16 %v7832_v15 }
 0x375   : > { %5752 = vmatpush3.msra.mxu1 %v9175_v23  ;;  %5718 = vmatprep.subr.mxu0 %v9176_v4  ;;  %v7808_v5 = vld [vmem:[%s6881_s14 + $0x120] sm:$0xff]   ;;  %v9184_v23 = vunpack.c.h.bf16 %v7773_v22 }
 0x376   : > { %9177 = vst [vmem:[#allocation40_spill] sm:$0xff] %v7808_v5  ;;  %5753 = vmatprep.subr.mxu1 %v9178_v20  ;;  %5719 = vmatpush3.msra.mxu0 %v9179_v62  ;;  %v7817_v4 = vld [vmem:[%s6881_s14 + $0x1a0] sm:$0xff]   ;;  %v9183_v62 = vunpack.c.h.bf16 %v7770_v61  ;;  %v9187_v20 = vunpack.c.l.bf16 %v7760_v26  ;;  %v9193_v26 = vunpack.c.l.bf16 %v7781_v13 }
 0x377   : > { %9180 = vst [vmem:[#allocation41_spill] sm:$0xff] %v7817_v4  ;;  %5754 = vmatpush3.msra.mxu1 %v9181_v58  ;;  %5720 = vmatprep.subr.mxu0 %v9182_v39  ;;  %v3537_v58 = vsub.f32 %v7365_v24, %v7698_v12  ;;  %v9186_v39 = vunpack.c.h.bf16 %v7781_v13  ;;  %v9190_v24 = vunpack.c.l.bf16 %v7770_v61  ;;  %v7872_v13 = vld [vmem:[%s6881_s14 + $0x150] sm:$0xff]  }
 0x378   : > { %5755 = vmatprep.subr.mxu1 %v9183_v62  ;;  %5721 = vmatpush3.msra.mxu0 %v9184_v23  ;;  %v7857_v23 = vld [vmem:[%s6881_s14 + $0x198] sm:$0xff]   ;;  %9197 = vst [vmem:[#allocation46_spill] sm:$0xff] %v7872_v13  ;;  %v3553_v62 = vmul.f32 1.442695, %v3539_v21  ;;  %v7893_v12 = vld [vmem:[%s6881_s14 + $0x190] sm:$0xff]   ;;  %v7917_v21 = vld [vmem:[%s6881_s14 + $0x1c8] sm:$0xff]  }
 0x379   : > { %5756 = vmatpush3.msra.mxu1 %v9186_v39  ;;  %5722 = vmatprep.subr.mxu0 %v9187_v20  ;;  %v9191_v39 = vunpack.c.l.bf16 %v7773_v22  ;;  %9192 = vst [vmem:[#allocation45_spill] sm:$0xff] %v7857_v23  ;;  %v7881_v22 = vld [vmem:[%s6881_s14 + $0x1d0] sm:$0xff]   ;;  %v9202_v20 = vunpack.c.l.bf16 %v7805_v38  ;;  %9204 = vst [vmem:[#allocation49_spill] sm:$0xff] %v7893_v12 }
 0x37a   : > { %5757 = vmatprep.subr.mxu1 %v9190_v24  ;;  %v9195_v24 = vunpack.c.h.bf16 %v7805_v38  ;;  %9200 = vst [vmem:[#allocation47_spill] sm:$0xff] %v7881_v22  ;;  %9212 = vst [vmem:[#allocation51_spill] sm:$0xff] %v7917_v21 }
 0x37b   : > { %5723 = vmatpush3.msra.mxu0 %v9191_v39  ;;  %5758 = vmatpush3.msra.mxu1 %v9193_v26  ;;  %v9196_v39 = vunpack.c.h.bf16 %v7808_v5  ;;  %v3549_v26 = vmul.f32 1.442695, %v3537_v58  ;;  %v9203_v58 = vunpack.c.l.bf16 %v7808_v5  ;;  %v7908_v5 = vld [vmem:[%s6881_s14 + $0x148] sm:$0xff]  }
 0x37c   : > { %5724 = vmatprep.subr.mxu0 %v9194_v45  ;;  %5759 = vmatprep.subr.mxu1 %v9195_v24  ;;  %v9198_v45 = vunpack.c.h.bf16 %v7817_v4  ;;  %v9205_v24 = vunpack.c.l.bf16 %v7817_v4  ;;  %9209 = vst [vmem:[#allocation50_spill] sm:$0xff] %v7908_v5  ;;  %v9214_v4 = vunpack.c.l.bf16 %v7843_v25 }
 0x37d   : > { %5725 = vmatpush3.msra.mxu0 %v9196_v39  ;;  %v7884_v39 = vld [vmem:[%s6881_s14 + $0x110] sm:$0xff]   ;;  %6010 = vpow2.f32 %v3549_v26  ;;  %v9215_v26 = vunpack.c.l.bf16 %v7846_v1 }
 0x37e   : > { %5760 = vmatpush3.msra.mxu1 %v9198_v45  ;;  %5726 = vmatprep.subr.mxu0 %v9199_v33  ;;  %9201 = vst [vmem:[#allocation48_spill] sm:$0xff] %v7884_v39  ;;  %v9208_v45 = vunpack.c.h.bf16 %v7846_v1  ;;  %6012 = vpow2.f32 %v3553_v62  ;;  %v9218_v33 = vunpack.c.h.bf16 %v7872_v13  ;;  %v9227_v1 = vunpack.c.l.bf16 %v7884_v39 }
 0x37f   : > { %5761 = vmatprep.subr.mxu1 %v9202_v20  ;;  %5727 = vmatpush3.msra.mxu0 %v9203_v58  ;;  %v9207_v58 = vunpack.c.h.bf16 %v7843_v25  ;;  %v7929_v20 = vld [vmem:[%s6881_s14 + $0x188] sm:$0xff]   ;;  %v7956_v25 = vld [vmem:[%s6881_s14 + $0x100] sm:$0xff]   ;;  %v9230_v62 = vunpack.c.h.bf16 %v7908_v5 }
 0x380   : > { %5762 = vmatpush3.msra.mxu1 %v9205_v24  ;;  %5728 = vmatprep.subr.mxu0 %v9206_v59  ;;  %v9210_v59 = vunpack.c.h.bf16 %v7857_v23  ;;  %v9211_v24 = vunpack.c.l.bf16 %v7832_v15  ;;  %9216 = vst [vmem:[#allocation53_spill] sm:$0xff] %v7929_v20  ;;  %9225 = vst [vmem:[#allocation56_spill] sm:$0xff] %v7956_v25 }
 0x381   : > { %5763 = vmatprep.subr.mxu1 %v9207_v58  ;;  %5729 = vmatpush3.msra.mxu0 %v9208_v45  ;;  %v7920_v45 = vld [vmem:[%s6881_s14 + $0x108] sm:$0xff]   ;;  %v9217_v58 = vunpack.c.l.bf16 %v7857_v23  ;;  %v7944_v23 = vld [vmem:[%s6881_s14 + $0x140] sm:$0xff]  }
 0x382   : > { %5764 = vmatpush3.msra.mxu1 %v9210_v59  ;;  %5730 = vmatprep.subr.mxu0 %v9211_v24  ;;  %9213 = vst [vmem:[#allocation52_spill] sm:$0xff] %v7920_v45  ;;  %v9220_v59 = vunpack.c.h.bf16 %v7884_v39  ;;  %9221 = vst [vmem:[#allocation54_spill] sm:$0xff] %v7944_v23  ;;  %v8984_v24 = vunpack.c.l.bf16 %v7956_v25 }
 0x383   : > { %5765 = vmatprep.subr.mxu1 %v9214_v4  ;;  %5731 = vmatpush3.msra.mxu0 %v9215_v26  ;;  %v9219_v26 = vunpack.c.h.bf16 %v7881_v22  ;;  %v9235_v4 = vunpack.c.l.bf16 %v7917_v21 }
 0x384   : > { %5766 = vmatpush3.msra.mxu1 %v9217_v58  ;;  %5732 = vmatprep.subr.mxu0 %v9218_v33  ;;  %v9222_v58 = vunpack.c.h.bf16 %v7893_v12  ;;  %v9223_v33 = vunpack.c.l.bf16 %v7872_v13  ;;  %v7965_v13 = vld [vmem:[%s6881_s14 + $0x180] sm:$0xff]  }
 0x385   : > { %5767 = vmatprep.subr.mxu1 %v9219_v26  ;;  %5733 = vmatpush3.msra.mxu0 %v9220_v59  ;;  %v7953_v26 = vld [vmem:[%s6881_s14 + $0x1c0] sm:$0xff]   ;;  %v9226_v59 = vunpack.c.l.bf16 %v7881_v22  ;;  %9228 = vst [vmem:[#allocation57_spill] sm:$0xff] %v7965_v13  ;;  %v8986_v22 = vunpack.c.l.bf16 %v7965_v13 }
 0x386   : > { %5768 = vmatpush3.msra.mxu1 %v9222_v58  ;;  %5734 = vmatprep.subr.mxu0 %v9223_v33  ;;  %9224 = vst [vmem:[#allocation55_spill] sm:$0xff] %v7953_v26  ;;  %v9229_v33 = vunpack.c.l.bf16 %v7893_v12  ;;  %v8985_v58 = vunpack.c.h.bf16 %v7953_v26  ;;  %v9233_v12 = vunpack.c.h.bf16 %v7929_v20 }
 0x387   : > { %5769 = vmatprep.subr.mxu1 %v9226_v59  ;;  %5735 = vmatpush3.msra.mxu0 %v9227_v1  ;;  %v9231_v59 = vunpack.c.h.bf16 %v7917_v21  ;;  %v9232_v1 = vunpack.c.h.bf16 %v7920_v45 }
 0x388   : > { %5770 = vmatpush3.msra.mxu1 %v9229_v33  ;;  %5736 = vmatprep.subr.mxu0 %v9230_v62  ;;  %v9234_v33 = vunpack.c.l.bf16 %v7908_v5  ;;  %v8982_v62 = vunpack.c.h.bf16 %v7965_v13  ;;  %v8030_v13 = vld [vmem:[%s6885_s16 + $0xc8] sm:$0xff] }
 0x389   : > { %5771 = vmatprep.subr.mxu1 %v9231_v59  ;;  %5737 = vmatpush3.msra.mxu0 %v9232_v1  ;;  %v9236_v59 = vunpack.c.l.bf16 %v7920_v45  ;;  %v8983_v1 = vunpack.c.l.bf16 %v7953_v26  ;;  %9246 = vst [vmem:[#allocation63_spill] sm:$0xff] %v8030_v13 }
 0x38a   : > { %5772 = vmatpush3.msra.mxu1 %v9233_v12  ;;  %5738 = vmatprep.subr.mxu0 %v9234_v33  ;;  %v9237_v12 = vunpack.c.l.bf16 %v7929_v20  ;;  %v9238_v33 = vunpack.c.h.bf16 %v7944_v23  ;;  %v8043_v20 = vld [vmem:[%s6885_s16 + $0x80] sm:$0xff] }
 0x38b   : > { %5773 = vmatprep.subr.mxu1 %v9235_v4  ;;  %5739 = vmatpush3.msra.mxu0 %v9236_v59  ;;  %v9239_v4 = vunpack.c.h.bf16 %v7956_v25  ;;  %v9240_v59 = vunpack.c.l.bf16 %v7944_v23  ;;  %9249 = vst [vmem:[#allocation66_spill] sm:$0xff] %v8043_v20  ;;  %v9010_v21 = vunpack.c.l.bf16 %v8043_v20 }
 0x38c   : > { %5774 = vmatpush3.msra.mxu1 %v9237_v12  ;;  %5740 = vmatprep.subr.mxu0 %v9238_v33  ;;  %v8004_v12 = vpop.eup %6010 }
 0x38d   : > { %5775 = vmatprep.subr.mxu1 %v8985_v58  ;;  %5741 = vmatpush3.msra.mxu0 %v9239_v4  ;;  %9241 = vst [vmem:[#allocation58_spill] sm:$0xff] %v8004_v12  ;;  %v8010_v33 = vpop.eup %6012  ;;  %v8017_v4 = vld [vmem:[%s6885_s16 + $0xe0] sm:$0xff] }
 0x38e   : > { %5776 = vmatpush3.msra.mxu1 %v8982_v62  ;;  %5742 = vmatprep.subr.mxu0 %v9240_v59  ;;  %9242 = vst [vmem:[#allocation59_spill] sm:$0xff] %v8010_v33  ;;  %9243 = vst [vmem:[#allocation60_spill] sm:$0xff] %v8017_v4  ;;  %v8020_v59 = vld [vmem:[%s6885_s16 + $0xe8] sm:$0xff]  ;;  %v8023_v62 = vld [vmem:[%s6885_s16 + $0xc0] sm:$0xff]  ;;  %v9251_v58 = vunpack.c.h.bf16 %v8017_v4  ;;  %v9252_v26 = vunpack.c.l.bf16 %v8017_v4 }
 0x38f   : > { %5777 = vmatprep.subr.mxu1 %v8983_v1  ;;  %5743 = vmatpush3.msra.mxu0 %v8984_v24  ;;  %9244 = vst [vmem:[#allocation61_spill] sm:$0xff] %v8020_v59  ;;  %9245 = vst [vmem:[#allocation62_spill] sm:$0xff] %v8023_v62  ;;  %v8046_v24 = vld [vmem:[%s6885_s16 + $0x88] sm:$0xff]  ;;  %v9253_v23 = vunpack.c.l.bf16 %v8020_v59  ;;  %v9254_v5 = vunpack.c.h.bf16 %v8023_v62  ;;  %v8178_v4 = vld [vmem:[%s6885_s16 + $0xd8] sm:$0xff] }
 0x390   : > { %5778 = vmatpush3.msra.mxu1 %v8986_v22  ;;  %3762 = vmatmul.mubr.f32.vlgmr.msra.gmra.mxu0 %v8004_v12  ;;  %v9005_v22 = vunpack.c.h.bf16 %v8020_v59  ;;  %v8033_v12 = vld [vmem:[%s6885_s16 + $0xa0] sm:$0xff]  ;;  %9250 = vst [vmem:[#allocation67_spill] sm:$0xff] %v8046_v24  ;;  %v9008_v25 = vunpack.c.h.bf16 %v8046_v24  ;;  %9270 = vst [vmem:[#allocation78_spill] sm:$0xff] %v8178_v4 }
 0x391   : > { %3832 = vmatmul.mubr.f32.vlgmr.msra.gmra.mxu1 %v8010_v33  ;;  %9247 = vst [vmem:[#allocation64_spill] sm:$0xff] %v8033_v12  ;;  %v8036_v33 = vld [vmem:[%s6885_s16 + $0xa8] sm:$0xff]  ;;  %3857 = vmatprep.subr.mxu0 %v9251_v58  ;;  %v9009_v45 = vunpack.c.h.bf16 %v8033_v12  ;;  %v9006_v1 = vunpack.c.l.bf16 %v8033_v12  ;;  %v9255_v58 = vunpack.c.h.bf16 %v8030_v13 }
 0x392   : > { %9248 = vst [vmem:[#allocation65_spill] sm:$0xff] %v8036_v33  ;;  %3928 = vmatprep.subr.mxu1 %v9005_v22  ;;  %3858 = vmatpush1.msra.mxu0 %v9252_v26  ;;  %v9007_v22 = vunpack.c.h.bf16 %v8043_v20  ;;  %v9256_v26 = vunpack.c.l.bf16 %v8023_v62  ;;  %v8120_v12 = vld [vmem:[%s6885_s16 + $0x28] sm:$0xff] }
 0x393   : > { %3929 = vmatpush1.msra.mxu1 %v9253_v23  ;;  %3859 = vmatprep.subr.mxu0 %v9254_v5  ;;  %v9257_v23 = vunpack.c.l.bf16 %v8030_v13  ;;  %v9011_v5 = vunpack.c.l.bf16 %v8046_v24  ;;  %9265 = vst [vmem:[#allocation73_spill] sm:$0xff] %v8120_v12 }
 0x394   : > { %3930 = vmatprep.subr.mxu1 %v9255_v58  ;;  %3860 = vmatpush1.msra.mxu0 %v9256_v26  ;;  %v9258_v58 = vunpack.c.h.bf16 %v8036_v33  ;;  %v9259_v26 = vunpack.c.l.bf16 %v8036_v33 }
 0x395   : > { %3931 = vmatpush1.msra.mxu1 %v9257_v23  ;;  %3861 = vmatprep.subr.mxu0 %v9009_v45  ;;  %v8089_v23 = vld [vmem:[%s6885_s16 + $0x60] sm:$0xff] }
 0x396   : > { %3932 = vmatprep.subr.mxu1 %v9258_v58  ;;  %3862 = vmatpush1.msra.mxu0 %v9006_v1  ;;  %9260 = vst [vmem:[#allocation68_spill] sm:$0xff] %v8089_v23  ;;  %v8092_v58 = vld [vmem:[%s6885_s16 + $0x68] sm:$0xff]  ;;  %v8099_v45 = vld [vmem:[%s6885_s16 + $0x40] sm:$0xff] }
 0x397   : > { %3933 = vmatpush1.msra.mxu1 %v9259_v26  ;;  %3863 = vmatprep.subr.mxu0 %v9007_v22  ;;  %9261 = vst [vmem:[#allocation69_spill] sm:$0xff] %v8092_v58  ;;  %v9018_v26 = vunpack.c.h.bf16 %v8089_v23  ;;  %v9021_v1 = vunpack.c.h.bf16 %v8092_v58  ;;  %v9022_v22 = vunpack.c.l.bf16 %v8089_v23  ;;  %9262 = vst [vmem:[#allocation70_spill] sm:$0xff] %v8099_v45  ;;  %v9030_v20 = vunpack.c.l.bf16 %v8099_v45  ;;  %v8138_v23 = vld [vmem:[%s6885_s16 + $0x8] sm:$0xff] }
 0x398   : > { %3934 = vmatprep.subr.mxu1 %v9008_v25  ;;  %3864 = vmatpush1.msra.mxu0 %v9010_v21  ;;  %v9023_v25 = vunpack.c.l.bf16 %v8092_v58  ;;  %v8102_v21 = vld [vmem:[%s6885_s16 + $0x48] sm:$0xff]  ;;  %v9038_v58 = vunpack.c.l.bf16 %v8120_v12  ;;  %9267 = vst [vmem:[#allocation75_spill] sm:$0xff] %v8138_v23 }
 0x399   : > { %3935 = vmatpush1.msra.mxu1 %v9011_v5  ;;  %9263 = vst [vmem:[#allocation71_spill] sm:$0xff] %v8102_v21  ;;  %3865 = vmatprep.subr.mxu0 %v9018_v26  ;;  %v9026_v5 = vunpack.c.h.bf16 %v8099_v45  ;;  %v9029_v24 = vunpack.c.h.bf16 %v8102_v21  ;;  %v9031_v33 = vunpack.c.l.bf16 %v8102_v21  ;;  %v8117_v26 = vld [vmem:[%s6885_s16 + $0x20] sm:$0xff]  ;;  %v9045_v21 = vunpack.c.l.bf16 %v8138_v23  ;;  %v8153_v45 = vld [vmem:[%s6885_s16 + $0xf0] sm:$0xff] }
 0x39a   : > { %3936 = vmatprep.subr.mxu1 %v9021_v1  ;;  %3866 = vmatpush1.msra.mxu0 %v9022_v22  ;;  %9264 = vst [vmem:[#allocation72_spill] sm:$0xff] %v8117_v26  ;;  %v9036_v1 = vunpack.c.h.bf16 %v8117_v26  ;;  %v9037_v22 = vunpack.c.h.bf16 %v8120_v12  ;;  %v9068_v15 = vunpack.c.l.bf16 %v8153_v45 }
 0x39b   : > { %3937 = vmatpush1.msra.mxu1 %v9023_v25  ;;  %3867 = vmatprep.subr.mxu0 %v9026_v5  ;;  %v9039_v25 = vunpack.c.l.bf16 %v8117_v26  ;;  %v8135_v5 = vld [vmem:[%s6885_s16] sm:$0xff] }
 0x39c   : > { %3938 = vmatprep.subr.mxu1 %v9029_v24  ;;  %3868 = vmatpush1.msra.mxu0 %v9030_v20  ;;  %9266 = vst [vmem:[#allocation74_spill] sm:$0xff] %v8135_v5  ;;  %v9042_v24 = vunpack.c.h.bf16 %v8135_v5  ;;  %v9040_v20 = vunpack.c.h.bf16 %v8138_v23 }
 0x39d   : > { %3939 = vmatpush1.msra.mxu1 %v9031_v33  ;;  %3869 = vmatprep.subr.mxu0 %v9036_v1  ;;  %v9041_v33 = vunpack.c.l.bf16 %v8135_v5  ;;  %v8156_v1 = vld [vmem:[%s6885_s16 + $0xf8] sm:$0xff] }
 0x39e   : > { %3940 = vmatprep.subr.mxu1 %v9037_v22  ;;  %3870 = vmatpush1.msra.mxu0 %v9039_v25  ;;  %9268 = vst [vmem:[#allocation76_spill] sm:$0xff] %v8156_v1  ;;  %v9060_v22 = vunpack.c.h.bf16 %v8153_v45  ;;  %v9056_v25 = vmov 0.0  }
 0x39f   : > { %3941 = vmatpush1.msra.mxu1 %v9038_v58  ;;  %3871 = vmatprep.subr.mxu0 %v9042_v24  ;;  %v9063_v58 = vunpack.c.h.bf16 %v8156_v1 }
 0x3a0   : > { %3942 = vmatprep.subr.mxu1 %v9040_v20  ;;  %3872 = vmatpush1.msra.mxu0 %v9041_v33 }
 0x3a1   : > { %3943 = vmatpush1.msra.mxu1 %v9045_v21  ;;  %3905 = vmatprep.mubr.f32.mxu0 %v9056_v25 }
 0x3a2   : > { %3976 = vmatprep.mubr.f32.mxu1 %v9056_v25  ;;  %3999 = vmatprep.subr.mxu0 %v9060_v22  ;;  %v8175_v22 = vld [vmem:[%s6885_s16 + $0xd0] sm:$0xff] }
 0x3a3   : > { %4070 = vmatprep.subr.mxu1 %v9063_v58  ;;  %9269 = vst [vmem:[#allocation77_spill] sm:$0xff] %v8175_v22 }
 0x42e   : > { %v5674_v20 = vpop.f32.mrf.mxu0 }
 0x42f   : > { %v5709_v33 = vpop.f32.mrf.mxu1 }
 0x430   : > { %v5675_v24 = vpop.f32.mrf.mxu0 }
 0x431   : > { %v5710_v23 = vpop.f32.mrf.mxu1  ;;  %v5676_v21 = vadd.f32 %v5675_v24, %v5674_v20  ;;  %v9069_v20 = vunpack.c.l.bf16 %v8156_v1  ;;  %v8183_v24 = vld [vmem:[%s6885_s16 + $0xb0] sm:$0xff]  ;;  %v8234_v1 = vld [vmem:[%s6885_s16 + $0x58] sm:$0xff] }
 0x432   : > { %v5711_v5 = vadd.f32 %v5710_v23, %v5709_v33  ;;  %9271 = vst [vmem:[#allocation79_spill] sm:$0xff] %v8183_v24  ;;  %v8186_v33 = vld [vmem:[%s6885_s16 + $0xb8] sm:$0xff] }
 0x433   : > { %9272 = vst [vmem:[#allocation80_spill] sm:$0xff] %v8186_v33 }
 0x434   : > { %v3694_v62 = vadd.f32 %v5711_v5, %v5676_v21  ;;  %v9070_v21 = vunpack.c.h.bf16 %v8175_v22  ;;  %v8198_v5 = vld [vmem:[%s6885_s16 + $0x98] sm:$0xff] }
 0x435   : > { %9274 = vst [vmem:[#allocation82_spill] sm:$0xff] %v8198_v5 }
 0x450   : > { %v5744_v12 = vpop.f32.mrf.mxu0 }
 0x451   : > { %v5779_v26 = vpop.f32.mrf.mxu1 }
 0x452   : > { %v5745_v13 = vpop.f32.mrf.mxu0 }
 0x453   : > { %v5746_v25 = vadd.f32 %v5745_v13, %v5744_v12  ;;  %v5780_v59 = vpop.f32.mrf.mxu1  ;;  %v9073_v12 = vunpack.c.h.bf16 %v8178_v4 }
 0x454   : > { %v5781_v39 = vadd.f32 %v5780_v59, %v5779_v26  ;;  %v8195_v59 = vld [vmem:[%s6885_s16 + $0x90] sm:$0xff]  ;;  %v9276_v26 = vunpack.c.l.bf16 %v8178_v4 }
 0x455   : > { %v3764_v58 = vadd.f32 %v5746_v25, %v3694_v62  ;;  %9273 = vst [vmem:[#allocation81_spill] sm:$0xff] %v8195_v59  ;;  %v8213_v62 = vld [vmem:[%s6885_s16 + $0x70] sm:$0xff]  ;;  %v8216_v25 = vld [vmem:[%s6885_s16 + $0x78] sm:$0xff] }
 0x456   : > { %v9286_v23 = vunpack.c.h.bf16 %v8216_v25  ;;  %v9288_v4 = vunpack.c.l.bf16 %v8216_v25 }
 0x457   : > { %v8188_v13 = vadd.f32 %v5781_v39, %v3764_v58  ;;  %v9280_v39 = vunpack.c.l.bf16 %v8186_v33  ;;  %v9284_v58 = vunpack.c.l.bf16 %v8198_v5 }
 0x459   : > { %5303 = vmatmul.mubr.msk.f32.vlgmr.msra.gmra.mxu0 %vm3837_vm1, %v8188_v13  ;;  %5304 = vmatmul.mubr.msk.f32.vlgmr.msra.gmra.mxu1 %vm3837_vm1, %v8188_v13 }
 0x45a   : > { %4000 = vmatpush1.msra.mxu0 %v9068_v15  ;;  %4071 = vmatpush1.msra.mxu1 %v9069_v20  ;;  %v9275_v20 = vunpack.c.l.bf16 %v8175_v22  ;;  %v9278_v15 = vunpack.c.h.bf16 %v8186_v33  ;;  %v8252_v22 = vld [vmem:[%s6885_s16 + $0x38] sm:$0xff] }
 0x45b   : > { %4001 = vmatprep.subr.mxu0 %v9070_v21  ;;  %4072 = vmatprep.subr.mxu1 %v9073_v12  ;;  %v8231_v21 = vld [vmem:[%s6885_s16 + $0x50] sm:$0xff]  ;;  %v9277_v12 = vunpack.c.h.bf16 %v8183_v24 }
 0x45c   : > { %4002 = vmatpush1.msra.mxu0 %v9275_v20  ;;  %4073 = vmatpush1.msra.mxu1 %v9276_v26  ;;  %v9279_v26 = vunpack.c.l.bf16 %v8183_v24  ;;  %v9282_v20 = vunpack.c.h.bf16 %v8198_v5  ;;  %v8267_v24 = vld [vmem:[%s6885_s16 + $0x10] sm:$0xff] }
 0x45d   : > { %4003 = vmatprep.subr.mxu0 %v9277_v12  ;;  %4074 = vmatprep.subr.mxu1 %v9278_v15  ;;  %v8249_v12 = vld [vmem:[%s6885_s16 + $0x30] sm:$0xff]  ;;  %v9281_v15 = vunpack.c.h.bf16 %v8195_v59 }
 0x45e   : > { %4004 = vmatpush1.msra.mxu0 %v9279_v26  ;;  %4075 = vmatpush1.msra.mxu1 %v9280_v39  ;;  %v9283_v39 = vunpack.c.l.bf16 %v8195_v59  ;;  %v3411_v33 = vunpack.c.l.bf16 %v8249_v12  ;;  %v9289_v59 = vunpack.c.h.bf16 %v8231_v21  ;;  %v9291_v26 = vunpack.c.l.bf16 %v8231_v21 }
 0x45f   : > { %4005 = vmatprep.subr.mxu0 %v9281_v15  ;;  %4076 = vmatprep.subr.mxu1 %v9282_v20  ;;  %v8270_v15 = vld [vmem:[%s6885_s16 + $0x18] sm:$0xff]  ;;  %v9285_v20 = vunpack.c.h.bf16 %v8213_v62  ;;  %v9293_v5 = vunpack.c.h.bf16 %v8249_v12 }
 0x460   : > { %4006 = vmatpush1.msra.mxu0 %v9283_v39  ;;  %4077 = vmatpush1.msra.mxu1 %v9284_v58  ;;  %v9287_v58 = vunpack.c.l.bf16 %v8213_v62  ;;  %v9295_v39 = vunpack.c.l.bf16 %v8252_v22 }
 0x461   : > { %4007 = vmatprep.subr.mxu0 %v9285_v20  ;;  %4078 = vmatprep.subr.mxu1 %v9286_v23  ;;  %v9290_v20 = vunpack.c.h.bf16 %v8234_v1  ;;  %v3404_v23 = vunpack.c.h.bf16 %v8267_v24 }
 0x462   : > { %4008 = vmatpush1.msra.mxu0 %v9287_v58  ;;  %4079 = vmatpush1.msra.mxu1 %v9288_v4  ;;  %v9292_v58 = vunpack.c.l.bf16 %v8234_v1  ;;  %v9087_v4 = vunpack.c.l.bf16 %v8267_v24 }
 0x463   : > { %4009 = vmatprep.subr.mxu0 %v9289_v59  ;;  %4080 = vmatprep.subr.mxu1 %v9290_v20  ;;  %v9294_v59 = vunpack.c.h.bf16 %v8252_v22  ;;  %v9086_v20 = vunpack.c.l.bf16 %v8270_v15 }
 0x464   : > { %4010 = vmatpush1.msra.mxu0 %v9291_v26  ;;  %4081 = vmatpush1.msra.mxu1 %v9292_v58  ;;  %v9296_v26 = vunpack.c.h.bf16 %v8270_v15  ;;  %v9299_v58 = vunpack.c.h.bf16 %v7250_v63 }
 0x465   : > { %4011 = vmatprep.subr.mxu0 %v9293_v5  ;;  %4082 = vmatprep.subr.mxu1 %v9294_v59  ;;  %v9297_v5 = vmov 0.0   ;;  %v9300_v59 = vunpack.c.h.bf16 %v7399_v37 }
 0x466   : > { %4012 = vmatpush1.msra.mxu0 %v3411_v33  ;;  %4083 = vmatpush1.msra.mxu1 %v9295_v39  ;;  %v9298_v39 = vunpack.c.h.bf16 %v7212_v29 }
 0x467   : > { %4013 = vmatprep.subr.mxu0 %v3404_v23  ;;  %4084 = vmatprep.subr.mxu1 %v9296_v26  ;;  %v9301_v26 = vunpack.c.h.bf16 %v7411_v41 }
 0x468   : > { %4014 = vmatpush1.msra.mxu0 %v9087_v4  ;;  %4047 = vmatprep.mubr.f32.mxu0 %v9297_v5  ;;  %v9303_v4 = vunpack.c.l.bf16 %v7250_v63  ;;  %v9310_v63 = vunpack.c.l.bf16 %v7414_v43 }
 0x469   : > { %4085 = vmatpush1.msra.mxu1 %v9086_v20  ;;  %4118 = vmatprep.mubr.f32.mxu1 %v9297_v5  ;;  %v9302_v20 = vunpack.c.l.bf16 %v7212_v29  ;;  %v9309_v29 = vunpack.c.h.bf16 %v7430_v53 }
 0x46a   : > { %5305 = vmatmul.mubr.msk.f32.vlgmr.msra.gmra.mxu0 %vm3837_vm1, %v8188_v13  ;;  %5306 = vmatmul.mubr.msk.f32.vlgmr.msra.gmra.mxu1 %vm3837_vm1, %v8188_v13  ;;  %v9304_v13 = vunpack.c.l.bf16 %v7399_v37  ;;  %v9311_v37 = vunpack.c.l.bf16 %v7422_v36 }
 0x46b   : > { %5782 = vmatprep.subr.mxu0 %v9298_v39  ;;  %5817 = vmatprep.subr.mxu1 %v9299_v58  ;;  %v9305_v39 = vunpack.c.l.bf16 %v7411_v41  ;;  %v9306_v58 = vunpack.c.h.bf16 %v7414_v43  ;;  %v9312_v41 = vunpack.c.l.bf16 %v7427_v51  ;;  %v9317_v43 = vunpack.c.h.bf16 %v7460_v6 }
 0x46c   : > { %5783 = vmatpush3.msra.mxu0 %v9300_v59  ;;  %5818 = vmatpush3.msra.mxu1 %v9301_v26  ;;  %v9307_v59 = vunpack.c.h.bf16 %v7422_v36  ;;  %v9308_v26 = vunpack.c.h.bf16 %v7427_v51  ;;  %v9318_v36 = vunpack.c.l.bf16 %v7445_v60  ;;  %v9319_v51 = vunpack.c.l.bf16 %v7448_v16 }
 0x46d   : > { %5784 = vmatprep.subr.mxu0 %v9302_v20  ;;  %5819 = vmatprep.subr.mxu1 %v9303_v4  ;;  %v9313_v4 = vunpack.c.l.bf16 %v7430_v53  ;;  %v9314_v20 = vunpack.c.h.bf16 %v7445_v60  ;;  %v9320_v53 = vunpack.c.l.bf16 %v7457_v48  ;;  %v9325_v60 = vunpack.c.h.bf16 %v7522_v34 }
 0x46e   : > { %5785 = vmatpush3.msra.mxu0 %v9304_v13  ;;  %5820 = vmatpush3.msra.mxu1 %v9305_v39  ;;  %v9315_v13 = vunpack.c.h.bf16 %v7448_v16  ;;  %v9316_v39 = vunpack.c.h.bf16 %v7457_v48  ;;  %v9326_v16 = vunpack.c.l.bf16 %v7479_v17  ;;  %v9327_v48 = vunpack.c.l.bf16 %v7482_v44 }
 0x46f   : > { %5786 = vmatprep.subr.mxu0 %v9306_v58  ;;  %5821 = vmatprep.subr.mxu1 %v9307_v59  ;;  %v9321_v58 = vunpack.c.l.bf16 %v7460_v6  ;;  %v9322_v59 = vunpack.c.h.bf16 %v7479_v17  ;;  %v9328_v6 = vunpack.c.l.bf16 %v7519_v2  ;;  %v9333_v17 = vunpack.c.h.bf16 %v7550_v54 }
 0x470   : > { %5787 = vmatpush3.msra.mxu0 %v9308_v26  ;;  %5822 = vmatpush3.msra.mxu1 %v9309_v29  ;;  %v9323_v26 = vunpack.c.h.bf16 %v7482_v44  ;;  %v9324_v29 = vunpack.c.h.bf16 %v7519_v2  ;;  %v9334_v44 = vunpack.c.l.bf16 %v7535_v47  ;;  %v9335_v2 = vunpack.c.l.bf16 %v7538_v42 }
 0x471   : > { %5788 = vmatprep.subr.mxu0 %v9310_v63  ;;  %5823 = vmatprep.subr.mxu1 %v9311_v37  ;;  %v9329_v63 = vunpack.c.l.bf16 %v7522_v34  ;;  %v9330_v37 = vunpack.c.h.bf16 %v7535_v47  ;;  %v9336_v34 = vunpack.c.l.bf16 %v7547_v27  ;;  %v9341_v47 = vunpack.c.h.bf16 %v7586_v8 }
 0x472   : > { %5789 = vmatpush3.msra.mxu0 %v9312_v41  ;;  %5824 = vmatpush3.msra.mxu1 %v9313_v4  ;;  %v9331_v41 = vunpack.c.h.bf16 %v7538_v42  ;;  %v9332_v4 = vunpack.c.h.bf16 %v7547_v27  ;;  %v9342_v42 = vunpack.c.l.bf16 %v7571_v52  ;;  %v9343_v27 = vunpack.c.l.bf16 %v7574_v30 }
 0x473   : > { %5790 = vmatprep.subr.mxu0 %v9314_v20  ;;  %5825 = vmatprep.subr.mxu1 %v9315_v13  ;;  %v9337_v20 = vunpack.c.l.bf16 %v7550_v54  ;;  %v9338_v13 = vunpack.c.h.bf16 %v7571_v52  ;;  %v9344_v54 = vunpack.c.l.bf16 %v7583_v35  ;;  %v9349_v52 = vunpack.c.h.bf16 %v7608_v9 }
 0x474   : > { %5791 = vmatpush3.msra.mxu0 %v9316_v39  ;;  %5826 = vmatpush3.msra.mxu1 %v9317_v43  ;;  %v9339_v39 = vunpack.c.h.bf16 %v7574_v30  ;;  %v9340_v43 = vunpack.c.h.bf16 %v7583_v35  ;;  %v9350_v30 = vunpack.c.l.bf16 %v7591_v18  ;;  %v9351_v35 = vunpack.c.l.bf16 %v7602_v14 }
 0x475   : > { %5792 = vmatprep.subr.mxu0 %v9318_v36  ;;  %5827 = vmatprep.subr.mxu1 %v9319_v51  ;;  %v9345_v36 = vunpack.c.l.bf16 %v7586_v8  ;;  %v9346_v51 = vunpack.c.h.bf16 %v7591_v18  ;;  %v9352_v8 = vunpack.c.l.bf16 %v7605_v31  ;;  %v9356_v18 = vunpack.c.h.bf16 %v7635_v40 }
 0x476   : > { %5793 = vmatpush3.msra.mxu0 %v9320_v53  ;;  %5828 = vmatpush3.msra.mxu1 %v9321_v58  ;;  %v9347_v53 = vunpack.c.h.bf16 %v7602_v14  ;;  %v9348_v58 = vunpack.c.h.bf16 %v7605_v31  ;;  %v9357_v14 = vunpack.c.h.bf16 %v7638_v46  ;;  %v9358_v31 = vunpack.c.l.bf16 %v7623_v0 }
 0x477   : > { %5794 = vmatprep.subr.mxu0 %v9322_v59  ;;  %5829 = vmatprep.subr.mxu1 %v9323_v26  ;;  %v9353_v59 = vunpack.c.l.bf16 %v7608_v9  ;;  %v9354_v26 = vunpack.c.h.bf16 %v7623_v0  ;;  %v9359_v9 = vunpack.c.l.bf16 %v7626_v50  ;;  %v9362_v0 = vunpack.c.h.bf16 %v7687_v7 }
 0x478   : > { %5795 = vmatpush3.msra.mxu0 %v9324_v29  ;;  %5830 = vmatpush3.msra.mxu1 %v9325_v60  ;;  %v9355_v29 = vunpack.c.h.bf16 %v7626_v50  ;;  %v9360_v60 = vunpack.c.l.bf16 %v7635_v40  ;;  %v9363_v50 = vunpack.c.h.bf16 %v7690_v28  ;;  %v9364_v40 = vunpack.c.h.bf16 %v7713_v32 }
 0x479   : > { %5796 = vmatprep.subr.mxu0 %v9326_v16  ;;  %5831 = vmatprep.subr.mxu1 %v9327_v48  ;;  %v9361_v16 = vunpack.c.l.bf16 %v7638_v46  ;;  %v9365_v48 = vld [vmem:[#allocation25_spill] sm:$0xff]  ;;  %v9367_v46 = vunpack.c.l.bf16 %v7687_v7 }
 0x47a   : > { %5797 = vmatpush3.msra.mxu0 %v9328_v6  ;;  %5832 = vmatpush3.msra.mxu1 %v9329_v63  ;;  %v9366_v6 = vunpack.c.h.bf16 %v9365_v48  ;;  %v9368_v63 = vunpack.c.l.bf16 %v7690_v28  ;;  %v9377_v7 = vld [vmem:[#allocation33_spill] sm:$0xff] }
 0x47b   : > { %5798 = vmatprep.subr.mxu0 %v9330_v37  ;;  %5833 = vmatprep.subr.mxu1 %v9331_v41  ;;  %v9369_v37 = vunpack.c.l.bf16 %v7713_v32  ;;  %v9370_v41 = vunpack.c.l.bf16 %v9365_v48 }
 0x47c   : > { %5799 = vmatpush3.msra.mxu0 %v9332_v4  ;;  %5834 = vmatpush3.msra.mxu1 %v9333_v17  ;;  %v9371_v4 = vld [vmem:[#allocation29_spill] sm:$0xff] }
 0x47d   : > { %5800 = vmatprep.subr.mxu0 %v9334_v44  ;;  %5835 = vmatprep.subr.mxu1 %v9335_v2  ;;  %v9372_v17 = vunpack.c.h.bf16 %v9371_v4  ;;  %v9373_v44 = vld [vmem:[#allocation31_spill] sm:$0xff]  ;;  %v9379_v28 = vunpack.c.l.bf16 %v9371_v4 }
 0x47e   : > { %5801 = vmatpush3.msra.mxu0 %v9336_v34  ;;  %5836 = vmatpush3.msra.mxu1 %v9337_v20  ;;  %v9374_v2 = vunpack.c.h.bf16 %v9373_v44  ;;  %v9375_v34 = vld [vmem:[#allocation32_spill] sm:$0xff]  ;;  %v9380_v32 = vunpack.c.l.bf16 %v9373_v44  ;;  %v9417_v44 = vld [vmem:[#allocation46_spill] sm:$0xff] }
 0x47f   : > { %5802 = vmatprep.subr.mxu0 %v9338_v13  ;;  %5837 = vmatprep.subr.mxu1 %v9339_v39  ;;  %v9376_v20 = vunpack.c.h.bf16 %v9375_v34  ;;  %v9378_v13 = vunpack.c.h.bf16 %v9377_v7  ;;  %v9381_v39 = vunpack.c.l.bf16 %v9375_v34  ;;  %v9419_v34 = vld [vmem:[#allocation47_spill] sm:$0xff] }
 0x480   : > { %5803 = vmatpush3.msra.mxu0 %v9340_v43  ;;  %5838 = vmatpush3.msra.mxu1 %v9341_v47  ;;  %v9382_v43 = vunpack.c.l.bf16 %v9377_v7  ;;  %v9383_v47 = vld [vmem:[#allocation35_spill] sm:$0xff]  ;;  %v9421_v7 = vld [vmem:[#allocation48_spill] sm:$0xff] }
 0x481   : > { %5804 = vmatprep.subr.mxu0 %v9342_v42  ;;  %5839 = vmatprep.subr.mxu1 %v9343_v27  ;;  %v9384_v42 = vunpack.c.h.bf16 %v9383_v47  ;;  %v9385_v27 = vunpack.c.h.bf16 %v7770_v61 }
 0x482   : > { %5805 = vmatpush3.msra.mxu0 %v9344_v54  ;;  %5840 = vmatpush3.msra.mxu1 %v9345_v36  ;;  %v9386_v54 = vld [vmem:[#allocation37_spill] sm:$0xff] }
 0x483   : > { %5806 = vmatprep.subr.mxu0 %v9346_v51  ;;  %5841 = vmatprep.subr.mxu1 %v9347_v53  ;;  %v9387_v36 = vunpack.c.h.bf16 %v9386_v54  ;;  %v9388_v51 = vld [vmem:[#allocation38_spill] sm:$0xff] }
 0x484   : > { %5807 = vmatpush3.msra.mxu0 %v9348_v58  ;;  %5842 = vmatpush3.msra.mxu1 %v9349_v52  ;;  %v9389_v53 = vunpack.c.h.bf16 %v9388_v51  ;;  %v9390_v58 = vunpack.c.l.bf16 %v9383_v47  ;;  %v9391_v52 = vunpack.c.l.bf16 %v7770_v61  ;;  %v9427_v47 = vunpack.c.l.bf16 %v9421_v7 }
 0x485   : > { %5808 = vmatprep.subr.mxu0 %v9350_v30  ;;  %5843 = vmatprep.subr.mxu1 %v9351_v35  ;;  %v9392_v30 = vunpack.c.l.bf16 %v9386_v54  ;;  %v9393_v35 = vunpack.c.l.bf16 %v9388_v51 }
 0x486   : > { %5809 = vmatpush3.msra.mxu0 %v9352_v8  ;;  %5844 = vmatpush3.msra.mxu1 %v9353_v59  ;;  %v9394_v8 = vld [vmem:[#allocation39_spill] sm:$0xff] }
 0x487   : > { %5810 = vmatprep.subr.mxu0 %v9354_v26  ;;  %5845 = vmatprep.subr.mxu1 %v9355_v29  ;;  %v9395_v59 = vunpack.c.h.bf16 %v9394_v8  ;;  %v9396_v26 = vunpack.c.h.bf16 %v7805_v38  ;;  %v9397_v29 = vld [vmem:[#allocation40_spill] sm:$0xff]  ;;  %v9401_v61 = vunpack.c.l.bf16 %v9394_v8 }
 0x488   : > { %5811 = vmatpush3.msra.mxu0 %v9356_v18  ;;  %5846 = vmatpush3.msra.mxu1 %v9357_v14  ;;  %v9398_v18 = vunpack.c.h.bf16 %v9397_v29  ;;  %v9399_v14 = vld [vmem:[#allocation41_spill] sm:$0xff] }
 0x489   : > { %5812 = vmatprep.subr.mxu0 %v9358_v31  ;;  %5847 = vmatprep.subr.mxu1 %v9359_v9  ;;  %v9400_v31 = vunpack.c.h.bf16 %v9399_v14  ;;  %v9402_v9 = vunpack.c.l.bf16 %v7805_v38 }
 0x48a   : > { %5813 = vmatpush3.msra.mxu0 %v9360_v60  ;;  %5307 = vmatprep.mubr.msk.f32.mxu0 %vm4142_vm10, %v7301_v11  ;;  %v9403_v60 = vunpack.c.l.bf16 %v9397_v29  ;;  %v9441_v29 = vld [vmem:[#allocation54_spill] sm:$0xff] }
 0x48b   : > { %5848 = vmatpush3.msra.mxu1 %v9361_v16  ;;  %5309 = vmatprep.mubr.msk.f32.mxu1 %vm4144_vm11, %v7338_v19  ;;  %v9404_v16 = vunpack.c.l.bf16 %v9399_v14  ;;  %v9443_v14 = vld [vmem:[#allocation55_spill] sm:$0xff]  ;;  %vm3072_vm11 = vcmp.lt.s32.totalorder %v7224_v55, 8 }
 0x48c   : > { %5308 = vmatmul.mubr.msk.f32.vlgmr.msra.gmra.mxu0 %vm4141_vm14, %v7270_v3  ;;  %5310 = vmatmul.mubr.msk.f32.vlgmr.msra.gmra.mxu1 %vm4143_vm15, %v7297_v10  ;;  %vm3073_vm14 = vcmp.lt.s32.totalorder %v7226_v56, 8  ;;  %vm3079_vm15 = vcmp.eq.s32.totalorder %v7222_v49, 8 }
 0x48d   : > { %5852 = vmatprep.subr.mxu0 %v9362_v0  ;;  %5887 = vmatprep.subr.mxu1 %v9363_v50  ;;  %v9405_v0 = vld [vmem:[#allocation42_spill] sm:$0xff] }
 0x48e   : > { %5853 = vmatpush3.msra.mxu0 %v9364_v40  ;;  %5888 = vmatpush3.msra.mxu1 %v9366_v6  ;;  %v9406_v50 = vunpack.c.h.bf16 %v9405_v0  ;;  %v9407_v40 = vld [vmem:[#allocation43_spill] sm:$0xff]  ;;  %v9409_v6 = vld [vmem:[#allocation44_spill] sm:$0xff]  ;;  %v9413_v38 = vunpack.c.l.bf16 %v9405_v0 }
 0x48f   : > { %5854 = vmatprep.subr.mxu0 %v9367_v46  ;;  %5889 = vmatprep.subr.mxu1 %v9368_v63  ;;  %v9408_v48 = vunpack.c.h.bf16 %v9407_v40  ;;  %v9410_v46 = vunpack.c.h.bf16 %v9409_v6  ;;  %v9411_v63 = vld [vmem:[#allocation45_spill] sm:$0xff]  ;;  %v9415_v4 = vunpack.c.l.bf16 %v9409_v6  ;;  %v9453_v6 = vld [vmem:[#allocation7_spill] sm:$0xff] }
 0x490   : > { %5855 = vmatpush3.msra.mxu0 %v9369_v37  ;;  %5890 = vmatpush3.msra.mxu1 %v9370_v41  ;;  %v9412_v37 = vunpack.c.h.bf16 %v9411_v63  ;;  %v9414_v41 = vunpack.c.l.bf16 %v9407_v40  ;;  %v9451_v40 = vunpack.c.l.bf16 %v9441_v29  ;;  %vm4145_vm4 = vcmp.eq.s32.totalorder %v9453_v6, 9 }
 0x491   : > { %5856 = vmatprep.subr.mxu0 %v9372_v17  ;;  %5891 = vmatprep.subr.mxu1 %v9374_v2  ;;  %v9416_v17 = vunpack.c.l.bf16 %v9411_v63  ;;  %v9418_v2 = vunpack.c.h.bf16 %v9417_v44 }
 0x492   : > { %5857 = vmatpush3.msra.mxu0 %v9376_v20  ;;  %5892 = vmatpush3.msra.mxu1 %v9378_v13  ;;  %v9420_v20 = vunpack.c.h.bf16 %v9419_v34  ;;  %v9422_v13 = vunpack.c.h.bf16 %v9421_v7 }
 0x493   : > { %5858 = vmatprep.subr.mxu0 %v9379_v28  ;;  %5893 = vmatprep.subr.mxu1 %v9380_v32  ;;  %v9423_v28 = vld [vmem:[#allocation49_spill] sm:$0xff] }
 0x494   : > { %5859 = vmatpush3.msra.mxu0 %v9381_v39  ;;  %5894 = vmatpush3.msra.mxu1 %v9382_v43  ;;  %v9424_v32 = vunpack.c.h.bf16 %v9423_v28  ;;  %v9425_v39 = vunpack.c.l.bf16 %v9417_v44  ;;  %v9426_v43 = vunpack.c.l.bf16 %v9419_v34  ;;  %v9461_v44 = vld [vmem:[#allocation60_spill] sm:$0xff]  ;;  %v9463_v34 = vld [vmem:[#allocation61_spill] sm:$0xff] }
 0x495   : > { %5860 = vmatprep.subr.mxu0 %v9384_v42  ;;  %5895 = vmatprep.subr.mxu1 %v9385_v27  ;;  %v9428_v42 = vunpack.c.l.bf16 %v9423_v28  ;;  %v9429_v27 = vld [vmem:[#allocation50_spill] sm:$0xff]  ;;  %v9465_v7 = vunpack.c.l.bf16 %v9461_v44 }
 0x496   : > { %5861 = vmatpush3.msra.mxu0 %v9387_v36  ;;  %5896 = vmatpush3.msra.mxu1 %v9389_v53  ;;  %v9430_v54 = vunpack.c.h.bf16 %v9429_v27  ;;  %v9431_v36 = vld [vmem:[#allocation51_spill] sm:$0xff]  ;;  %v9433_v53 = vld [vmem:[#allocation52_spill] sm:$0xff]  ;;  %v9467_v28 = vld [vmem:[#allocation62_spill] sm:$0xff] }
 0x497   : > { %5862 = vmatprep.subr.mxu0 %v9390_v58  ;;  %5897 = vmatprep.subr.mxu1 %v9391_v52  ;;  %v9432_v51 = vunpack.c.h.bf16 %v9431_v36  ;;  %v9434_v58 = vunpack.c.h.bf16 %v9433_v53  ;;  %v9435_v52 = vld [vmem:[#allocation53_spill] sm:$0xff]  ;;  %v9438_v8 = vunpack.c.l.bf16 %v9431_v36 }
 0x498   : > { %5863 = vmatpush3.msra.mxu0 %v9392_v30  ;;  %5898 = vmatpush3.msra.mxu1 %v9393_v35  ;;  %v9436_v30 = vunpack.c.h.bf16 %v9435_v52  ;;  %v9437_v35 = vunpack.c.l.bf16 %v9429_v27  ;;  %v9473_v27 = vld [vmem:[#allocation64_spill] sm:$0xff]  ;;  %v9475_v36 = vld [vmem:[#allocation65_spill] sm:$0xff] }
 0x499   : > { %5864 = vmatprep.subr.mxu0 %v9395_v59  ;;  %5899 = vmatprep.subr.mxu1 %v9396_v26  ;;  %v9439_v59 = vunpack.c.l.bf16 %v9433_v53  ;;  %v9440_v26 = vunpack.c.l.bf16 %v9435_v52  ;;  %v9477_v53 = vunpack.c.l.bf16 %v9473_v27  ;;  %v9479_v52 = vld [vmem:[#allocation66_spill] sm:$0xff] }
 0x49a   : > { %5865 = vmatpush3.msra.mxu0 %v9398_v18  ;;  %5900 = vmatpush3.msra.mxu1 %v9400_v31  ;;  %v9442_v18 = vunpack.c.h.bf16 %v9441_v29  ;;  %v9444_v31 = vunpack.c.h.bf16 %v9443_v14  ;;  %v9485_v29 = vld [vmem:[#allocation68_spill] sm:$0xff] }
 0x49b   : > { %5866 = vmatprep.subr.mxu0 %v9401_v61  ;;  %5901 = vmatprep.subr.mxu1 %v9402_v9  ;;  %v9445_v61 = vld [vmem:[#allocation8_spill] sm:$0xff] }
 0x49c   : > { %5867 = vmatpush3.msra.mxu0 %v9403_v60  ;;  %5902 = vmatpush3.msra.mxu1 %v9404_v16  ;;  %vm4146_vm0 = vcmp.eq.s32.totalorder %v9445_v61, 9  ;;  %v9446_v9 = vld [vmem:[#allocation56_spill] sm:$0xff]  ;;  %v9448_v16 = vld [vmem:[#allocation57_spill] sm:$0xff] }
 0x49d   : > { %5868 = vmatprep.subr.mxu0 %v9406_v50  ;;  %5903 = vmatprep.subr.mxu1 %v9408_v48  ;;  %v9447_v60 = vunpack.c.h.bf16 %v9446_v9  ;;  %v9449_v0 = vunpack.c.h.bf16 %v9448_v16  ;;  %v9450_v50 = vld [vmem:[#allocation12_spill] sm:$0xff]  ;;  %v9452_v48 = vunpack.c.l.bf16 %v9443_v14  ;;  %v9455_v63 = vunpack.c.l.bf16 %v9446_v9  ;;  %v9487_v14 = vld [vmem:[#allocation69_spill] sm:$0xff] }
 0x49e   : > { %5869 = vmatpush3.msra.mxu0 %v9410_v46  ;;  %5904 = vmatpush3.msra.mxu1 %v9412_v37  ;;  %vm4148_vm3 = vcmp.eq.s32.totalorder %v9450_v50, 9  ;;  %v9454_v46 = vld [vmem:[#allocation11_spill] sm:$0xff]  ;;  %v9489_v9 = vunpack.c.l.bf16 %v9485_v29 }
 0x49f   : > { %5870 = vmatprep.subr.mxu0 %v9413_v38  ;;  %5905 = vmatprep.subr.mxu1 %v9414_v41  ;;  %vm4147_vm10 = vcmp.eq.s32.totalorder %v9454_v46, 9  ;;  %v9456_v37 = vld [vmem:[#allocation19_spill] sm:$0xff]  ;;  %v9457_v38 = vunpack.c.l.bf16 %v9448_v16  ;;  %v9458_v41 = vld [vmem:[#allocation22_spill] sm:$0xff] }
 0x4a0   : > { %5871 = vmatpush3.msra.mxu0 %v9415_v4  ;;  %5906 = vmatpush3.msra.mxu1 %v9416_v17  ;;  %v9459_v4 = vld [vmem:[#allocation15_spill] sm:$0xff]  ;;  %v9460_v17 = vld [vmem:[#allocation18_spill] sm:$0xff] }
 0x4a1   : > { %5872 = vmatprep.subr.mxu0 %v9418_v2  ;;  %5907 = vmatprep.subr.mxu1 %v9420_v20  ;;  %v9462_v2 = vunpack.c.h.bf16 %v9461_v44  ;;  %v9464_v20 = vunpack.c.h.bf16 %v9463_v34  ;;  %v9491_v16 = vld [vmem:[#allocation70_spill] sm:$0xff]  ;;  %v9497_v44 = vld [vmem:[#allocation72_spill] sm:$0xff] }
 0x4a2   : > { %5873 = vmatpush3.msra.mxu0 %v9422_v13  ;;  %5908 = vmatpush3.msra.mxu1 %v9424_v32  ;;  %v9466_v13 = vunpack.c.l.bf16 %v9463_v34  ;;  %v9468_v32 = vunpack.c.h.bf16 %v9467_v28  ;;  %v9499_v34 = vld [vmem:[#allocation73_spill] sm:$0xff] }
 0x4a3   : > { %5874 = vmatprep.subr.mxu0 %v9425_v39  ;;  %5909 = vmatprep.subr.mxu1 %v9426_v43  ;;  %v9469_v39 = vld [vmem:[#allocation63_spill] sm:$0xff] }
 0x4a4   : > { %5875 = vmatpush3.msra.mxu0 %v9427_v47  ;;  %5910 = vmatpush3.msra.mxu1 %v9428_v42  ;;  %v9470_v43 = vunpack.c.h.bf16 %v9469_v39  ;;  %v9471_v47 = vunpack.c.l.bf16 %v9467_v28  ;;  %v9472_v42 = vunpack.c.l.bf16 %v9469_v39  ;;  %v9503_v28 = vld [vmem:[#allocation74_spill] sm:$0xff]  ;;  %v9505_v39 = vld [vmem:[#allocation75_spill] sm:$0xff] }
 0x4a5   : > { %5876 = vmatprep.subr.mxu0 %v9430_v54  ;;  %5911 = vmatprep.subr.mxu1 %v9432_v51  ;;  %v9474_v54 = vunpack.c.h.bf16 %v9473_v27  ;;  %v9476_v51 = vunpack.c.h.bf16 %v9475_v36  ;;  %v9509_v27 = vunpack.c.h.bf16 %v8153_v45 }
 0x4a6   : > { %5877 = vmatpush3.msra.mxu0 %v9434_v58  ;;  %5912 = vmatpush3.msra.mxu1 %v9436_v30  ;;  %v9478_v58 = vunpack.c.l.bf16 %v9475_v36  ;;  %v9480_v30 = vunpack.c.h.bf16 %v9479_v52 }
 0x4a7   : > { %5878 = vmatprep.subr.mxu0 %v9437_v35  ;;  %5913 = vmatprep.subr.mxu1 %v9438_v8  ;;  %v9481_v35 = vld [vmem:[#allocation67_spill] sm:$0xff] }
 0x4a8   : > { %5879 = vmatpush3.msra.mxu0 %v9439_v59  ;;  %5914 = vmatpush3.msra.mxu1 %v9440_v26  ;;  %v9482_v8 = vunpack.c.h.bf16 %v9481_v35  ;;  %v9483_v59 = vunpack.c.l.bf16 %v9479_v52  ;;  %v9484_v26 = vunpack.c.l.bf16 %v9481_v35 }
 0x4a9   : > { %5880 = vmatprep.subr.mxu0 %v9442_v18  ;;  %5915 = vmatprep.subr.mxu1 %v9444_v31  ;;  %v9486_v18 = vunpack.c.h.bf16 %v9485_v29  ;;  %v9488_v31 = vunpack.c.h.bf16 %v9487_v14 }
 0x4aa   : > { %5881 = vmatpush3.msra.mxu0 %v9447_v60  ;;  %5916 = vmatpush3.msra.mxu1 %v9449_v0  ;;  %v9490_v60 = vunpack.c.l.bf16 %v9487_v14  ;;  %v9492_v0 = vunpack.c.h.bf16 %v9491_v16 }
 0x4ab   : > { %5882 = vmatprep.subr.mxu0 %v9451_v40  ;;  %5917 = vmatprep.subr.mxu1 %v9452_v48  ;;  %v9493_v40 = vld [vmem:[#allocation71_spill] sm:$0xff] }
 0x4ac   : > { %5883 = vmatpush3.msra.mxu0 %v9455_v63  ;;  %5311 = vmatprep.mubr.msk.f32.mxu0 %vm4146_vm0, %v9456_v37  ;;  %v9494_v48 = vunpack.c.h.bf16 %v9493_v40  ;;  %v9495_v63 = vunpack.c.l.bf16 %v9491_v16  ;;  %vm3074_vm0 = vcmp.lt.s32.totalorder %v7228_v57, 8 }
 0x4ad   : > { %5918 = vmatpush3.msra.mxu1 %v9457_v38  ;;  %5313 = vmatprep.mubr.msk.f32.mxu1 %vm4148_vm3, %v9458_v41  ;;  %v9496_v38 = vunpack.c.l.bf16 %v9493_v40  ;;  %vm3080_vm3 = vcmp.eq.s32.totalorder %v7224_v55, 8 }
 0x4ae   : > { %5312 = vmatmul.mubr.msk.f32.vlgmr.msra.gmra.mxu0 %vm4145_vm4, %v9459_v4  ;;  %5314 = vmatmul.mubr.msk.f32.vlgmr.msra.gmra.mxu1 %vm4147_vm10, %v9460_v17  ;;  %vm3081_vm4 = vcmp.eq.s32.totalorder %v7226_v56, 8  ;;  %vm3082_vm10 = vcmp.eq.s32.totalorder %v7228_v57, 8 }
 0x4af   : > { %4456 = vmatprep.subr.mxu0 %v9462_v2  ;;  %4527 = vmatprep.subr.mxu1 %v9464_v20  ;;  %v9498_v2 = vunpack.c.h.bf16 %v9497_v44  ;;  %v9500_v20 = vunpack.c.h.bf16 %v9499_v34 }
 0x4b0   : > { %4457 = vmatpush1.msra.mxu0 %v9465_v7  ;;  %4528 = vmatpush1.msra.mxu1 %v9466_v13  ;;  %v9501_v7 = vunpack.c.l.bf16 %v9497_v44  ;;  %v9502_v13 = vunpack.c.l.bf16 %v9499_v34  ;;  %v9512_v34 = vunpack.c.l.bf16 %v8153_v45  ;;  %v9522_v45 = vld [vmem:[#allocation80_spill] sm:$0xff] }
 0x4b1   : > { %4458 = vmatprep.subr.mxu0 %v9468_v32  ;;  %4529 = vmatprep.subr.mxu1 %v9470_v43  ;;  %v9504_v32 = vunpack.c.h.bf16 %v9503_v28  ;;  %v9506_v43 = vunpack.c.h.bf16 %v9505_v39 }
 0x4b2   : > { %4459 = vmatpush1.msra.mxu0 %v9471_v47  ;;  %4530 = vmatpush1.msra.mxu1 %v9472_v42  ;;  %v9507_v47 = vunpack.c.l.bf16 %v9503_v28  ;;  %v9508_v42 = vunpack.c.l.bf16 %v9505_v39  ;;  %v9516_v28 = vld [vmem:[#allocation78_spill] sm:$0xff] }
 0x4b3   : > { %4460 = vmatprep.subr.mxu0 %v9474_v54  ;;  %4531 = vmatprep.subr.mxu1 %v9476_v51  ;;  %v9510_v54 = vld [vmem:[#allocation76_spill] sm:$0xff] }
 0x4b4   : > { %4461 = vmatpush1.msra.mxu0 %v9477_v53  ;;  %4532 = vmatpush1.msra.mxu1 %v9478_v58  ;;  %v9511_v36 = vunpack.c.h.bf16 %v9510_v54 }
 0x4b5   : > { %4462 = vmatprep.subr.mxu0 %v9480_v30  ;;  %4533 = vmatprep.subr.mxu1 %v9482_v8 }
 0x4b6   : > { %4463 = vmatpush1.msra.mxu0 %v9483_v59  ;;  %4534 = vmatpush1.msra.mxu1 %v9484_v26 }
 0x4b7   : > { %4464 = vmatprep.subr.mxu0 %v9486_v18  ;;  %4535 = vmatprep.subr.mxu1 %v9488_v31 }
 0x4b8   : > { %4465 = vmatpush1.msra.mxu0 %v9489_v9  ;;  %4536 = vmatpush1.msra.mxu1 %v9490_v60 }
 0x4b9   : > { %4466 = vmatprep.subr.mxu0 %v9492_v0  ;;  %4537 = vmatprep.subr.mxu1 %v9494_v48 }
 0x4ba   : > { %4467 = vmatpush1.msra.mxu0 %v9495_v63  ;;  %4538 = vmatpush1.msra.mxu1 %v9496_v38 }
 0x4bb   : > { %4468 = vmatprep.subr.mxu0 %v9498_v2  ;;  %4539 = vmatprep.subr.mxu1 %v9500_v20  ;;  %v9513_v20 = vunpack.c.l.bf16 %v9510_v54 }
 0x4bc   : > { %4469 = vmatpush1.msra.mxu0 %v9501_v7  ;;  %4540 = vmatpush1.msra.mxu1 %v9502_v13  ;;  %v9514_v7 = vld [vmem:[#allocation77_spill] sm:$0xff] }
 0x4bd   : > { %4470 = vmatprep.subr.mxu0 %v9504_v32  ;;  %4541 = vmatprep.subr.mxu1 %v9506_v43  ;;  %v9515_v13 = vunpack.c.h.bf16 %v9514_v7  ;;  %v9517_v32 = vunpack.c.h.bf16 %v9516_v28  ;;  %v9518_v39 = vunpack.c.l.bf16 %v9514_v7  ;;  %v9519_v43 = vunpack.c.l.bf16 %v9516_v28  ;;  %v9547_v28 = vld [vmem:[#allocation10_spill] sm:$0xff] }
 0x4be   : > { %4471 = vmatpush1.msra.mxu0 %v9507_v47  ;;  %4542 = vmatpush1.msra.mxu1 %v9508_v42  ;;  %v9520_v47 = vld [vmem:[#allocation79_spill] sm:$0xff] }
 0x4bf   : > { %4504 = vmatprep.mubr.f32.mxu0 %v9297_v5  ;;  %4575 = vmatprep.mubr.f32.mxu1 %v9297_v5  ;;  %v9521_v42 = vunpack.c.h.bf16 %v9520_v47  ;;  %v9524_v54 = vunpack.c.l.bf16 %v9520_v47 }
 0x4c0   : > { %4598 = vmatprep.subr.mxu0 %v9509_v27  ;;  %4669 = vmatprep.subr.mxu1 %v9511_v36  ;;  %v9523_v27 = vunpack.c.h.bf16 %v9522_v45  ;;  %v9525_v36 = vunpack.c.l.bf16 %v9522_v45 }
 0x519   : > { %v8660_v51 = vpop.f32.mrf.mxu0  ;;  %v8662_v53 = vpop.f32.mrf.mxu1 }
 0x51b   : > { %v8664_v58 = vpop.f32.mrf.mxu0  ;;  %v8666_v52 = vpop.f32.mrf.mxu1 }
 0x52a   : > { %v8668_v30 = vpop.f32.mrf.mxu0  ;;  %v8670_v35 = vpop.f32.mrf.mxu1 }
 0x52c   : > { %v8672_v8 = vpop.f32.mrf.mxu0  ;;  %v8674_v59 = vpop.f32.mrf.mxu1 }
 0x54c   : > { %v5814_v26 = vpop.f32.mrf.mxu0  ;;  %v5849_v29 = vpop.f32.mrf.mxu1 }
 0x54e   : > { %v5815_v18 = vpop.f32.mrf.mxu0  ;;  %v5850_v14 = vpop.f32.mrf.mxu1 }
 0x54f   : > { %v5816_v31 = vadd.f32 %v5815_v18, %v5814_v26  ;;  %v5851_v9 = vadd.f32 %v5850_v14, %v5849_v29  ;;  %v9526_v26 = vld [vmem:[#allocation81_spill] sm:$0xff]  ;;  %v9528_v18 = vld [vmem:[#allocation82_spill] sm:$0xff] }
 0x550   : > { %v9527_v29 = vunpack.c.h.bf16 %v9526_v26  ;;  %v9529_v14 = vunpack.c.h.bf16 %v9528_v18 }
 0x551   : > { %v4294_v48 = vadd.f32 %v5851_v9, %v5816_v31  ;;  %v9530_v31 = vunpack.c.l.bf16 %v9526_v26  ;;  %v9531_v9 = vunpack.c.l.bf16 %v9528_v18 }
 0x56e   : > { %v5884_v60 = vpop.f32.mrf.mxu0  ;;  %v5919_v16 = vpop.f32.mrf.mxu1 }
 0x570   : > { %v5885_v0 = vpop.f32.mrf.mxu0  ;;  %v5920_v40 = vpop.f32.mrf.mxu1 }
 0x571   : > { %v5886_v63 = vadd.f32 %v5885_v0, %v5884_v60  ;;  %v5921_v44 = vadd.f32 %v5920_v40, %v5919_v16  ;;  %v9532_v60 = vunpack.c.h.bf16 %v8213_v62  ;;  %v9533_v16 = vunpack.c.h.bf16 %v8216_v25 }
 0x572   : > { %v9534_v0 = vunpack.c.l.bf16 %v8213_v62  ;;  %v9535_v40 = vunpack.c.l.bf16 %v8216_v25  ;;  %v9541_v62 = vunpack.c.h.bf16 %v8252_v22  ;;  %v9542_v25 = vunpack.c.l.bf16 %v8252_v22  ;;  %v9546_v22 = vld [vmem:[#allocation9_spill] sm:$0xff] }
 0x573   : > { %v4364_v38 = vadd.f32 %v5886_v63, %v4294_v48  ;;  %v9536_v48 = vunpack.c.h.bf16 %v8231_v21  ;;  %v9537_v63 = vunpack.c.h.bf16 %v8234_v1 }
 0x575   : > { %v4434_v2 = vadd.f32 %v5921_v44, %v4364_v38  ;;  %v9538_v38 = vunpack.c.l.bf16 %v8231_v21  ;;  %v9539_v44 = vunpack.c.l.bf16 %v8234_v1  ;;  %v9543_v21 = vunpack.c.h.bf16 %v8270_v15 }
 0x576   : > { %v9544_v1 = vunpack.c.l.bf16 %v8267_v24 }
 0x577   : > { %5315 = vmatmul.mubr.msk.f32.vlgmr.msra.gmra.mxu0 %vm3837_vm1, %v4434_v2  ;;  %5316 = vmatmul.mubr.msk.f32.vlgmr.msra.gmra.mxu1 %vm3837_vm1, %v4434_v2 }
 0x578   : > { %4599 = vmatpush1.msra.mxu0 %v9512_v34  ;;  %4670 = vmatpush1.msra.mxu1 %v9513_v20  ;;  %v9540_v34 = vunpack.c.h.bf16 %v8249_v12  ;;  %v9545_v20 = vunpack.c.l.bf16 %v8270_v15 }
 0x579   : > { %4600 = vmatprep.subr.mxu0 %v9515_v13  ;;  %4671 = vmatprep.subr.mxu1 %v9517_v32  ;;  %v4773_v32 = vsub.f32 0.0, %v9547_v28 }
 0x57a   : > { %4601 = vmatpush1.msra.mxu0 %v9518_v39  ;;  %4672 = vmatpush1.msra.mxu1 %v9519_v43 }
 0x57b   : > { %4602 = vmatprep.subr.mxu0 %v9521_v42  ;;  %4673 = vmatprep.subr.mxu1 %v9523_v27 }
 0x57c   : > { %4603 = vmatpush1.msra.mxu0 %v9524_v54  ;;  %4674 = vmatpush1.msra.mxu1 %v9525_v36  ;;  %v4776_v54 = vmul.f32 1.442695, %v4773_v32 }
 0x57d   : > { %4604 = vmatprep.subr.mxu0 %v9527_v29  ;;  %4675 = vmatprep.subr.mxu1 %v9529_v14 }
 0x57e   : > { %4605 = vmatpush1.msra.mxu0 %v9530_v31  ;;  %4676 = vmatpush1.msra.mxu1 %v9531_v9 }
 0x57f   : > { %4606 = vmatprep.subr.mxu0 %v9532_v60  ;;  %4677 = vmatprep.subr.mxu1 %v9533_v16 }
 0x580   : > { %4607 = vmatpush1.msra.mxu0 %v9534_v0  ;;  %4678 = vmatpush1.msra.mxu1 %v9535_v40 }
 0x581   : > { %4608 = vmatprep.subr.mxu0 %v9536_v48  ;;  %4679 = vmatprep.subr.mxu1 %v9537_v63 }
 0x582   : > { %4609 = vmatpush1.msra.mxu0 %v9538_v38  ;;  %4680 = vmatpush1.msra.mxu1 %v9539_v44 }
 0x583   : > { %4610 = vmatprep.subr.mxu0 %v9540_v34  ;;  %4681 = vmatprep.subr.mxu1 %v9541_v62 }
 0x584   : > { %4611 = vmatpush1.msra.mxu0 %v3411_v33  ;;  %4682 = vmatpush1.msra.mxu1 %v9542_v25  ;;  %v4772_v33 = vsub.f32 0.0, %v9546_v22 }
 0x585   : > { %4612 = vmatprep.subr.mxu0 %v3404_v23  ;;  %4683 = vmatprep.subr.mxu1 %v9543_v21 }
 0x586   : > { %4613 = vmatpush1.msra.mxu0 %v9544_v1  ;;  %4646 = vmatprep.mubr.f32.mxu0 %v9297_v5  ;;  %v4774_v12 = vmul.f32 1.442695, %v4772_v33  ;;  %v9549_v1 = vld [vmem:[#allocation26_spill] sm:$0xff]  ;;  %v9550_v33 = vld [vmem:[#allocation27_spill] sm:$0xff] }
 0x587   : > { %4684 = vmatpush1.msra.mxu1 %v9545_v20  ;;  %4717 = vmatprep.mubr.f32.mxu1 %v9297_v5 }
 0x588   : > { %5317 = vmatmul.mubr.msk.f32.vlgmr.msra.gmra.mxu0 %vm3837_vm1, %v4434_v2  ;;  %5318 = vmatmul.mubr.msk.f32.vlgmr.msra.gmra.mxu1 %vm3837_vm1, %v4434_v2  ;;  %6014 = vpow2.f32 %v4774_v12  ;;  %vm3071_vm1 = vcmp.lt.s32.totalorder %v7222_v49, 8 }
 0x595   : > { %v6015_v42 = vpop.eup %6014 }
 0x596   : > { %v4778_v36 = vadd.f32 1.0, %v6015_v42 }
 0x637   : > { %v4506_v23 = vpop.f32.mrf.mxu0  ;;  %v4577_v7 = vpop.f32.mrf.mxu1 }
 0x638   : > { %v4724_v24 = vsub.f32 %v4506_v23, %v7270_v3  ;;  %v4726_v13 = vsub.f32 %v4577_v7, %v7297_v10  ;;  %v9551_v23 = vld [vmem:[#allocation28_spill] sm:$0xff] }
 0x639   : > { %v4508_v15 = vpop.f32.mrf.mxu0  ;;  %v4579_v39 = vpop.f32.mrf.mxu1 }
 0x63a   : > { %v4732_v43 = vmul.f32 1.442695, %v4724_v24  ;;  %v4736_v5 = vmul.f32 1.442695, %v4726_v13  ;;  %v4725_v47 = vsub.f32 %v4508_v15, %v7301_v11  ;;  %v4727_v2 = vsub.f32 %v4579_v39, %v7338_v19  ;;  %v9552_v24 = vld [vmem:[#allocation30_spill] sm:$0xff] }
 0x63c   : > { %6016 = vpow2.f32 %v4732_v43  ;;  %v4734_v45 = vmul.f32 1.442695, %v4725_v47  ;;  %v4738_v27 = vmul.f32 1.442695, %v4727_v2 }
 0x63d   : > { %6018 = vpow2.f32 %v4736_v5 }
 0x63e   : > { %6020 = vpow2.f32 %v4734_v45 }
 0x63f   : > { %6022 = vpow2.f32 %v4738_v27 }
 0x640   : > { %6024 = vpow2.f32 %v4776_v54 }
 0x641   : > { %6026 = vrcp.f32 %v4778_v36 }
 0x642   : > { %6028 = vrcp.f32 %v8660_v51 }
 0x643   : > { %6030 = vrcp.f32 %v8662_v53 }
 0x644   : > { %6032 = vrcp.f32 %v8664_v58 }
 0x645   : > { %6034 = vrcp.f32 %v8666_v52 }
 0x648   : > { %v4648_v3 = vpop.f32.mrf.mxu0  ;;  %v4719_v10 = vpop.f32.mrf.mxu1 }
 0x649   : > { %v6017_v11 = vpop.eup %6016  ;;  %v4728_v19 = vsub.f32 %v4648_v3, %v9459_v4  ;;  %v4730_v26 = vsub.f32 %v4719_v10, %v9460_v17 }
 0x64a   : > { %v6019_v29 = vpop.eup %6018  ;;  %v4748_v18 = vadd.f32 1.0, %v6017_v11  ;;  %v4650_v14 = vpop.f32.mrf.mxu0 }
 0x64b   : > { %v4721_v31 = vpop.f32.mrf.mxu1  ;;  %v6021_v9 = vpop.eup %6020  ;;  %v4750_v60 = vadd.f32 1.0, %v6019_v29  ;;  %v4729_v51 = vsub.f32 %v4650_v14, %v9456_v37  ;;  %v4740_v16 = vmul.f32 1.442695, %v4728_v19  ;;  %v4744_v40 = vmul.f32 1.442695, %v4730_v26 }
 0x64c   : > { %v6023_v53 = vpop.eup %6022  ;;  %6036 = vrcp.f32 %v4748_v18  ;;  %v4749_v58 = vadd.f32 1.0, %v6021_v9  ;;  %v4731_v52 = vsub.f32 %v4721_v31, %v9458_v41  ;;  %v9548_v41 = vld [vmem:[#allocation6_spill] sm:$0xff] }
 0x64d   : > { %6038 = vrcp.f32 %v4750_v60  ;;  %v4751_v0 = vadd.f32 1.0, %v6023_v53  ;;  %v6025_v4 = vpop.eup %6024  ;;  %v4742_v17 = vmul.f32 1.442695, %v4729_v51 }
 0x64e   : > { %6040 = vrcp.f32 %v4749_v58  ;;  %v6027_v48 = vpop.eup %6026  ;;  %v4746_v63 = vmul.f32 1.442695, %v4731_v52  ;;  %v4779_v44 = vadd.f32 1.0, %v6025_v4 }
 0x64f   : > { %6042 = vrcp.f32 %v4751_v0  ;;  %v6029_v38 = vpop.eup %6028  ;;  %v4802_v37 = vcombine.high %v6027_v48, %v6027_v48  ;;  %v4809_v21 = vrot.slane %v6027_v48, %v9548_v41 }
 0x650   : > { %6044 = vpow2.f32 %v4740_v16  ;;  %v6031_v34 = vpop.eup %6030  ;;  %v4133_v20 = vmul.f32 %v6029_v38, %v9549_v1 }
 0x651   : > { %6046 = vpow2.f32 %v4744_v40  ;;  %v6033_v62 = vpop.eup %6032  ;;  %v4816_v22 = vrot.slane %v4802_v37, %v9548_v41  ;;  %v4135_v12 = vmul.f32 %v6031_v34, %v9550_v33  ;;  %v4817_v39 = vcombine.high %v4809_v21, %v4809_v21  ;;  %v9558_v37 = vld [vmem:[#allocation59_spill] sm:$0xff] }
 0x652   : > { %6048 = vpow2.f32 %v4742_v17  ;;  %v6035_v25 = vpop.eup %6034  ;;  %v4134_v7 = vmul.f32 %v6033_v62, %v9551_v23  ;;  %v4784_v15 = vsel %vm7258_vm12, %v4133_v20, 0.0  ;;  %vm3083_vm12 = vcmp.eq.s32.totalorder %v9453_v6, 8  ;;  %v9559_v62 = vld [vmem:[#allocation34_spill] sm:$0xff] }
 0x653   : > { %6050 = vpow2.f32 %v4746_v63  ;;  %v4136_v13 = vmul.f32 %v6035_v25, %v9552_v24  ;;  %v4786_v47 = vsel %vm7285_vm2, %v4135_v12, 0.0  ;;  %v4818_v42 = vcombine.high %v4816_v22, %v4816_v22  ;;  %v9557_v63 = vld [vmem:[#allocation58_spill] sm:$0xff] }
 0x654   : > { %6052 = vrcp.f32 %v4779_v44  ;;  %v4785_v54 = vsel %vm7262_vm13, %v4134_v7, 0.0  ;;  %vm3075_vm13 = vcmp.lt.s32.totalorder %v9453_v6, 8  ;;  %vm3076_vm2 = vcmp.lt.s32.totalorder %v9445_v61, 8 }
 0x655   : > { %6054 = vrcp.f32 %v8668_v30  ;;  %v4787_v11 = vsel %vm7292_vm5, %v4136_v13, 0.0  ;;  %vm3085_vm5 = vcmp.eq.s32.totalorder %v9454_v46, 8 }
 0x656   : > { %6056 = vrcp.f32 %v8670_v35 }
 0x657   : > { %6058 = vrcp.f32 %v8672_v8 }
 0x658   : > { %6060 = vrcp.f32 %v8674_v59 }
 0x659   : > { %v6037_v28 = vpop.eup %6036 }
 0x65a   : > { %v6039_v43 = vpop.eup %6038  ;;  %v4792_v2 = vsel %vm3079_vm15, %v6037_v28, %v4784_v15  ;;  %vm3078_vm15 = vcmp.lt.s32.totalorder %v9450_v50, 8 }
 0x65b   : > { %v6041_v45 = vpop.eup %6040  ;;  %v4844_v36 = vsel %vm3071_vm1, %v4809_v21, %v4792_v2  ;;  %v4794_v30 = vsel %vm3081_vm4, %v6039_v43, %v4786_v47  ;;  %v9560_v21 = vld [vmem:[#allocation36_spill] sm:$0xff]  ;;  %vm3077_vm1 = vcmp.lt.s32.totalorder %v9454_v46, 8 }
 0x65c   : > { %v6043_v3 = vpop.eup %6042  ;;  %v4846_v35 = vsel %vm3073_vm14, %v4816_v22, %v4794_v30  ;;  %v4793_v19 = vsel %vm3080_vm3, %v6041_v45, %v4785_v54  ;;  %vm3086_vm14 = vcmp.eq.s32.totalorder %v9450_v50, 8 }
 0x65d   : > { %v6045_v26 = vpop.eup %6044  ;;  %v4845_v49 = vsel %vm3072_vm11, %v4817_v39, %v4793_v19  ;;  %v4795_v8 = vsel %vm3082_vm10, %v6043_v3, %v4787_v11  ;;  %vm3084_vm11 = vcmp.eq.s32.totalorder %v9445_v61, 8 }
 0x65e   : > { %v6047_v29 = vpop.eup %6046  ;;  %v4860_v18 = vcombine.low %v4844_v36, %v4845_v49  ;;  %v4847_v14 = vsel %vm3074_vm0, %v4818_v42, %v4795_v8  ;;  %v4752_v59 = vadd.f32 1.0, %v6045_v26 }
 0x65f   : > { %v6049_v31 = vpop.eup %6048  ;;  %v4861_v56 = vcombine.low %v4846_v35, %v4847_v14  ;;  %v4754_v9 = vadd.f32 1.0, %v6047_v29 }
 0x660   : > { %v6051_v60 = vpop.eup %6050  ;;  %v4868_v51 = vrot.slane %v4860_v18, %v9548_v41  ;;  %6062 = vrcp.f32 %v4752_v59  ;;  %v4753_v53 = vadd.f32 1.0, %v6049_v31 }
 0x661   : > { %v4875_v55 = vrot.slane %v4861_v56, %v9548_v41  ;;  %6064 = vrcp.f32 %v4754_v9  ;;  %v4755_v58 = vadd.f32 1.0, %v6051_v60  ;;  %v6053_v16 = vpop.eup %6052 }
 0x662   : > { %6066 = vrcp.f32 %v4753_v53  ;;  %v6055_v57 = vpop.eup %6054  ;;  %v4819_v0 = vcombine.high %v6053_v16, %v6053_v16  ;;  %v4826_v48 = vrot.slane %v6053_v16, %v9548_v41 }
 0x663   : > { %v4876_v52 = vcombine.low %v4868_v51, %v4875_v55  ;;  %6068 = vrcp.f32 %v4755_v58  ;;  %v6057_v40 = vpop.eup %6056  ;;  %v4137_v38 = vmul.f32 %v6055_v57, %v9557_v63 }
 0x664   : > { %v6059_v4 = vpop.eup %6058  ;;  %v4833_v44 = vrot.slane %v4819_v0, %v9548_v41  ;;  %v4139_v34 = vmul.f32 %v6057_v40, %v9558_v37  ;;  %v4834_v12 = vcombine.high %v4826_v48, %v4826_v48 }
 0x665   : > { %4896 = vst [vmem:[%s6876_s8] sm:$0xff] %v4876_v52  ;;  %v6061_v17 = vpop.eup %6060  ;;  %v4138_v25 = vmul.f32 %v6059_v4, %v9559_v62  ;;  %v4788_v33 = vsel %vm7316_vm6, %v4137_v38, 0.0 }
 0x666   : > { %v4140_v1 = vmul.f32 %v6061_v17, %v9560_v21  ;;  %v4790_v24 = vsel %vm7358_vm8, %v4139_v34, 0.0  ;;  %v4835_v28 = vcombine.high %v4833_v44, %v4833_v44 }
 0x667   : > { %v4789_v39 = vsel %vm7332_vm7, %v4138_v25, 0.0 }
 0x668   : > { %v4791_v42 = vsel %vm7380_vm9, %v4140_v1, 0.0 }
 0x66d   : > { %v6063_v20 = vpop.eup %6062 }
 0x66e   : > { %v6065_v23 = vpop.eup %6064  ;;  %v4796_v13 = vsel %vm3083_vm12, %v6063_v20, %v4788_v33 }
 0x66f   : > { %v6067_v32 = vpop.eup %6066  ;;  %v4848_v43 = vsel %vm3075_vm13, %v4826_v48, %v4796_v13  ;;  %v4798_v5 = vsel %vm3085_vm5, %v6065_v23, %v4790_v24 }
 0x670   : > { %v6069_v47 = vpop.eup %6068  ;;  %v4850_v45 = vsel %vm3077_vm1, %v4833_v44, %v4798_v5  ;;  %v4797_v50 = vsel %vm3084_vm11, %v6067_v32, %v4789_v39 }
 0x671   : > { %v4849_v27 = vsel %vm3076_vm2, %v4834_v12, %v4797_v50  ;;  %v4799_v54 = vsel %vm3086_vm14, %v6069_v47, %v4791_v42 }
 0x672   : > { %v4877_v36 = vcombine.low %v4848_v43, %v4849_v27  ;;  %v4851_v6 = vsel %vm3078_vm15, %v4835_v28, %v4799_v54 }
 0x673   : > { %v4878_v30 = vcombine.low %v4850_v45, %v4851_v6 }
 0x674   : > { %v4885_v3 = vrot.slane %v4877_v36, %v9548_v41 }
 0x675   : > { %v4892_v10 = vrot.slane %v4878_v30, %v9548_v41 }
 0x677   : > { %v4893_v11 = vcombine.low %v4885_v3, %v4892_v10 }
 0x679   : > { %4897 = vst [vmem:[%s6876_s8 + $0x8] sm:$0xff] %v4893_v11 }
 0x67a PF: > { %s15_s26 = sadd.s32 1, %s6140_s26   ;;  %s9565_s29 = sld [smem:[#allocation5_spill]] }
 0x67b   : > { %p12_p4 = scmp.ge.s32.totalorder %s15_s26, 6   ;;  %s9566_s18 = smov %s6112_s19 }
 0x67c   : > { %s9567_s19 = smov %s6248_s11  ;;  %s9568_s20 = smov %s6120_s21 }
 0x67d   : > { %s9569_s21 = smov %s6251_s12  ;;  %s9570_s22 = smov %s6132_s24 }
 0x67e   : > { %s9571_s23 = smov %s6136_s25  ;;  %s9572_s24 = smov %s9575_s27 }
 0x67f   :  { %14 = sbr.rel (!%p12_p4) target bundleno = 8 (0x8), region = 146 }
 0x680   : > { %s9573_s25 = smov %s9565_s29 }

</bundles_post_ra>
